<compile_context>
chip_gen: v7x
topology: tpu7x:2x2x1
jax: 0.10.0
libtpu: 0.0.40
codegen_flags: <defaults>
</compile_context>

<pallas_src>
import itertools

import jax
import jax.numpy as jnp
from jax.experimental import pallas as pl
from jax.experimental.pallas import tpu as pltpu

EPS = 1e-5
MLP_DIM = 4096   # hard-coded in build_mlp / build_mlp2 calls inside MultiCropWrapper
OUT_DIM = 256

_ROW_BLOCK = 256                  # rows per grid step for tiled kernels
_BN_SINGLE_BLOCK_MAX_ROWS = 1024  # above this, BN heads use the two-pass tiled path


def _round_up(n, m):
    return ((n + m - 1) // m) * m


def _pick_vmem_limit():
    # Per-generation scoped-VMEM budget: leave headroom for compiler-managed
    # buffers; never ask for more than 64 MiB (v7x has 64 MiB physical per TC).
    try:
        cap = int(pltpu.get_tpu_info().vmem_capacity_bytes)
    except Exception:  # noqa: BLE001  (fallback if query unavailable)
        cap = 64 * 1024 * 1024
    return max(32 * 1024 * 1024, min(cap - 16 * 1024 * 1024, 64 * 1024 * 1024))


_VMEM_LIMIT = _pick_vmem_limit()


# ----------------------------------------------------------------------------
# In-kernel helpers
# ----------------------------------------------------------------------------
def _layernorm(h):
    # per-row LayerNorm, f32 math (biased variance, matches torch.nn.LayerNorm)
    mu = jnp.mean(h, axis=-1, keepdims=True)
    var = jnp.mean(jnp.square(h - mu), axis=-1, keepdims=True)
    return (h - mu) * jax.lax.rsqrt(var + EPS)


# ----------------------------------------------------------------------------
# Fused MLP-head kernels
# ----------------------------------------------------------------------------
def _fused_mlp_ln_kernel(x_ref, w1_ref, g_ref, b_ref, w2_ref, o_ref):
    # Linear(no bias) -> LayerNorm -> ReLU -> Linear(no bias), one row-block.
    h = jnp.dot(x_ref[...].astype(jnp.bfloat16), w1_ref[...],
                preferred_element_type=jnp.float32)
    hr = jnp.maximum(_layernorm(h) * g_ref[...] + b_ref[...], 0.0)
    o_ref[...] = jnp.dot(hr.astype(jnp.bfloat16), w2_ref[...],
                         preferred_element_type=jnp.float32)


def _fused_ln_head_pred_kernel(x_ref, w1_ref, g1_ref, b1_ref, w2_ref,
                               pw1_ref, pg_ref, pb_ref, pw2_ref, o_ref):
    # head (Linear->LN->ReLU->Linear) immediately followed by predictor
    # (Linear->LN->ReLU->Linear) on the same row block: the (bn, 256)
    # intermediate never leaves VMEM.
    h = jnp.dot(x_ref[...].astype(jnp.bfloat16), w1_ref[...],
                preferred_element_type=jnp.float32)
    hr = jnp.maximum(_layernorm(h) * g1_ref[...] + b1_ref[...], 0.0)
    y = jnp.dot(hr.astype(jnp.bfloat16), w2_ref[...],
                preferred_element_type=jnp.float32)
    h2 = jnp.dot(y.astype(jnp.bfloat16), pw1_ref[...],
                 preferred_element_type=jnp.float32)
    h2r = jnp.maximum(_layernorm(h2) * pg_ref[...] + pb_ref[...], 0.0)
    o_ref[...] = jnp.dot(h2r.astype(jnp.bfloat16), pw2_ref[...],
                         preferred_element_type=jnp.float32)


def _fused_mlp_bn_kernel(x_ref, w1_ref, g_ref, b_ref, w2_ref, o_ref):
    # Linear(no bias) -> BatchNorm1d (training mode: batch stats over rows,
    # biased variance) -> ReLU -> Linear(no bias).  Whole batch in one block
    # (only used for small row counts, e.g. the cls path).
    h = jnp.dot(x_ref[...].astype(jnp.bfloat16), w1_ref[...],
                preferred_element_type=jnp.float32)
    mu = jnp.mean(h, axis=0, keepdims=True)
    var = jnp.mean(jnp.square(h - mu), axis=0, keepdims=True)
    hr = jnp.maximum((h - mu) * jax.lax.rsqrt(var + EPS) * g_ref[...] + b_ref[...], 0.0)
    o_ref[...] = jnp.dot(hr.astype(jnp.bfloat16), w2_ref[...],
                         preferred_element_type=jnp.float32)


def _bn_pass1_kernel(x_ref, w1_ref, h_ref, stats_ref):
    # pass 1 of tiled BN head: h = x @ w1 (row block) plus per-block partial
    # sum / sum-of-squares over rows (zero-padded rows contribute zero because
    # the first Linear has no bias, so stats computed outside stay exact).
    h = jnp.dot(x_ref[...].astype(jnp.bfloat16), w1_ref[...],
                preferred_element_type=jnp.float32)
    h_ref[...] = h
    stats_ref[...] = jnp.zeros_like(stats_ref)
    stats_ref[:, 0:1, :] = jnp.sum(h, axis=0, keepdims=True)[None]
    stats_ref[:, 1:2, :] = jnp.sum(h * h, axis=0, keepdims=True)[None]


def _bn_pass2_kernel(h_ref, mu_ref, inv_ref, g_ref, b_ref, w2_ref, o_ref):
    # pass 2 of tiled BN head: normalize with global stats, ReLU, second matmul.
    hn = (h_ref[...] - mu_ref[...]) * inv_ref[...] * g_ref[...] + b_ref[...]
    hr = jnp.maximum(hn, 0.0)
    o_ref[...] = jnp.dot(hr.astype(jnp.bfloat16), w2_ref[...],
                         preferred_element_type=jnp.float32)


def _linear_bias_kernel(x_ref, w_ref, b_ref, o_ref):
    # plain nn.Linear(embed_dim, embed_dim) (nonlinear=False, predictor=True path)
    o_ref[...] = (jnp.dot(x_ref[...].astype(jnp.bfloat16), w_ref[...],
                          preferred_element_type=jnp.float32) + b_ref[...])


# ----------------------------------------------------------------------------
# Pallas wrappers
# ----------------------------------------------------------------------------
def fused_mlp_ln(x, params, *, bn=_ROW_BLOCK):
    """LayerNorm MLP head, tiled over `bn`-row blocks (LN is per-row, so exact)."""
    w1, gamma, beta, w2 = params["w1"], params["gamma"], params["beta"], params["w2"]
    n, d_in = x.shape
    h_dim = w1.shape[1]
    d_out = w2.shape[1]
    n_pad = _round_up(n, bn)
    if n_pad != n:
        x = jnp.pad(x, ((0, n_pad - n), (0, 0)))
    flops = 2 * n_pad * (d_in * h_dim + h_dim * d_out)
    bytes_accessed = int(n_pad * d_in * 4 + w1.size * 2 + w2.size * 2
                         + gamma.size * 4 + beta.size * 4 + n_pad * d_out * 4)
    out = pl.pallas_call(
        _fused_mlp_ln_kernel,
        out_shape=jax.ShapeDtypeStruct((n_pad, d_out), jnp.float32),
        grid=(n_pad // bn,),
        in_specs=[
            pl.BlockSpec((bn, d_in), lambda i: (i, 0)),
            pl.BlockSpec((d_in, h_dim), lambda i: (0, 0)),
            pl.BlockSpec((1, h_dim), lambda i: (0, 0)),
            pl.BlockSpec((1, h_dim), lambda i: (0, 0)),
            pl.BlockSpec((h_dim, d_out), lambda i: (0, 0)),
        ],
        out_specs=pl.BlockSpec((bn, d_out), lambda i: (i, 0)),
        compiler_params=pltpu.CompilerParams(
            dimension_semantics=("parallel",), vmem_limit_bytes=_VMEM_LIMIT),
        cost_estimate=pl.CostEstimate(flops=flops, transcendentals=0,
                                      bytes_accessed=bytes_accessed),
    )(x, w1, gamma, beta, w2)
    return out[:n]


def fused_ln_head_predictor(x, head, pred, *, bn=_ROW_BLOCK):
    """Fused LN-MLP head followed by LN-MLP predictor, tiled over rows."""
    n, d_in = x.shape
    h_dim = head["w1"].shape[1]
    mid = head["w2"].shape[1]
    h2_dim = pred["w1"].shape[1]
    d_out = pred["w2"].shape[1]
    n_pad = _round_up(n, bn)
    if n_pad != n:
        x = jnp.pad(x, ((0, n_pad - n), (0, 0)))
    flops = 2 * n_pad * (d_in * h_dim + h_dim * mid + mid * h2_dim + h2_dim * d_out)
    bytes_accessed = int(
        n_pad * d_in * 4
        + 2 * (head["w1"].size + head["w2"].size + pred["w1"].size + pred["w2"].size)
        + 4 * 2 * (head["gamma"].size + pred["gamma"].size)
        + n_pad * d_out * 4)
    out = pl.pallas_call(
        _fused_ln_head_pred_kernel,
        out_shape=jax.ShapeDtypeStruct((n_pad, d_out), jnp.float32),
        grid=(n_pad // bn,),
        in_specs=[
            pl.BlockSpec((bn, d_in), lambda i: (i, 0)),
            pl.BlockSpec((d_in, h_dim), lambda i: (0, 0)),
            pl.BlockSpec((1, h_dim), lambda i: (0, 0)),
            pl.BlockSpec((1, h_dim), lambda i: (0, 0)),
            pl.BlockSpec((h_dim, mid), lambda i: (0, 0)),
            pl.BlockSpec((mid, h2_dim), lambda i: (0, 0)),
            pl.BlockSpec((1, h2_dim), lambda i: (0, 0)),
            pl.BlockSpec((1, h2_dim), lambda i: (0, 0)),
            pl.BlockSpec((h2_dim, d_out), lambda i: (0, 0)),
        ],
        out_specs=pl.BlockSpec((bn, d_out), lambda i: (i, 0)),
        compiler_params=pltpu.CompilerParams(
            dimension_semantics=("parallel",), vmem_limit_bytes=_VMEM_LIMIT),
        cost_estimate=pl.CostEstimate(flops=flops, transcendentals=0,
                                      bytes_accessed=bytes_accessed),
    )(x, head["w1"], head["gamma"], head["beta"], head["w2"],
      pred["w1"], pred["gamma"], pred["beta"], pred["w2"])
    return out[:n]


def _fused_mlp_bn_single(x, params):
    """Whole-batch BN MLP head in a single block (small row counts only)."""
    w1, gamma, beta, w2 = params["w1"], params["gamma"], params["beta"], params["w2"]
    n = x.shape[0]
    d_out = w2.shape[1]
    return pl.pallas_call(
        _fused_mlp_bn_kernel,
        out_shape=jax.ShapeDtypeStruct((n, d_out), jnp.float32),
        in_specs=[pl.BlockSpec(memory_space=pltpu.MemorySpace.VMEM)] * 5,
        out_specs=pl.BlockSpec(memory_space=pltpu.MemorySpace.VMEM),
        compiler_params=pltpu.CompilerParams(vmem_limit_bytes=_VMEM_LIMIT),
    )(x, w1, gamma, beta, w2)


def _fused_mlp_bn_tiled(x, params, *, bn=_ROW_BLOCK):
    """Two-pass, row-tiled BN MLP head (exact batch stats over all true rows)."""
    w1, gamma, beta, w2 = params["w1"], params["gamma"], params["beta"], params["w2"]
    n, d_in = x.shape
    h_dim = w1.shape[1]
    d_out = w2.shape[1]
    n_pad = _round_up(n, bn)
    if n_pad != n:
        # zero-padded rows produce h == 0 (no bias) -> contribute nothing to the
        # partial sums; the mean/var below divide by the true row count n.
        x = jnp.pad(x, ((0, n_pad - n), (0, 0)))
    nblk = n_pad // bn

    h, stats = pl.pallas_call(
        _bn_pass1_kernel,
        out_shape=(jax.ShapeDtypeStruct((n_pad, h_dim), jnp.float32),
                   jax.ShapeDtypeStruct((nblk, 8, h_dim), jnp.float32)),
        grid=(nblk,),
        in_specs=[pl.BlockSpec((bn, d_in), lambda i: (i, 0)),
                  pl.BlockSpec((d_in, h_dim), lambda i: (0, 0))],
        out_specs=(pl.BlockSpec((bn, h_dim), lambda i: (i, 0)),
                   pl.BlockSpec((1, 8, h_dim), lambda i: (i, 0, 0))),
        compiler_params=pltpu.CompilerParams(
            dimension_semantics=("parallel",), vmem_limit_bytes=_VMEM_LIMIT),
    )(x, w1)

    tot = jnp.sum(stats[:, 0, :], axis=0)
    totsq = jnp.sum(stats[:, 1, :], axis=0)
    mu = tot / n
    var = jnp.maximum(totsq / n - mu * mu, 0.0)            # biased (training-mode BN)
    inv = jax.lax.rsqrt(var + EPS)

    out = pl.pallas_call(
        _bn_pass2_kernel,
        out_shape=jax.ShapeDtypeStruct((n_pad, d_out), jnp.float32),
        grid=(nblk,),
        in_specs=[pl.BlockSpec((bn, h_dim), lambda i: (i, 0)),
                  pl.BlockSpec((1, h_dim), lambda i: (0, 0)),
                  pl.BlockSpec((1, h_dim), lambda i: (0, 0)),
                  pl.BlockSpec((1, h_dim), lambda i: (0, 0)),
                  pl.BlockSpec((1, h_dim), lambda i: (0, 0)),
                  pl.BlockSpec((h_dim, d_out), lambda i: (0, 0))],
        out_specs=pl.BlockSpec((bn, d_out), lambda i: (i, 0)),
        compiler_params=pltpu.CompilerParams(
            dimension_semantics=("parallel",), vmem_limit_bytes=_VMEM_LIMIT),
    )(h, mu.reshape(1, h_dim), inv.reshape(1, h_dim), gamma, beta, w2)
    return out[:n]


def fused_mlp_bn(x, params):
    """BatchNorm MLP head: batch stats need every row. Small batches use one
    VMEM block; large batches use the exact two-pass tiled implementation."""
    if x.shape[0] <= _BN_SINGLE_BLOCK_MAX_ROWS:
        return _fused_mlp_bn_single(x, params)
    return _fused_mlp_bn_tiled(x, params)


def linear_with_bias(x, params, *, bn=_ROW_BLOCK):
    w, b = params["w"], params["b"]
    n, d_in = x.shape
    d_out = w.shape[1]
    n_pad = _round_up(n, bn)
    if n_pad != n:
        x = jnp.pad(x, ((0, n_pad - n), (0, 0)))
    out = pl.pallas_call(
        _linear_bias_kernel,
        out_shape=jax.ShapeDtypeStruct((n_pad, d_out), jnp.float32),
        grid=(n_pad // bn,),
        in_specs=[pl.BlockSpec((bn, d_in), lambda i: (i, 0)),
                  pl.BlockSpec((d_in, d_out), lambda i: (0, 0)),
                  pl.BlockSpec((1, d_out), lambda i: (0, 0))],
        out_specs=pl.BlockSpec((bn, d_out), lambda i: (i, 0)),
        compiler_params=pltpu.CompilerParams(
            dimension_semantics=("parallel",), vmem_limit_bytes=_VMEM_LIMIT),
    )(x, w, b)
    return out[:n]


# ----------------------------------------------------------------------------
# Deterministic parameter init (PyTorch nn.Linear-style uniform bound 1/sqrt(fan_in)).
# Weights stored [in, out] in bf16 so the kernels compute x @ W (== PyTorch x @ W.T)
# on the MXU natively.
# ----------------------------------------------------------------------------
def _linear_weight(key, d_in, d_out):
    bound = 1.0 / (d_in ** 0.5)
    return jax.random.uniform(key, (d_in, d_out), jnp.float32, -bound, bound)


def _init_mlp_params(key, d_in, d_mid, d_out):
    k1, k2 = jax.random.split(key)
    return {
        "w1": _linear_weight(k1, d_in, d_mid).astype(jnp.bfloat16),
        "gamma": jnp.ones((1, d_mid), jnp.float32),   # LN/BN weight (default 1)
        "beta": jnp.zeros((1, d_mid), jnp.float32),   # LN/BN bias (default 0)
        "w2": _linear_weight(k2, d_mid, d_out).astype(jnp.bfloat16),
    }


# ----------------------------------------------------------------------------
# Pure-JAX references (same bf16 matmul casts) for numerical spot checks
# ----------------------------------------------------------------------------
def _ref_mlp_ln(x, p):
    h = jnp.dot(x.astype(jnp.bfloat16), p["w1"], preferred_element_type=jnp.float32)
    mu = jnp.mean(h, axis=-1, keepdims=True)
    var = jnp.mean(jnp.square(h - mu), axis=-1, keepdims=True)
    hr = jnp.maximum((h - mu) * jax.lax.rsqrt(var + EPS) * p["gamma"] + p["beta"], 0.0)
    return jnp.dot(hr.astype(jnp.bfloat16), p["w2"], preferred_element_type=jnp.float32)


def _ref_mlp_bn(x, p):
    h = jnp.dot(x.astype(jnp.bfloat16), p["w1"], preferred_element_type=jnp.float32)
    mu = jnp.mean(h, axis=0, keepdims=True)
    var = jnp.mean(jnp.square(h - mu), axis=0, keepdims=True)
    hr = jnp.maximum((h - mu) * jax.lax.rsqrt(var + EPS) * p["gamma"] + p["beta"], 0.0)
    return jnp.dot(hr.astype(jnp.bfloat16), p["w2"], preferred_element_type=jnp.float32)


# ----------------------------------------------------------------------------
# Synthetic backbone
# ----------------------------------------------------------------------------
def make_synthetic_backbone(key, n_mels, embed_dim):
    # TODO(synk): the real backbone is an external nn.Module passed into
    # MultiCropWrapper; replaced here by a deterministic per-frame linear
    # projection (frame features) + mean pooling over time (cls feature).
    w = jax.random.normal(key, (n_mels, embed_dim), jnp.float32) / (n_mels ** 0.5)

    def backbone(x, mask, length, src_idx, use_mask, avg, use_aug_loss):
        # x: [B, F, T] -> frm: [B*T, E], cls: [B, E]
        frm = jnp.einsum("bft,fe->bte", x, w)
        cls = jnp.mean(frm, axis=1)
        return cls, frm.reshape(-1, embed_dim)

    return backbone


def _unique_consecutive_counts(vals):
    counts, prev = [], object()
    for v in vals:
        if counts and v == prev:
            counts[-1] += 1
        else:
            counts.append(1)
            prev = v
    return counts


# ----------------------------------------------------------------------------
# MultiCropWrapper
# ----------------------------------------------------------------------------
class MultiCropWrapper:
    def __init__(self, key, backbone, embed_dim, nonlinear=False, predictor=False,
                 use_cls=True, use_bn=False):
        self.backbone = backbone
        self.use_bn = use_bn
        self.use_cls = use_cls
        self.nonlinear = nonlinear
        self.has_predictor = predictor
        ks = jax.random.split(key, 6)
        if nonlinear:
            # head / predictor: build_mlp (BN) if use_bn else build_mlp2 (LN)
            self.head = _init_mlp_params(ks[0], embed_dim, MLP_DIM, OUT_DIM)
            if use_cls:
                self.head2 = _init_mlp_params(ks[1], embed_dim, MLP_DIM, OUT_DIM)
            if predictor:
                self.predictor = _init_mlp_params(ks[2], OUT_DIM, MLP_DIM, OUT_DIM)
                if use_cls:
                    self.predictor2 = _init_mlp_params(ks[3], OUT_DIM, MLP_DIM, OUT_DIM)
            else:
                self.predictor = None
                if use_cls:
                    self.predictor2 = None
        else:
            self.head = None
            self.head2 = None
            if predictor:
                bound = 1.0 / (embed_dim ** 0.5)
                self.predictor = {
                    "w": _linear_weight(ks[4], embed_dim, embed_dim).astype(jnp.bfloat16),
                    "b": jax.random.uniform(ks[5], (1, embed_dim), jnp.float32,
                                            -bound, bound),
                }
            else:
                self.predictor = None

    # --- head application helpers ---------------------------------------
    def _apply_head(self, x):          # self.head
        if not self.nonlinear:
            return x
        return fused_mlp_bn(x, self.head) if self.use_bn else fused_mlp_ln(x, self.head)

    def _apply_head2(self, x):         # self.head2 (always build_mlp -> BN)
        if not self.nonlinear:
            return x
        return fused_mlp_bn(x, self.head2)

    def _apply_predictor(self, x):     # self.predictor
        if self.predictor is None:
            return x
        if not self.nonlinear:
            return linear_with_bias(x, self.predictor)
        return (fused_mlp_bn(x, self.predictor) if self.use_bn
                else fused_mlp_ln(x, self.predictor))

    def _apply_predictor2(self, x):    # self.predictor2 (always build_mlp -> BN)
        if not self.nonlinear or self.predictor2 is None:
            return x
        return fused_mlp_bn(x, self.predictor2)

    # --- forward ----------------------------------------------------------
    def __call__(self, x, mask, length, src_idx, use_mask, avg, use_aug_loss):
        if not isinstance(x, (list, tuple)):
            x, mask, length = [x], [mask], [length]
            src_idx = [src_idx] if src_idx is not None else None

        # torch.cumsum(torch.unique_consecutive([inp.shape[-1]], return_counts=True)[1], 0)
        counts = _unique_consecutive_counts([int(inp.shape[-1]) for inp in x])
        idx_crops = list(itertools.accumulate(counts))

        start_idx = 0
        cls_parts, frm_parts = [], []
        for end_idx in idx_crops:
            xc = jnp.concatenate(x[start_idx:end_idx], axis=0)
            mc = jnp.concatenate(mask[start_idx:end_idx], axis=0)
            lc = jnp.concatenate(length[start_idx:end_idx], axis=0)
            sc = (jnp.concatenate(src_idx[start_idx:end_idx], axis=0)
                  if src_idx is not None else None)
            _out_cls, _out_frm = self.backbone(xc, mc, lc, sc,
                                               use_mask, avg, use_aug_loss)
            cls_parts.append(_out_cls)
            frm_parts.append(_out_frm)
            start_idx = end_idx

        output_cls = jnp.concatenate(cls_parts, axis=0)
        output_frm = jnp.concatenate(frm_parts, axis=0)

        if self.use_cls:
            cls_out = self._apply_predictor2(self._apply_head2(output_cls))
        else:
            cls_out = output_cls

        if self.nonlinear and (not self.use_bn) and self.predictor is not None:
            # LN head + LN predictor fused into a single kernel (frame path).
            frm_out = fused_ln_head_predictor(output_frm, self.head, self.predictor)
        else:
            frm_out = self._apply_predictor(self._apply_head(output_frm))

        return cls_out, frm_out


# ----------------------------------------------------------------------------
if __name__ == "__main__":
    key = jax.random.PRNGKey(0)
    B, F_MELS, EMBED = 2, 8, 32
    T_GLOBAL, T_LOCAL = 16, 8

    ks = jax.random.split(key, 8)
    # 2 "global" crops (T=16) followed by 2 "local" crops (T=8) -> two groups.
    x = ([jax.random.normal(ks[i], (B, F_MELS, T_GLOBAL), jnp.float32) for i in range(2)]
         + [jax.random.normal(ks[2 + i], (B, F_MELS, T_LOCAL), jnp.float32) for i in range(2)])
    crop_T = [T_GLOBAL, T_GLOBAL, T_LOCAL, T_LOCAL]
    mask = [jnp.zeros((B, t), jnp.float32) for t in crop_T]
    length = [jnp.full((B,), t, jnp.int32) for t in crop_T]
    src_idx = [jnp.arange(B, dtype=jnp.int32) for _ in crop_T]

    backbone = make_synthetic_backbone(jax.random.PRNGKey(42), F_MELS, EMBED)
    model = MultiCropWrapper(jax.random.PRNGKey(1), backbone, EMBED,
                             nonlinear=True, predictor=True,
                             use_cls=True, use_bn=False)

    cls_out, frm_out = model(x, mask, length, src_idx,
                             use_mask=False, avg=False, use_aug_loss=False)
    jax.block_until_ready((cls_out, frm_out))

    # cls_out: [num_crops * B, 256] = [8, 256]; frm_out: [sum(B*T_i), 256] = [96, 256]
    assert cls_out.shape == (4 * B, OUT_DIM)
    assert frm_out.shape == (2 * B * T_GLOBAL + 2 * B * T_LOCAL, OUT_DIM)
    assert bool(jnp.all(jnp.isfinite(cls_out))) and bool(jnp.all(jnp.isfinite(frm_out)))

    # --- numerical spot-checks vs pure-JAX references (same bf16 matmul casts)
    kc = jax.random.split(jax.random.PRNGKey(7), 2)

    # fused LN head + predictor (frame path), tiled with padding (96 -> 256 rows)
    xt = jax.random.normal(kc[0], (96, EMBED), jnp.float32)
    got_ln = fused_ln_head_predictor(xt, model.head, model.predictor)
    want_ln = _ref_mlp_ln(_ref_mlp_ln(xt, model.head), model.predictor)
    assert jnp.allclose(got_ln, want_ln, rtol=2e-2, atol=2e-2)

    # tiled two-pass BN head (1500 rows > threshold, non-multiple of the block)
    xb = jax.random.normal(kc[1], (1500, EMBED), jnp.float32)
    got_bn = fused_mlp_bn(xb, model.head2)
    want_bn = _ref_mlp_bn(xb, model.head2)
    assert jnp.allclose(got_bn, want_bn, rtol=2e-2, atol=2e-2)

    # single-block BN head (small cls-style batch)
    got_bn_s = fused_mlp_bn(xb[:8], model.head2)
    want_bn_s = _ref_mlp_bn(xb[:8], model.head2)
    assert jnp.allclose(got_bn_s, want_bn_s, rtol=2e-2, atol=2e-2)

    print("KERNEL_OK")
</pallas_src>

<mosaic_0001>
module attributes {stable_mosaic.version = 11 : i64} {
  func.func @_fused_mlp_bn_kernel(%arg0: memref<8x32xf32, #tpu.memory_space<vmem>>, %arg1: memref<32x4096xbf16, #tpu.memory_space<vmem>>, %arg2: memref<1x4096xf32, #tpu.memory_space<vmem>>, %arg3: memref<1x4096xf32, #tpu.memory_space<vmem>>, %arg4: memref<4096x256xbf16, #tpu.memory_space<vmem>>, %arg5: memref<8x256xf32, #tpu.memory_space<vmem>>) attributes {dimension_semantics = [], scalar_prefetch = 0 : i64, scratch_operands = 0 : i64, tpu.core_type = #tpu.core_type<tc>} {
    %c0 = arith.constant 0 : index
    %c0_0 = arith.constant 0 : index
    %0 = vector.load %arg0[%c0, %c0_0] : memref<8x32xf32, #tpu.memory_space<vmem>>, vector<8x32xf32>
    %1 = arith.truncf %0 : vector<8x32xf32> to vector<8x32xbf16>
    %c0_1 = arith.constant 0 : index
    %c0_2 = arith.constant 0 : index
    %2 = vector.load %arg1[%c0_1, %c0_2] : memref<32x4096xbf16, #tpu.memory_space<vmem>>, vector<32x4096xbf16>
    %cst = arith.constant dense<0.000000e+00> : vector<8x4096xf32>
    %3 = tpu.matmul %1, %2, %cst {dimension_numbers = #tpu.dot_dimension_numbers<[1], [0], [0], [1], [0, 0, 1, 1], [], []>} : vector<8x32xbf16>, vector<32x4096xbf16>, vector<8x4096xf32> -> vector<8x4096xf32>
    %cst_3 = arith.constant dense<0.000000e+00> : vector<4096xf32>
    %4 = vector.multi_reduction <add>, %3, %cst_3 [0] : vector<8x4096xf32> to vector<4096xf32>
    %5 = vector.shape_cast %4 : vector<4096xf32> to vector<1x4096xf32>
    %cst_4 = arith.constant 8.000000e+00 : f32
    %6 = vector.broadcast %cst_4 : f32 to vector<1x4096xf32>
    %7 = arith.divf %5, %6 : vector<1x4096xf32>
    %8 = vector.broadcast %7 : vector<1x4096xf32> to vector<8x4096xf32>
    %9 = arith.subf %3, %8 : vector<8x4096xf32>
    %10 = arith.mulf %9, %9 : vector<8x4096xf32>
    %cst_5 = arith.constant dense<0.000000e+00> : vector<4096xf32>
    %11 = vector.multi_reduction <add>, %10, %cst_5 [0] : vector<8x4096xf32> to vector<4096xf32>
    %12 = vector.shape_cast %11 : vector<4096xf32> to vector<1x4096xf32>
    %cst_6 = arith.constant 8.000000e+00 : f32
    %13 = vector.broadcast %cst_6 : f32 to vector<1x4096xf32>
    %14 = arith.divf %12, %13 : vector<1x4096xf32>
    %15 = vector.broadcast %7 : vector<1x4096xf32> to vector<8x4096xf32>
    %16 = arith.subf %3, %15 : vector<8x4096xf32>
    %cst_7 = arith.constant 9.99999974E-6 : f32
    %17 = vector.broadcast %cst_7 : f32 to vector<1x4096xf32>
    %18 = arith.addf %14, %17 : vector<1x4096xf32>
    %19 = math.rsqrt %18 : vector<1x4096xf32>
    %20 = vector.broadcast %19 : vector<1x4096xf32> to vector<8x4096xf32>
    %21 = arith.mulf %16, %20 : vector<8x4096xf32>
    %c0_8 = arith.constant 0 : index
    %c0_9 = arith.constant 0 : index
    %22 = vector.load %arg2[%c0_8, %c0_9] : memref<1x4096xf32, #tpu.memory_space<vmem>>, vector<1x4096xf32>
    %23 = vector.broadcast %22 : vector<1x4096xf32> to vector<8x4096xf32>
    %24 = arith.mulf %21, %23 : vector<8x4096xf32>
    %c0_10 = arith.constant 0 : index
    %c0_11 = arith.constant 0 : index
    %25 = vector.load %arg3[%c0_10, %c0_11] : memref<1x4096xf32, #tpu.memory_space<vmem>>, vector<1x4096xf32>
    %26 = vector.broadcast %25 : vector<1x4096xf32> to vector<8x4096xf32>
    %27 = arith.addf %24, %26 : vector<8x4096xf32>
    %cst_12 = arith.constant 0.000000e+00 : f32
    %28 = vector.broadcast %cst_12 : f32 to vector<8x4096xf32>
    %29 = arith.maximumf %27, %28 : vector<8x4096xf32>
    %30 = arith.truncf %29 : vector<8x4096xf32> to vector<8x4096xbf16>
    %c0_13 = arith.constant 0 : index
    %c0_14 = arith.constant 0 : index
    %31 = vector.load %arg4[%c0_13, %c0_14] : memref<4096x256xbf16, #tpu.memory_space<vmem>>, vector<4096x256xbf16>
    %cst_15 = arith.constant dense<0.000000e+00> : vector<8x256xf32>
    %32 = tpu.matmul %30, %31, %cst_15 {dimension_numbers = #tpu.dot_dimension_numbers<[1], [0], [0], [1], [0, 0, 1, 1], [], []>} : vector<8x4096xbf16>, vector<4096x256xbf16>, vector<8x256xf32> -> vector<8x256xf32>
    %c0_16 = arith.constant 0 : index
    %c0_17 = arith.constant 0 : index
    %33 = vector.load %arg5[%c0_16, %c0_17] : memref<8x256xf32, #tpu.memory_space<vmem>>, vector<8x256xf32>
    tpu.vector_store %arg5[%c0_16, %c0_17], %32 {strides = array<i32>} : memref<8x256xf32, #tpu.memory_space<vmem>>, vector<8x256xf32>,
    return
  }
}

</mosaic_0001>

<bundles_post_ra>
// kernel: tpu_custom_call.1
= control target key start
LH: loop header
LB: loop body
LE: loop exit
PB: predicated region body
PF: predicated region fallthrough
CT: control target
= control target key end

     0   :  { %10 = vsyncpa [#allocation3], 0  ;;  %s8354_s0 = inlined_call_operand.hbm [shape: f32[8,32], index: 0, kind: input, shape index: {}]   ;;  %s8355_s1 = inlined_call_operand.hbm [shape: bf16[32,4096], index: 1, kind: input, shape index: {}]   ;;  %s8356_s2 = inlined_call_operand.hbm [shape: f32[1,4096], index: 2, kind: input, shape index: {}]   ;;  %s8357_s3 = inlined_call_operand.hbm [shape: f32[1,4096], index: 3, kind: input, shape index: {}]   ;;  %s8358_s4 = inlined_call_operand.hbm [shape: bf16[4096,256], index: 4, kind: input, shape index: {}]   ;;  %s8359_s5 = inlined_call_operand.hbm [shape: f32[8,256], index: 5, kind: output, shape index: {}]  }
   0x1   :  { %11 = vsyncpa [#allocation6], 0 }
   0x2   :  { %12 = vsyncpa [#allocation9], 0 }
   0x3   :  { %13 = vsyncpa [#allocation4], 0  ;;  %s7587_s18 = smov [#allocation5]   ;;  %s7447_s22 = scalar_lea.hbm %s8355_s1, 8192 }
   0x4   :  { %s29_s19 = sshll.u32 %s7587_s18, 4  ;;  %p7448_p0 = scmp.ne.s32.totalorder %s8355_s1, %s7447_s22  ;;  %s30_s19 = int_to_ptr.vmem [resolvable:$true] %s29_s19 }
   0x5   :  { %p7451_p1 = scmp.lt.u32.totalorder %s7447_s22, %s8355_s1 }
   0x7   :  { %p7453_p2 = pnand %p7451_p1, %p7448_p0 }
   0x9   :  { %7456 = shalt.err (!%p7453_p2)
}
   0xa   :  { %s7457_s27 = scalar_lea.vmem %s30_s19, 8192  ;;  %p7462_p4 = scmp.lt.s32.totalorder %s30_s19, %s30_s19 }
   0xb   :  { %p7458_p3 = scmp.ne.s32.totalorder %s30_s19, %s7457_s27  ;;  %p7463_p5 = scmp.lt.s32.totalorder %s7457_s27, %s7457_s27 }
   0xd   :  { %p7464_p6 = por %p7463_p5, %p7462_p4 }
   0xf   :  { %p7465_p7 = pnand %p7464_p6, %p7458_p3 }
  0x11   :  { %7468 = shalt.err (!%p7465_p7)
}
  0x12   :  { %s7588_s28 = smov 2048   ;;  %s7589_s29 = smov 128  }
  0x13   :  { %35 = dma.hbm_to_vmem [thread:$0]  %s8355_s1, 8192, %s30_s19, [#allocation6], %s7588_s28, %s7588_s28, %s7589_s29  }
  0x14   :  { %s7590_s7 = smov [#allocation8]   ;;  %s7591_s9 = smov [#allocation2]  }
  0x15   :  { %s52_s8 = sshll.u32 %s7590_s7, 4  ;;  %s20_s10 = sshll.u32 %s7591_s9, 4  ;;  %s53_s8 = int_to_ptr.vmem [resolvable:$true] %s52_s8  ;;  %s21_s10 = int_to_ptr.vmem [resolvable:$true] %s20_s10 }
  0x16   :  { %s7469_s13 = scalar_lea.hbm %s8357_s3, 512 }
  0x17   :  { %p7470_p8 = scmp.ne.s32.totalorder %s8357_s3, %s7469_s13  ;;  %p7473_p9 = scmp.lt.u32.totalorder %s7469_s13, %s8357_s3 }
  0x19   :  { %p7475_p10 = pnand %p7473_p9, %p7470_p8 }
  0x1b   :  { %7478 = shalt.err (!%p7475_p10)
}
  0x1c   :  { %s7479_s1 = scalar_lea.vmem %s53_s8, 512  ;;  %p7484_p12 = scmp.lt.s32.totalorder %s53_s8, %s53_s8 }
  0x1d   :  { %p7480_p11 = scmp.ne.s32.totalorder %s53_s8, %s7479_s1  ;;  %p7485_p13 = scmp.lt.s32.totalorder %s7479_s1, %s7479_s1 }
  0x1f   :  { %p7486_p0 = por %p7485_p13, %p7484_p12 }
  0x21   :  { %p7487_p1 = pnand %p7486_p0, %p7480_p11 }
  0x23   :  { %7490 = shalt.err (!%p7487_p1)
}
  0x24   :  { %55 = dma.hbm_to_vmem [thread:$0]  %s8357_s3, 512, %s53_s8, [#allocation9]  }
  0x25   :  { %s7491_s22 = scalar_lea.hbm %s8354_s0, 128 }
  0x26   :  { %p7492_p2 = scmp.ne.s32.totalorder %s8354_s0, %s7491_s22  ;;  %p7495_p3 = scmp.lt.u32.totalorder %s7491_s22, %s8354_s0 }
  0x28   :  { %p7497_p4 = pnand %p7495_p3, %p7492_p2 }
  0x2a   :  { %7500 = shalt.err (!%p7497_p4)
}
  0x2b   :  { %s7501_s27 = scalar_lea.vmem %s21_s10, 128  ;;  %p7506_p6 = scmp.lt.s32.totalorder %s21_s10, %s21_s10 }
  0x2c   :  { %p7502_p5 = scmp.ne.s32.totalorder %s21_s10, %s7501_s27  ;;  %p7507_p7 = scmp.lt.s32.totalorder %s7501_s27, %s7501_s27 }
  0x2e   :  { %p7508_p8 = por %p7507_p7, %p7506_p6 }
  0x30   :  { %p7509_p9 = pnand %p7508_p8, %p7502_p5 }
  0x32   :  { %7512 = shalt.err (!%p7509_p9)
}
  0x33   :  { %23 = dma.hbm_to_vmem [thread:$0]  %s8354_s0, 128, %s21_s10, [#allocation3]  }
  0x34   :  { %s7592_s30 = smov [#allocation7]   ;;  %s7593_s7 = smov [#allocation10]  }
  0x35   :  { %s42_s6 = sshll.u32 %s7592_s30, 4  ;;  %s61_s8 = sshll.u32 %s7593_s7, 4  ;;  %s43_s6 = int_to_ptr.vmem [resolvable:$true] %s42_s6  ;;  %s62_s8 = int_to_ptr.vmem [resolvable:$true] %s61_s8 }
  0x36   :  { %s7513_s12 = scalar_lea.hbm %s8356_s2, 512 }
  0x37   :  { %p7514_p10 = scmp.ne.s32.totalorder %s8356_s2, %s7513_s12  ;;  %p7517_p11 = scmp.lt.u32.totalorder %s7513_s12, %s8356_s2 }
  0x39   :  { %p7519_p12 = pnand %p7517_p11, %p7514_p10 }
  0x3b   :  { %7522 = shalt.err (!%p7519_p12)
}
  0x3c   :  { %s7523_s0 = scalar_lea.vmem %s43_s6, 512  ;;  %p7528_p0 = scmp.lt.s32.totalorder %s43_s6, %s43_s6 }
  0x3d   :  { %p7524_p13 = scmp.ne.s32.totalorder %s43_s6, %s7523_s0  ;;  %p7529_p1 = scmp.lt.s32.totalorder %s7523_s0, %s7523_s0 }
  0x3f   :  { %p7530_p2 = por %p7529_p1, %p7528_p0 }
  0x41   :  { %p7531_p3 = pnand %p7530_p2, %p7524_p13 }
  0x43   :  { %7534 = shalt.err (!%p7531_p3)
}
  0x44   :  { %45 = dma.hbm_to_vmem [thread:$0]  %s8356_s2, 512, %s43_s6, [#allocation6]  }
  0x45   :  { %s7535_s19 = scalar_lea.hbm %s8358_s4, 65536 }
  0x46   :  { %p7536_p4 = scmp.ne.s32.totalorder %s8358_s4, %s7535_s19  ;;  %p7539_p5 = scmp.lt.u32.totalorder %s7535_s19, %s8358_s4 }
  0x48   :  { %p7541_p6 = pnand %p7539_p5, %p7536_p4 }
  0x4a   :  { %7544 = shalt.err (!%p7541_p6)
}
  0x4b   :  { %s7545_s24 = scalar_lea.vmem %s62_s8, 65536  ;;  %p7550_p8 = scmp.lt.s32.totalorder %s62_s8, %s62_s8 }
  0x4c   :  { %p7546_p7 = scmp.ne.s32.totalorder %s62_s8, %s7545_s24  ;;  %p7551_p9 = scmp.lt.s32.totalorder %s7545_s24, %s7545_s24 }
  0x4e   :  { %p7552_p10 = por %p7551_p9, %p7550_p8 }
  0x50   :  { %p7553_p11 = pnand %p7552_p10, %p7546_p7 }
  0x52   :  { %7556 = shalt.err (!%p7553_p11)
}
  0x53   :  { %s7594_s2 = smov 8  }
  0x54   :  { %67 = dma.hbm_to_vmem [thread:$0]  %s8358_s4, 65536, %s62_s8, [#allocation9], %s7589_s29, %s7589_s29, %s7594_s2  }
  0x55   :  { %7579 = dma.done.wait [#allocation3], 128  }
  0x56   :  { %7580 = vsyncadd [#allocation3], 4294967168 }
  0x57   :  { %7581 = dma.done.wait [#allocation6], 8704  }
  0x58   :  { %7582 = vsyncadd [#allocation6], 4294958592 }
  0x59   :  { %7583 = dma.done.wait [#allocation9], 66048  }
  0x5a   :  { %7584 = vsyncadd [#allocation9], 4294901248  ;;  %v7595_v0 = vmov 0   ;;  %v86_v1 = vld [vmem:[#allocation5] sm:$0xff]  ;;  %v88_v8 = vld [vmem:[#allocation5 + $0x10] sm:$0xff]  ;;  %vm470_vm0 = vcmask 261120  }
  0x5b   :  { %506 = vmatprep.mubr.bf16.mxu0 %v7595_v0  ;;  %547 = vmatprep.mubr.bf16.mxu1 %v7595_v0  ;;  %v102_v2 = vld [vmem:[#allocation5 + $0x80] sm:$0xff]  ;;  %v104_v9 = vld [vmem:[#allocation5 + $0x90] sm:$0xff]  ;;  %v84_v11 = vld [vmem:[#allocation2] sm:$0xff]  ;;  %s7596_s4 = smov [#allocation11]  }
  0x5c   :  { %v118_v3 = vld [vmem:[#allocation5 + $0x100] sm:$0xff]  ;;  %v5951_v4 = vcombine.high %v86_v1, %v102_v2  ;;  %v5950_v5 = vcombine.low %v86_v1, %v102_v2  ;;  %v87_v12 = vld [vmem:[#allocation5 + $0x8] sm:$0xff]  ;;  %v5955_v14 = vcombine.high %v88_v8, %v104_v9  ;;  %v120_v18 = vld [vmem:[#allocation5 + $0x110] sm:$0xff]  ;;  %v7692_v21 = vpack.c.bf16 %v84_v11, %v84_v11  ;;  %s5939_s29 = sshll.u32 %s7596_s4, 4  ;;  %s5940_s29 = int_to_ptr.vmem [resolvable:$true] %s5939_s29 }
  0x5d   :  { %v134_v6 = vld [vmem:[#allocation5 + $0x180] sm:$0xff]  ;;  %v103_v13 = vld [vmem:[#allocation5 + $0x88] sm:$0xff]  ;;  %v136_v19 = vld [vmem:[#allocation5 + $0x190] sm:$0xff]  ;;  %v5954_v25 = vcombine.low %v88_v8, %v104_v9  ;;  %s7557_s27 = scalar_lea.vmem %s5940_s29, 256  ;;  %p7562_p13 = scmp.lt.s32.totalorder %s5940_s29, %s5940_s29 }
  0x5e   :  { %v5983_v7 = vcombine.high %v118_v3, %v134_v6  ;;  %474 = vmatprep.subr.bf16.mxu0 %v5951_v4  ;;  %v5982_v10 = vcombine.low %v118_v3, %v134_v6  ;;  %v5953_v15 = vcombine.high %v87_v12, %v103_v13  ;;  %v5952_v16 = vcombine.low %v87_v12, %v103_v13  ;;  %v119_v17 = vld [vmem:[#allocation5 + $0x108] sm:$0xff]  ;;  %v89_v23 = vld [vmem:[#allocation5 + $0x18] sm:$0xff]  ;;  %v90_v28 = vld [vmem:[#allocation5 + $0x20] sm:$0xff]  ;;  %p7558_p12 = scmp.ne.s32.totalorder %s5940_s29, %s7557_s27  ;;  %p7563_p0 = scmp.lt.s32.totalorder %s7557_s27, %s7557_s27 }
  0x5f   :  { %475 = vmatpush1.bf16.msra.mxu0 %v5950_v5  ;;  %v135_v20 = vld [vmem:[#allocation5 + $0x188] sm:$0xff]  ;;  %v105_v24 = vld [vmem:[#allocation5 + $0x98] sm:$0xff]  ;;  %v5987_v26 = vcombine.high %v120_v18, %v136_v19  ;;  %v106_v29 = vld [vmem:[#allocation5 + $0xa0] sm:$0xff]  ;;  %v5986_v33 = vcombine.low %v120_v18, %v136_v19 }
  0x60   :  { %476 = vmatprep.subr.bf16.mxu0 %v5983_v7  ;;  %515 = vmatprep.subr.bf16.mxu1 %v5953_v15  ;;  %v5985_v22 = vcombine.high %v119_v17, %v135_v20  ;;  %v5984_v27 = vcombine.low %v119_v17, %v135_v20  ;;  %v5957_v30 = vcombine.high %v89_v23, %v105_v24  ;;  %v121_v31 = vld [vmem:[#allocation5 + $0x118] sm:$0xff]  ;;  %v122_v36 = vld [vmem:[#allocation5 + $0x120] sm:$0xff]  ;;  %v91_v39 = vld [vmem:[#allocation5 + $0x28] sm:$0xff]  ;;  %p7564_p1 = por %p7563_p0, %p7562_p13 }
  0x61   :  { %516 = vmatpush1.bf16.msra.mxu1 %v5952_v16  ;;  %v137_v32 = vld [vmem:[#allocation5 + $0x198] sm:$0xff]  ;;  %v5959_v34 = vcombine.high %v90_v28, %v106_v29  ;;  %v5956_v35 = vcombine.low %v89_v23, %v105_v24  ;;  %v138_v37 = vld [vmem:[#allocation5 + $0x1a0] sm:$0xff]  ;;  %v107_v40 = vld [vmem:[#allocation5 + $0xa8] sm:$0xff]  ;;  %v5958_v41 = vcombine.low %v90_v28, %v106_v29 }
  0x62   :  { %517 = vmatprep.subr.bf16.mxu1 %v5985_v22  ;;  %v5989_v38 = vcombine.high %v121_v31, %v137_v32  ;;  %v5991_v42 = vcombine.high %v122_v36, %v138_v37  ;;  %v5988_v43 = vcombine.low %v121_v31, %v137_v32  ;;  %v92_v44 = vld [vmem:[#allocation5 + $0x30] sm:$0xff]  ;;  %v5961_v46 = vcombine.high %v91_v39, %v107_v40  ;;  %v123_v47 = vld [vmem:[#allocation5 + $0x128] sm:$0xff]  ;;  %v93_v55 = vld [vmem:[#allocation5 + $0x38] sm:$0xff]  ;;  %p7565_p2 = pnand %p7564_p1, %p7558_p12 }
  0x63   :  { %477 = vmatpush1.bf16.msra.mxu0 %v5982_v10  ;;  %v108_v45 = vld [vmem:[#allocation5 + $0xb0] sm:$0xff]  ;;  %v139_v48 = vld [vmem:[#allocation5 + $0x1a8] sm:$0xff]  ;;  %v5990_v49 = vcombine.low %v122_v36, %v138_v37  ;;  %v5960_v52 = vcombine.low %v91_v39, %v107_v40  ;;  %v109_v56 = vld [vmem:[#allocation5 + $0xb8] sm:$0xff] }
  0x64   :  { %556 = vmatprep.subr.bf16.mxu0 %v5955_v14  ;;  %v5963_v50 = vcombine.high %v92_v44, %v108_v45  ;;  %v124_v51 = vld [vmem:[#allocation5 + $0x130] sm:$0xff]  ;;  %v5993_v54 = vcombine.high %v123_v47, %v139_v48  ;;  %v5962_v57 = vcombine.low %v92_v44, %v108_v45  ;;  %v94_v58 = vld [vmem:[#allocation5 + $0x40] sm:$0xff]  ;;  %v5992_v61 = vcombine.low %v123_v47, %v139_v48  ;;  %v125_v62 = vld [vmem:[#allocation5 + $0x138] sm:$0xff] }
  0x65   :  { %518 = vmatpush1.bf16.msra.mxu1 %v5984_v27  ;;  %v140_v53 = vld [vmem:[#allocation5 + $0x1b0] sm:$0xff]  ;;  %v110_v59 = vld [vmem:[#allocation5 + $0xc0] sm:$0xff]  ;;  %v141_v63 = vld [vmem:[#allocation5 + $0x1b8] sm:$0xff]  ;;  %v5965_v1 = vcombine.high %v93_v55, %v109_v56  ;;  %v5964_v6 = vcombine.low %v93_v55, %v109_v56 }
  0x66   :  { %6014 = vmatmul.mubr.msk.bf16.vlgmr.msra.gmra.mrb[0].mxu0 %vm470_vm0, %v7692_v21  ;;  %597 = vmatprep.subr.bf16.mxu1 %v5957_v30  ;;  %v5995_v60 = vcombine.high %v124_v51, %v140_v53  ;;  %v5994_v2 = vcombine.low %v124_v51, %v140_v53  ;;  %v126_v3 = vld [vmem:[#allocation5 + $0x140] sm:$0xff]  ;;  %v5967_v5 = vcombine.high %v94_v58, %v110_v59  ;;  %v95_v7 = vld [vmem:[#allocation5 + $0x48] sm:$0xff]  ;;  %v96_v15 = vld [vmem:[#allocation5 + $0x50] sm:$0xff] }
  0x67   :  { %557 = vmatpush1.bf16.msra.mxu0 %v5954_v25  ;;  %588 = vmatprep.mubr.bf16.mxu0 %v7595_v0  ;;  %v142_v4 = vld [vmem:[#allocation5 + $0x1c0] sm:$0xff]  ;;  %v111_v8 = vld [vmem:[#allocation5 + $0xc8] sm:$0xff]  ;;  %v5997_v9 = vcombine.high %v125_v62, %v141_v63  ;;  %v5966_v10 = vcombine.low %v94_v58, %v110_v59  ;;  %v5996_v12 = vcombine.low %v125_v62, %v141_v63  ;;  %v112_v16 = vld [vmem:[#allocation5 + $0xd0] sm:$0xff] }
  0x68   :  { %558 = vmatprep.subr.bf16.mxu0 %v5987_v26  ;;  %6015 = vmatmul.mubr.msk.bf16.vlgmr.msra.gmra.mrb[0].mxu1 %vm470_vm0, %v7692_v21  ;;  %v5999_v11 = vcombine.high %v126_v3, %v142_v4  ;;  %v127_v13 = vld [vmem:[#allocation5 + $0x148] sm:$0xff]  ;;  %v5969_v17 = vcombine.high %v95_v7, %v111_v8  ;;  %v5998_v18 = vcombine.low %v126_v3, %v142_v4  ;;  %v128_v19 = vld [vmem:[#allocation5 + $0x150] sm:$0xff]  ;;  %v97_v23 = vld [vmem:[#allocation5 + $0x58] sm:$0xff] }
  0x69   :  { %598 = vmatpush1.bf16.msra.mxu1 %v5956_v35  ;;  %629 = vmatprep.mubr.bf16.mxu1 %v7595_v0  ;;  %v143_v14 = vld [vmem:[#allocation5 + $0x1c8] sm:$0xff]  ;;  %v144_v20 = vld [vmem:[#allocation5 + $0x1d0] sm:$0xff]  ;;  %v5968_v22 = vcombine.low %v95_v7, %v111_v8  ;;  %v113_v24 = vld [vmem:[#allocation5 + $0xd8] sm:$0xff]  ;;  %v5971_v26 = vcombine.high %v96_v15, %v112_v16  ;;  %v5970_v27 = vcombine.low %v96_v15, %v112_v16 }
  0x6a   :  { %599 = vmatprep.subr.bf16.mxu1 %v5989_v38  ;;  %v6001_v25 = vcombine.high %v127_v13, %v143_v14  ;;  %v6000_v28 = vcombine.low %v127_v13, %v143_v14  ;;  %v6003_v29 = vcombine.high %v128_v19, %v144_v20  ;;  %v129_v30 = vld [vmem:[#allocation5 + $0x158] sm:$0xff]  ;;  %v98_v32 = vld [vmem:[#allocation5 + $0x60] sm:$0xff]  ;;  %v6002_v35 = vcombine.low %v128_v19, %v144_v20  ;;  %v99_v39 = vld [vmem:[#allocation5 + $0x68] sm:$0xff] }
  0x6b   :  { %559 = vmatpush1.bf16.msra.mxu0 %v5986_v33  ;;  %v145_v31 = vld [vmem:[#allocation5 + $0x1d8] sm:$0xff]  ;;  %v114_v33 = vld [vmem:[#allocation5 + $0xe0] sm:$0xff]  ;;  %v5972_v38 = vcombine.low %v97_v23, %v113_v24  ;;  %v115_v40 = vld [vmem:[#allocation5 + $0xe8] sm:$0xff] }
  0x6c   :  { %638 = vmatprep.subr.bf16.mxu0 %v5959_v34  ;;  %v5973_v34 = vcombine.high %v97_v23, %v113_v24  ;;  %v130_v36 = vld [vmem:[#allocation5 + $0x160] sm:$0xff]  ;;  %v6004_v44 = vcombine.low %v129_v30, %v145_v31  ;;  %v147_v47 = vld [vmem:[#allocation5 + $0x1e8] sm:$0xff]  ;;  %v100_v48 = vld [vmem:[#allocation5 + $0x70] sm:$0xff] }
  0x6d   :  { %600 = vmatpush1.bf16.msra.mxu1 %v5988_v43  ;;  %v146_v37 = vld [vmem:[#allocation5 + $0x1e0] sm:$0xff]  ;;  %v5974_v43 = vcombine.low %v98_v32, %v114_v33  ;;  %v148_v53 = vld [vmem:[#allocation5 + $0x1f0] sm:$0xff]  ;;  %v101_v55 = vld [vmem:[#allocation5 + $0x78] sm:$0xff] }
  0x6e   :  { %6016 = vmatmul.mubr.msk.bf16.vlgmr.msra.gmra.mrb[4].mxu0 %vm470_vm0, %v7692_v21  ;;  %679 = vmatprep.subr.bf16.mxu1 %v5961_v46  ;;  %v6007_v45 = vcombine.high %v130_v36, %v146_v37  ;;  %v131_v46 = vld [vmem:[#allocation5 + $0x168] sm:$0xff]  ;;  %v6006_v51 = vcombine.low %v130_v36, %v146_v37  ;;  %v117_v56 = vld [vmem:[#allocation5 + $0xf8] sm:$0xff] }
  0x6f   :  { %639 = vmatpush1.bf16.msra.mxu0 %v5958_v41  ;;  %670 = vmatprep.mubr.bf16.mxu0 %v7595_v0  ;;  %v6005_v41 = vcombine.high %v129_v30, %v145_v31  ;;  %v133_v62 = vld [vmem:[#allocation5 + $0x178] sm:$0xff]  ;;  %v5980_v3 = vcombine.low %v101_v55, %v117_v56  ;;  %v6610_v7 = vld [vmem:[#allocation10] ss:$8 sps:$4 sm:$0xff]   ;;  %v6624_v13 = vld [vmem:[#allocation10 + $0x44] ss:$8 sps:$4 sm:$0xff]  }
  0x70   :  { %640 = vmatprep.subr.bf16.mxu0 %v5991_v42  ;;  %6017 = vmatmul.mubr.msk.bf16.vlgmr.msra.gmra.mrb[4].mxu1 %vm470_vm0, %v7692_v21  ;;  %v5975_v42 = vcombine.high %v98_v32, %v114_v33  ;;  %v149_v63 = vld [vmem:[#allocation5 + $0x1f8] sm:$0xff]  ;;  %v6622_v14 = vld [vmem:[#allocation10 + $0x40] ss:$8 sps:$4 sm:$0xff]   ;;  %v6636_v20 = vld [vmem:[#allocation10 + $0x84] ss:$8 sps:$4 sm:$0xff]  }
  0x71   :  { %680 = vmatpush1.bf16.msra.mxu1 %v5960_v52  ;;  %711 = vmatprep.mubr.bf16.mxu1 %v7595_v0  ;;  %v132_v52 = vld [vmem:[#allocation5 + $0x170] sm:$0xff]  ;;  %v6013_v4 = vcombine.high %v133_v62, %v149_v63  ;;  %v6634_v23 = vld [vmem:[#allocation10 + $0x80] ss:$8 sps:$4 sm:$0xff]   ;;  %v6651_v30 = vld [vmem:[#allocation10 + $0x824] ss:$8 sps:$4 sm:$0xff]  }
  0x72   :  { %681 = vmatprep.subr.bf16.mxu1 %v5993_v54  ;;  %v5976_v54 = vcombine.low %v99_v39, %v115_v40  ;;  %v6615_v8 = vld [vmem:[#allocation10 + $0x14] ss:$8 sps:$4 sm:$0xff]   ;;  %v6625_v16 = vld [vmem:[#allocation10 + $0x50] ss:$8 sps:$4 sm:$0xff]   ;;  %v6637_v24 = vld [vmem:[#allocation10 + $0x800] ss:$8 sps:$4 sm:$0xff]  }
  0x73   :  { %641 = vmatpush1.bf16.msra.mxu0 %v5990_v49  ;;  %v116_v49 = vld [vmem:[#allocation5 + $0xf0] sm:$0xff]  ;;  %v6646_v31 = vld [vmem:[#allocation10 + $0xa0] ss:$8 sps:$4 sm:$0xff]   ;;  %v6660_v37 = vld [vmem:[#allocation10 + $0xc4] ss:$8 sps:$4 sm:$0xff]  }
  0x74   :  { %720 = vmatprep.subr.bf16.mxu0 %v5963_v50  ;;  %v5977_v50 = vcombine.high %v99_v39, %v115_v40  ;;  %v5979_v58 = vcombine.high %v100_v48, %v116_v49  ;;  %v5978_v59 = vcombine.low %v100_v48, %v116_v49  ;;  %v6627_v15 = vld [vmem:[#allocation10 + $0x54] ss:$8 sps:$4 sm:$0xff]   ;;  %v6631_v19 = vld [vmem:[#allocation10 + $0x70] ss:$8 sps:$4 sm:$0xff]   ;;  %v6649_v32 = vld [vmem:[#allocation10 + $0x820] ss:$8 sps:$4 sm:$0xff]  }
  0x75   :  { %682 = vmatpush1.bf16.msra.mxu1 %v5992_v61  ;;  %v6011_v61 = vcombine.high %v132_v52, %v148_v53  ;;  %v6654_v33 = vld [vmem:[#allocation10 + $0xb4] ss:$8 sps:$4 sm:$0xff]   ;;  %v6655_v36 = vld [vmem:[#allocation10 + $0x830] ss:$8 sps:$4 sm:$0xff]   ;;  %v6658_v39 = vld [vmem:[#allocation10 + $0xc0] ss:$8 sps:$4 sm:$0xff]  }
  0x76   :  { %6018 = vmatmul.mubr.msk.bf16.vlgmr.msra.gmra.mrb[8].mxu0 %vm470_vm0, %v7692_v21  ;;  %761 = vmatprep.subr.bf16.mxu1 %v5965_v1  ;;  %v5981_v1 = vcombine.high %v101_v55, %v117_v56  ;;  %v6661_v40 = vld [vmem:[#allocation10 + $0x840] ss:$8 sps:$4 sm:$0xff]   ;;  %v6678_v49 = vld [vmem:[#allocation10 + $0xf4] ss:$8 sps:$4 sm:$0xff]  }
  0x77   :  { %721 = vmatpush1.bf16.msra.mxu0 %v5962_v57  ;;  %752 = vmatprep.mubr.bf16.mxu0 %v7595_v0  ;;  %v6009_v57 = vcombine.high %v131_v46, %v147_v47  ;;  %v6673_v48 = vld [vmem:[#allocation10 + $0x860] ss:$8 sps:$4 sm:$0xff]   ;;  %v6693_v56 = vld [vmem:[#allocation10 + $0x894] ss:$8 sps:$4 sm:$0xff]  }
  0x78   :  { %722 = vmatprep.subr.bf16.mxu0 %v5995_v60  ;;  %6019 = vmatmul.mubr.msk.bf16.vlgmr.msra.gmra.mrb[8].mxu1 %vm470_vm0, %v7692_v21  ;;  %v6008_v60 = vcombine.low %v131_v46, %v147_v47  ;;  %v6675_v46 = vld [vmem:[#allocation10 + $0x864] ss:$8 sps:$4 sm:$0xff]   ;;  %v6670_v47 = vld [vmem:[#allocation10 + $0xe0] ss:$8 sps:$4 sm:$0xff]  }
  0x79   :  { %762 = vmatpush1.bf16.msra.mxu1 %v5964_v6  ;;  %793 = vmatprep.mubr.bf16.mxu1 %v7595_v0  ;;  %v6012_v6 = vcombine.low %v133_v62, %v149_v63  ;;  %v6685_v55 = vld [vmem:[#allocation10 + $0x880] ss:$8 sps:$4 sm:$0xff]   ;;  %v6711_v62 = vld [vmem:[#allocation10 + $0x8c4] ss:$8 sps:$4 sm:$0xff]  }
  0x7a   :  { %763 = vmatprep.subr.bf16.mxu1 %v5997_v9  ;;  %v6613_v9 = vld [vmem:[#allocation10 + $0x10] ss:$8 sps:$4 sm:$0xff]   ;;  %v6709_v63 = vld [vmem:[#allocation10 + $0x8c0] ss:$8 sps:$4 sm:$0xff]  }
  0x7b   :  { %723 = vmatpush1.bf16.msra.mxu0 %v5994_v2  ;;  %v6010_v2 = vcombine.low %v132_v52, %v148_v53  ;;  %v6679_v52 = vld [vmem:[#allocation10 + $0x870] ss:$8 sps:$4 sm:$0xff]   ;;  %v6684_v53 = vld [vmem:[#allocation10 + $0x104] ss:$8 sps:$4 sm:$0xff]  }
  0x7c   :  { %802 = vmatprep.subr.bf16.mxu0 %v5967_v5  ;;  %v6612_v5 = vld [vmem:[#allocation10 + $0x4] ss:$8 sps:$4 sm:$0xff]  }
  0x7d   :  { %764 = vmatpush1.bf16.msra.mxu1 %v5996_v12  ;;  %v6619_v12 = vld [vmem:[#allocation10 + $0x30] ss:$8 sps:$4 sm:$0xff]  }
  0x7e   :  { %6020 = vmatmul.mubr.msk.bf16.vlgmr.msra.gmra.mrb[12].mxu0 %vm470_vm0, %v7692_v21  ;;  %843 = vmatprep.subr.bf16.mxu1 %v5969_v17  ;;  %v6628_v17 = vld [vmem:[#allocation10 + $0x60] ss:$8 sps:$4 sm:$0xff]  }
  0x7f   :  { %803 = vmatpush1.bf16.msra.mxu0 %v5966_v10  ;;  %834 = vmatprep.mubr.bf16.mxu0 %v7595_v0  ;;  %v6618_v10 = vld [vmem:[#allocation10 + $0x24] ss:$8 sps:$4 sm:$0xff]  }
  0x80   :  { %804 = vmatprep.subr.bf16.mxu0 %v5999_v11  ;;  %6021 = vmatmul.mubr.msk.bf16.vlgmr.msra.gmra.mrb[12].mxu1 %vm470_vm0, %v7692_v21  ;;  %v6616_v11 = vld [vmem:[#allocation10 + $0x20] ss:$8 sps:$4 sm:$0xff]  }
  0x81   :  { %844 = vmatpush1.bf16.msra.mxu1 %v5968_v22  ;;  %875 = vmatprep.mubr.bf16.mxu1 %v7595_v0  ;;  %v6639_v22 = vld [vmem:[#allocation10 + $0x804] ss:$8 sps:$4 sm:$0xff]  }
  0x82   :  { %845 = vmatprep.subr.bf16.mxu1 %v6001_v25  ;;  %v6642_v25 = vld [vmem:[#allocation10 + $0x94] ss:$8 sps:$4 sm:$0xff]  }
  0x83   :  { %805 = vmatpush1.bf16.msra.mxu0 %v5998_v18  ;;  %v6633_v18 = vld [vmem:[#allocation10 + $0x74] ss:$8 sps:$4 sm:$0xff]  }
  0x84   :  { %884 = vmatprep.subr.bf16.mxu0 %v5971_v26  ;;  %v6645_v26 = vld [vmem:[#allocation10 + $0x814] ss:$8 sps:$4 sm:$0xff]  }
  0x85   :  { %846 = vmatpush1.bf16.msra.mxu1 %v6000_v28  ;;  %v6643_v28 = vld [vmem:[#allocation10 + $0x810] ss:$8 sps:$4 sm:$0xff]  }
  0x86   :  { %6022 = vmatmul.mubr.msk.bf16.vlgmr.msra.gmra.mrb[16].mxu0 %vm470_vm0, %v7692_v21  ;;  %925 = vmatprep.subr.bf16.mxu1 %v5973_v34  ;;  %v6657_v34 = vld [vmem:[#allocation10 + $0x834] ss:$8 sps:$4 sm:$0xff]  }
  0x87   :  { %885 = vmatpush1.bf16.msra.mxu0 %v5970_v27  ;;  %916 = vmatprep.mubr.bf16.mxu0 %v7595_v0  ;;  %v6640_v27 = vld [vmem:[#allocation10 + $0x90] ss:$8 sps:$4 sm:$0xff]  }
  0x88   :  { %886 = vmatprep.subr.bf16.mxu0 %v6003_v29  ;;  %6023 = vmatmul.mubr.msk.bf16.vlgmr.msra.gmra.mrb[16].mxu1 %vm470_vm0, %v7692_v21  ;;  %v6648_v29 = vld [vmem:[#allocation10 + $0xa4] ss:$8 sps:$4 sm:$0xff]  }
  0x89   :  { %926 = vmatpush1.bf16.msra.mxu1 %v5972_v38  ;;  %957 = vmatprep.mubr.bf16.mxu1 %v7595_v0  ;;  %v6663_v38 = vld [vmem:[#allocation10 + $0x844] ss:$8 sps:$4 sm:$0xff]  }
  0x8a   :  { %927 = vmatprep.subr.bf16.mxu1 %v6005_v41  ;;  %v6666_v41 = vld [vmem:[#allocation10 + $0xd4] ss:$8 sps:$4 sm:$0xff]  }
  0x8b   :  { %887 = vmatpush1.bf16.msra.mxu0 %v6002_v35  ;;  %v6652_v35 = vld [vmem:[#allocation10 + $0xb0] ss:$8 sps:$4 sm:$0xff]  }
  0x8c   :  { %966 = vmatprep.subr.bf16.mxu0 %v5975_v42  ;;  %v6669_v42 = vld [vmem:[#allocation10 + $0x854] ss:$8 sps:$4 sm:$0xff]  }
  0x8d   :  { %928 = vmatpush1.bf16.msra.mxu1 %v6004_v44  ;;  %v6667_v44 = vld [vmem:[#allocation10 + $0x850] ss:$8 sps:$4 sm:$0xff]  }
  0x8e   :  { %6024 = vmatmul.mubr.msk.bf16.vlgmr.msra.gmra.mrb[20].mxu0 %vm470_vm0, %v7692_v21  ;;  %1007 = vmatprep.subr.bf16.mxu1 %v5977_v50  ;;  %v6681_v50 = vld [vmem:[#allocation10 + $0x874] ss:$8 sps:$4 sm:$0xff]  }
  0x8f   :  { %967 = vmatpush1.bf16.msra.mxu0 %v5974_v43  ;;  %998 = vmatprep.mubr.bf16.mxu0 %v7595_v0  ;;  %v6664_v43 = vld [vmem:[#allocation10 + $0xd0] ss:$8 sps:$4 sm:$0xff]  }
  0x90   :  { %968 = vmatprep.subr.bf16.mxu0 %v6007_v45  ;;  %6025 = vmatmul.mubr.msk.bf16.vlgmr.msra.gmra.mrb[20].mxu1 %vm470_vm0, %v7692_v21  ;;  %v6672_v45 = vld [vmem:[#allocation10 + $0xe4] ss:$8 sps:$4 sm:$0xff]  }
  0x91   :  { %1008 = vmatpush1.bf16.msra.mxu1 %v5976_v54  ;;  %1039 = vmatprep.mubr.bf16.mxu1 %v7595_v0  ;;  %v6687_v54 = vld [vmem:[#allocation10 + $0x884] ss:$8 sps:$4 sm:$0xff]  }
  0x92   :  { %1009 = vmatprep.subr.bf16.mxu1 %v6009_v57  ;;  %v6691_v57 = vld [vmem:[#allocation10 + $0x890] ss:$8 sps:$4 sm:$0xff]  }
  0x93   :  { %969 = vmatpush1.bf16.msra.mxu0 %v6006_v51  ;;  %v6676_v51 = vld [vmem:[#allocation10 + $0xf0] ss:$8 sps:$4 sm:$0xff]  }
  0x94   :  { %1048 = vmatprep.subr.bf16.mxu0 %v5979_v58  ;;  %v6699_v58 = vld [vmem:[#allocation10 + $0x8a4] ss:$8 sps:$4 sm:$0xff]  }
  0x95   :  { %1010 = vmatpush1.bf16.msra.mxu1 %v6008_v60  ;;  %v6705_v60 = vld [vmem:[#allocation10 + $0x8b4] ss:$8 sps:$4 sm:$0xff]  }
  0x96   :  { %6026 = vmatmul.mubr.msk.bf16.vlgmr.msra.gmra.mrb[24].mxu0 %vm470_vm0, %v7692_v21  ;;  %1089 = vmatprep.subr.bf16.mxu1 %v5981_v1  ;;  %v6717_v1 = vld [vmem:[#allocation10 + $0x8d4] ss:$8 sps:$4 sm:$0xff]  }
  0x97   :  { %1049 = vmatpush1.bf16.msra.mxu0 %v5978_v59  ;;  %1080 = vmatprep.mubr.bf16.mxu0 %v7595_v0  ;;  %v6697_v59 = vld [vmem:[#allocation10 + $0x8a0] ss:$8 sps:$4 sm:$0xff]  }
  0x98   :  { %1050 = vmatprep.subr.bf16.mxu0 %v6011_v61  ;;  %6027 = vmatmul.mubr.msk.bf16.vlgmr.msra.gmra.mrb[24].mxu1 %vm470_vm0, %v7692_v21  ;;  %v6703_v61 = vld [vmem:[#allocation10 + $0x8b0] ss:$8 sps:$4 sm:$0xff]  }
  0x99   :  { %1090 = vmatpush1.bf16.msra.mxu1 %v5980_v3  ;;  %1121 = vmatprep.mubr.bf16.mxu1 %v7595_v0  ;;  %v6621_v0 = vld [vmem:[#allocation10 + $0x34] ss:$8 sps:$4 sm:$0xff]   ;;  %v6723_v3 = vld [vmem:[#allocation10 + $0x8e4] ss:$8 sps:$4 sm:$0xff]  }
  0x9a   :  { %1091 = vmatprep.subr.bf16.mxu1 %v6013_v4  ;;  %v6721_v4 = vld [vmem:[#allocation10 + $0x8e0] ss:$8 sps:$4 sm:$0xff]  }
  0x9b   :  { %1051 = vmatpush1.bf16.msra.mxu0 %v6010_v2  ;;  %v6715_v2 = vld [vmem:[#allocation10 + $0x8d0] ss:$8 sps:$4 sm:$0xff]  }
  0x9c   :  { %5603 = vmatprep.subr.bf16.mxu0 %v6639_v22 }
  0x9d   :  { %1092 = vmatpush1.bf16.msra.mxu1 %v6012_v6  ;;  %v6727_v6 = vld [vmem:[#allocation10 + $0x8f0] ss:$8 sps:$4 sm:$0xff]  }
  0x9e   :  { %6028 = vmatmul.mubr.msk.bf16.vlgmr.msra.gmra.mrb[28].mxu0 %vm470_vm0, %v7692_v21  ;;  %5275 = vmatprep.subr.bf16.mxu1 %v6612_v5  ;;  %v6729_v5 = vld [vmem:[#allocation10 + $0x8f4] ss:$8 sps:$4 sm:$0xff]  }
  0x9f   :  { %5604 = vmatpush1.bf16.msra.mxu0 %v6637_v24 }
  0xa0   :  { %6029 = vmatmul.mubr.msk.bf16.vlgmr.msra.gmra.mrb[28].mxu1 %vm470_vm0, %v7692_v21  ;;  %v6630_v21 = vld [vmem:[#allocation10 + $0x64] ss:$8 sps:$4 sm:$0xff]   ;;  %5605 = vmatprep.subr.bf16.mxu0 %v6645_v26 }
  0xa1   :  { %5276 = vmatpush1.bf16.msra.mxu1 %v6610_v7 }
  0xa2   :  { %5277 = vmatprep.subr.bf16.mxu1 %v6615_v8  ;;  %v6735_v8 = vld [vmem:[#allocation10 + $0x904] ss:$8 sps:$4 sm:$0xff]  }
  0xa3   :  { %5606 = vmatpush1.bf16.msra.mxu0 %v6643_v28 }
  0xa4   :  { %5607 = vmatprep.subr.bf16.mxu0 %v6651_v30 }
  0xa5   :  { %5278 = vmatpush1.bf16.msra.mxu1 %v6613_v9 }
  0xa6   :  { %5279 = vmatprep.subr.bf16.mxu1 %v6618_v10 }
  0xa7   :  { %5608 = vmatpush1.bf16.msra.mxu0 %v6649_v32 }
  0xa8   :  { %5609 = vmatprep.subr.bf16.mxu0 %v6657_v34 }
  0xa9   :  { %5280 = vmatpush1.bf16.msra.mxu1 %v6616_v11 }
  0xaa   :  { %5281 = vmatprep.subr.bf16.mxu1 %v6621_v0 }
  0xab   :  { %5610 = vmatpush1.bf16.msra.mxu0 %v6655_v36 }
  0xac   :  { %5611 = vmatprep.subr.bf16.mxu0 %v6663_v38 }
  0xad   :  { %5282 = vmatpush1.bf16.msra.mxu1 %v6619_v12 }
  0xae   :  { %5283 = vmatprep.subr.bf16.mxu1 %v6624_v13 }
  0xaf   :  { %5612 = vmatpush1.bf16.msra.mxu0 %v6661_v40 }
  0xb0   :  { %5613 = vmatprep.subr.bf16.mxu0 %v6669_v42 }
  0xb1   :  { %5284 = vmatpush1.bf16.msra.mxu1 %v6622_v14 }
  0xb2   :  { %5285 = vmatprep.subr.bf16.mxu1 %v6627_v15 }
  0xb3   :  { %5614 = vmatpush1.bf16.msra.mxu0 %v6667_v44 }
  0xb4   :  { %5615 = vmatprep.subr.bf16.mxu0 %v6675_v46 }
  0xb5   :  { %5286 = vmatpush1.bf16.msra.mxu1 %v6625_v16 }
  0xb6   :  { %5287 = vmatprep.subr.bf16.mxu1 %v6630_v21 }
  0xb7   :  { %5616 = vmatpush1.bf16.msra.mxu0 %v6673_v48 }
  0xb8   :  { %5617 = vmatprep.subr.bf16.mxu0 %v6681_v50 }
  0xb9   :  { %5288 = vmatpush1.bf16.msra.mxu1 %v6628_v17 }
  0xba   :  { %5289 = vmatprep.subr.bf16.mxu1 %v6633_v18 }
  0xbb   :  { %5618 = vmatpush1.bf16.msra.mxu0 %v6679_v52 }
  0xbc   :  { %5619 = vmatprep.subr.bf16.mxu0 %v6687_v54 }
  0xbd   :  { %5290 = vmatpush1.bf16.msra.mxu1 %v6631_v19 }
  0xbe   :  { %5291 = vmatprep.subr.bf16.mxu1 %v6636_v20 }
  0xbf   :  { %5620 = vmatpush1.bf16.msra.mxu0 %v6685_v55 }
  0xc0   :  { %5621 = vmatprep.subr.bf16.mxu0 %v6693_v56 }
  0xc1   :  { %5292 = vmatpush1.bf16.msra.mxu1 %v6634_v23 }
  0xc2   :  { %5293 = vmatprep.subr.bf16.mxu1 %v6642_v25 }
  0xc3   :  { %5622 = vmatpush1.bf16.msra.mxu0 %v6691_v57 }
  0xc4   :  { %5623 = vmatprep.subr.bf16.mxu0 %v6699_v58 }
  0xc5   :  { %5294 = vmatpush1.bf16.msra.mxu1 %v6640_v27 }
  0xc6   :  { %5295 = vmatprep.subr.bf16.mxu1 %v6648_v29 }
  0xc7   :  { %5624 = vmatpush1.bf16.msra.mxu0 %v6697_v59 }
  0xc8   :  { %5625 = vmatprep.subr.bf16.mxu0 %v6705_v60 }
  0xc9   :  { %5296 = vmatpush1.bf16.msra.mxu1 %v6646_v31 }
  0xca   :  { %5297 = vmatprep.subr.bf16.mxu1 %v6654_v33 }
  0xcb   :  { %5626 = vmatpush1.bf16.msra.mxu0 %v6703_v61 }
  0xcc   :  { %5627 = vmatprep.subr.bf16.mxu0 %v6711_v62 }
  0xcd   :  { %5298 = vmatpush1.bf16.msra.mxu1 %v6652_v35 }
  0xce   :  { %5299 = vmatprep.subr.bf16.mxu1 %v6660_v37 }
  0xcf   :  { %5628 = vmatpush1.bf16.msra.mxu0 %v6709_v63 }
  0xd0   :  { %5629 = vmatprep.subr.bf16.mxu0 %v6717_v1 }
  0xd1   :  { %5300 = vmatpush1.bf16.msra.mxu1 %v6658_v39 }
  0xd2   :  { %5301 = vmatprep.subr.bf16.mxu1 %v6666_v41 }
  0xd3   :  { %5630 = vmatpush1.bf16.msra.mxu0 %v6715_v2 }
  0xd4   :  { %5631 = vmatprep.subr.bf16.mxu0 %v6723_v3 }
  0xd5   :  { %5302 = vmatpush1.bf16.msra.mxu1 %v6664_v43 }
  0xd6   :  { %5303 = vmatprep.subr.bf16.mxu1 %v6672_v45 }
  0xd7   :  { %5632 = vmatpush1.bf16.msra.mxu0 %v6721_v4 }
  0xd8   :  { %5633 = vmatprep.subr.bf16.mxu0 %v6729_v5 }
  0xd9   :  { %5304 = vmatpush1.bf16.msra.mxu1 %v6670_v47 }
  0xda   :  { %5305 = vmatprep.subr.bf16.mxu1 %v6678_v49 }
  0xdb   :  { %5634 = vmatpush1.bf16.msra.mxu0 %v6727_v6 }
  0xdc   :  { %5644 = vmatprep.subr.bf16.mxu0 %v6735_v8 }
  0xdd   :  { %5306 = vmatpush1.bf16.msra.mxu1 %v6676_v51 }
  0xde   :  { %5316 = vmatprep.subr.bf16.mxu1 %v6684_v53 }
 0x139   :  { %v508_v7 = vpop.f32.mrb[0].mxu0 }
 0x13a   :  { %v1130_v9 = vrot.slane %v508_v7, 4  ;;  %v510_v10 = vpop.f32.mrb[1].mxu0 }
 0x13b   :  { %v512_v11 = vpop.f32.mrb[2].mxu0  ;;  %v1136_v12 = vrot.slane %v510_v10, 4  ;;  %v7740_v14 = vpop.f32.mrb[0].mxu1 }
 0x13c   :  { %v1131_v0 = vadd.f32 %v1130_v9, %v508_v7  ;;  %v513_v13 = vpop.f32.mrb[3].mxu0  ;;  %v7742_v15 = vpop.f32.mrb[1].mxu1  ;;  %v1142_v36 = vrot.slane %v7740_v14, 4 }
 0x13d   :  { %v1137_v21 = vadd.f32 %v1136_v12, %v510_v10  ;;  %v553_v17 = vpop.f32.mrb[2].mxu1  ;;  %v1148_v23 = vrot.slane %v7742_v15, 4 }
 0x13e   :  { %v1132_v16 = vrot.slane %v1131_v0, 2  ;;  %v554_v19 = vpop.f32.mrb[3].mxu1  ;;  %v1143_v43 = vadd.f32 %v1142_v36, %v7740_v14 }
 0x13f   :  { %v1138_v25 = vrot.slane %v1137_v21, 2  ;;  %v1149_v28 = vadd.f32 %v1148_v23, %v7742_v15 }
 0x140   :  { %v1133_v24 = vadd.f32 %v1132_v16, %v1131_v0  ;;  %v1144_v54 = vrot.slane %v1143_v43, 2 }
 0x141   :  { %v7744_v18 = vpop.f32.mrb[4].mxu0  ;;  %v1139_v31 = vadd.f32 %v1138_v25, %v1137_v21  ;;  %v1150_v38 = vrot.slane %v1149_v28, 2 }
 0x142   :  { %v7746_v20 = vpop.f32.mrb[5].mxu0  ;;  %v1134_v30 = vrot.slane %v1133_v24, 1  ;;  %v1154_v42 = vrot.slane %v7744_v18, 4  ;;  %v1145_v63 = vadd.f32 %v1144_v54, %v1143_v43 }
 0x143   :  { %v594_v22 = vpop.f32.mrb[6].mxu0  ;;  %v7749_v27 = vpop.f32.mrb[4].mxu1  ;;  %v1140_v40 = vrot.slane %v1139_v31, 1  ;;  %v1160_v45 = vrot.slane %v7746_v20, 4  ;;  %v1151_v46 = vadd.f32 %v1150_v38, %v1149_v28 }
 0x144   :  { %v595_v26 = vpop.f32.mrb[7].mxu0  ;;  %v7752_v29 = vpop.f32.mrb[5].mxu1  ;;  %v1135_v39 = vadd.f32 %v1134_v30, %v1133_v24  ;;  %v1155_v53 = vadd.f32 %v1154_v42, %v7744_v18  ;;  %v1146_v0 = vrot.slane %v1145_v63, 1 }
 0x145   :  { %v635_v32 = vpop.f32.mrb[6].mxu1  ;;  %v1141_v49 = vadd.f32 %v1140_v40, %v1139_v31  ;;  %v1161_v56 = vadd.f32 %v1160_v45, %v7746_v20  ;;  %v1152_v57 = vrot.slane %v1151_v46, 1 }
 0x146   :  { %v636_v34 = vpop.f32.mrb[7].mxu1  ;;  %v1323_v48 = vmul.f32 0.125, %v1135_v39  ;;  %v1156_v62 = vrot.slane %v1155_v53, 2  ;;  %v1147_v24 = vadd.f32 %v1146_v0, %v1145_v63  ;;  %v1172_v32 = vrot.slane %v7752_v29, 4 }
 0x147   :  { %v1324_v60 = vmul.f32 0.125, %v1141_v49  ;;  %v1162_v2 = vrot.slane %v1161_v56, 2  ;;  %v1153_v3 = vadd.f32 %v1152_v57, %v1151_v46  ;;  %v1747_v63 = vlaneseq }
 0x148   :  { %v7772_v59 = vsub.f32 %v508_v7, %v1323_v48  ;;  %v1157_v11 = vadd.f32 %v1156_v62, %v1155_v53  ;;  %v1325_v39 = vmul.f32 0.125, %v1147_v24  ;;  %v1173_v45 = vadd.f32 %v1172_v32, %v7752_v29 }
 0x149   :  { %v7754_v33 = vpop.f32.mrb[8].mxu0  ;;  %v7780_v6 = vsub.f32 %v510_v10, %v1324_v60  ;;  %v1163_v13 = vadd.f32 %v1162_v2, %v1161_v56  ;;  %v1326_v16 = vmul.f32 0.125, %v1153_v3 }
 0x14a   :  { %8373 = vst [vmem:[#allocation16_spill] sm:$0xff] %v7754_v33  ;;  %v7756_v35 = vpop.f32.mrb[9].mxu0  ;;  %v1387_v5 = vmul.f32 %v7772_v59, %v7772_v59  ;;  %v1158_v23 = vrot.slane %v1157_v11, 1 }
 0x14b   :  { %8374 = vst [vmem:[#allocation17_spill] sm:$0xff] %v7756_v35  ;;  %v676_v37 = vpop.f32.mrb[10].mxu0  ;;  %v7761_v44 = vpop.f32.mrb[8].mxu1  ;;  %v1388_v19 = vmul.f32 %v7780_v6, %v7780_v6  ;;  %v1164_v25 = vrot.slane %v1163_v13, 1  ;;  %v7791_v26 = vsub.f32 %v7742_v15, %v1326_v16 }
 0x14c   :  { %v677_v41 = vpop.f32.mrb[11].mxu0  ;;  %v7764_v47 = vpop.f32.mrb[9].mxu1  ;;  %v1419_v17 = vrot.slane %v1387_v5, 4  ;;  %v1159_v38 = vadd.f32 %v1158_v23, %v1157_v11 }
 0x14d   :  { %v717_v50 = vpop.f32.mrb[10].mxu1  ;;  %v1425_v31 = vrot.slane %v1388_v19, 4  ;;  %v1165_v41 = vadd.f32 %v1164_v25, %v1163_v13  ;;  %v1390_v42 = vmul.f32 %v7791_v26, %v7791_v26  ;;  %v7819_v13 = vshrl.u32 %v1747_v63, 7 }
 0x14e   :  { %v718_v52 = vpop.f32.mrb[11].mxu1  ;;  %v1420_v30 = vadd.f32 %v1419_v17, %v1387_v5  ;;  %v1327_v49 = vmul.f32 0.125, %v1159_v38  ;;  %v7804_v50 = vsub.f32 %v7740_v14, %v1325_v39 }
 0x14f   :  { %v1426_v43 = vadd.f32 %v1425_v31, %v1388_v19  ;;  %v1328_v53 = vmul.f32 0.125, %v1165_v41  ;;  %v1437_v54 = vrot.slane %v1390_v42, 4  ;;  %v7825_v32 = vsub.s32 0, %v7819_v13  ;;  %v7827_v41 = vld [vmem:[#allocation7] sm:$0xff] }
 0x150   :  { %v1421_v15 = vrot.slane %v1420_v30, 2  ;;  %v7808_v60 = vsub.f32 %v7744_v18, %v1327_v49  ;;  %v7836_v49 = vsub.s32 1, %v7819_v13 }
 0x151   :  { %v7766_v51 = vpop.f32.mrb[12].mxu0  ;;  %v1427_v57 = vrot.slane %v1426_v43, 2  ;;  %v7814_v2 = vsub.f32 %v7746_v20, %v1328_v53  ;;  %v1438_v14 = vadd.f32 %v1437_v54, %v1390_v42  ;;  %8376 = vst [vmem:[#allocation19_spill] sm:$0xff] %v7825_v32 }
 0x152   :  { %v7769_v55 = vpop.f32.mrb[13].mxu0  ;;  %v1422_v56 = vadd.f32 %v1421_v15, %v1420_v30  ;;  %v1391_v11 = vmul.f32 %v7808_v60, %v7808_v60  ;;  %8377 = vst [vmem:[#allocation20_spill] sm:$0xff] %v7836_v49 }
 0x153   :  { %v758_v58 = vpop.f32.mrb[14].mxu0  ;;  %v7774_v1 = vpop.f32.mrb[12].mxu1  ;;  %v1392_v16 = vmul.f32 %v7814_v2, %v7814_v2 }
 0x154   :  { %v759_v61 = vpop.f32.mrb[15].mxu0  ;;  %v7776_v4 = vpop.f32.mrb[13].mxu1  ;;  %v1174_v58 = vrot.slane %v1173_v45, 2  ;;  %v1423_v5 = vrot.slane %v1422_v56, 1  ;;  %v1443_v25 = vrot.slane %v1391_v11, 4 }
 0x155   :  { %v799_v8 = vpop.f32.mrb[14].mxu1  ;;  %v1389_v61 = vmul.f32 %v7804_v50, %v7804_v50 }
 0x156   :  { %v800_v7 = vpop.f32.mrb[15].mxu1  ;;  %v1428_v8 = vadd.f32 %v1427_v57, %v1426_v43  ;;  %v1424_v17 = vadd.f32 %v1423_v5, %v1422_v56  ;;  %v1750_v56 = vrot.slane %v7827_v41, %v7825_v32  ;;  %v7843_v5 = vld [vmem:[#allocation8] sm:$0xff] }
 0x157   :  { %v1175_v7 = vadd.f32 %v1174_v58, %v1173_v45  ;;  %v1431_v18 = vrot.slane %v1389_v61, 4  ;;  %v7830_v45 = vsub.s32 4, %v7819_v13 }
 0x158   :  { %v1429_v19 = vrot.slane %v1428_v8, 1  ;;  %v1611_v39 = vmul.f32 0.125, %v1424_v17 }
 0x159   :  { %v7782_v9 = vpop.f32.mrb[16].mxu0  ;;  %v1432_v30 = vadd.f32 %v1431_v18, %v1389_v61 }
 0x15a   :  { %v7784_v12 = vpop.f32.mrb[17].mxu0  ;;  %v1226_v52 = vrot.slane %v7782_v9, 4  ;;  %v1430_v42 = vadd.f32 %v1429_v19, %v1428_v8 }
 0x15b   :  { %v840_v21 = vpop.f32.mrb[18].mxu0  ;;  %v7788_v10 = vpop.f32.mrb[16].mxu1  ;;  %v1232_v3 = vrot.slane %v7784_v12, 4  ;;  %v1433_v53 = vrot.slane %v1432_v30, 2 }
 0x15c   :  { %v841_v22 = vpop.f32.mrb[19].mxu0  ;;  %v7793_v28 = vpop.f32.mrb[17].mxu1  ;;  %v1227_v62 = vadd.f32 %v1226_v52, %v7782_v9  ;;  %v1439_v21 = vrot.slane %v1438_v14, 2  ;;  %v1444_v52 = vadd.f32 %v1443_v25, %v1391_v11  ;;  %v1612_v63 = vmul.f32 0.125, %v1430_v42 }
 0x15d   :  { %v881_v34 = vpop.f32.mrb[18].mxu1  ;;  %v1233_v20 = vadd.f32 %v1232_v3, %v7784_v12  ;;  %v1176_v22 = vrot.slane %v1175_v7, 1 }
 0x15e   :  { %v882_v36 = vpop.f32.mrb[19].mxu1  ;;  %v1228_v0 = vrot.slane %v1227_v62, 2  ;;  %v1449_v34 = vrot.slane %v1392_v16, 4 }
 0x15f   :  { %v1234_v24 = vrot.slane %v1233_v20, 2  ;;  %v1440_v36 = vadd.f32 %v1439_v21, %v1438_v14  ;;  %v1177_v15 = vadd.f32 %v1176_v22, %v1175_v7 }
 0x160   :  { %v1229_v23 = vadd.f32 %v1228_v0, %v1227_v62  ;;  %v1450_v57 = vadd.f32 %v1449_v34, %v1392_v16  ;;  %v1643_v62 = vadd.f32 1e-05, %v1611_v39  ;;  %v1445_v0 = vrot.slane %v1444_v52, 2 }
 0x161   :  { %v7796_v37 = vpop.f32.mrb[20].mxu0  ;;  %v1235_v38 = vadd.f32 %v1234_v24, %v1233_v20  ;;  %v1441_v58 = vrot.slane %v1440_v36, 1  ;;  %v1330_v14 = vmul.f32 0.125, %v1177_v15  ;;  %v1434_v16 = vadd.f32 %v1433_v53, %v1432_v30  ;;  %v7853_v20 = vld [vmem:[#allocation7 + $0x10] sm:$0xff] }
 0x162   :  { %8375 = vst [vmem:[#allocation18_spill] sm:$0xff] %v7796_v37  ;;  %v7798_v40 = vpop.f32.mrb[21].mxu0  ;;  %v1230_v31 = vrot.slane %v1229_v23, 1  ;;  %v1451_v17 = vrot.slane %v1450_v57, 2  ;;  %7378 = vrsqrt.f32 %v1643_v62  ;;  %v1644_v24 = vadd.f32 1e-05, %v1612_v63 }
 0x163   :  { %v922_v46 = vpop.f32.mrb[22].mxu0  ;;  %v1442_v19 = vadd.f32 %v1441_v58, %v1440_v36  ;;  %v7864_v25 = vsub.f32 %v7752_v29, %v1330_v14  ;;  %v1435_v39 = vrot.slane %v1434_v16, 1  ;;  %v1166_v62 = vrot.slane %v7749_v27, 4 }
 0x164   :  { %v923_v48 = vpop.f32.mrb[23].mxu0  ;;  %v1231_v43 = vadd.f32 %v1230_v31, %v1229_v23  ;;  %v7833_v46 = vsub.s32 2, %v7819_v13  ;;  %v1452_v15 = vadd.f32 %v1451_v17, %v1450_v57  ;;  %7380 = vrsqrt.f32 %v1644_v24 }
 0x165   :  { %v1236_v48 = vrot.slane %v1235_v38, 1  ;;  %v1394_v58 = vmul.f32 %v7864_v25, %v7864_v25  ;;  %v1238_v29 = vrot.slane %v7788_v10, 4  ;;  %v1167_v7 = vadd.f32 %v1166_v62, %v7749_v27 }
 0x166   :  { %v1339_v54 = vmul.f32 0.125, %v1231_v43  ;;  %v1614_v43 = vmul.f32 0.125, %v1442_v19  ;;  %v1453_v17 = vrot.slane %v1452_v15, 1 }
 0x167   :  { %v1237_v61 = vadd.f32 %v1236_v48, %v1235_v38  ;;  %v1446_v38 = vadd.f32 %v1445_v0, %v1444_v52  ;;  %v1202_v48 = vrot.slane %v7766_v51, 4 }
 0x168   :  { %v7841_v3 = vsub.f32 %v7782_v9, %v1339_v54  ;;  %v7856_v9 = vsub.s32 5, %v7819_v13  ;;  %v1208_v54 = vrot.slane %v7769_v55, 4  ;;  %v1646_v19 = vadd.f32 1e-05, %v1614_v43 }
 0x169   :  { %v1340_v11 = vmul.f32 0.125, %v1237_v61  ;;  %v1447_v14 = vrot.slane %v1446_v38, 1  ;;  %v1203_v24 = vadd.f32 %v1202_v48, %v7766_v51  ;;  %v1239_v48 = vadd.f32 %v1238_v29, %v7788_v10 }
 0x16a   :  { %v1403_v21 = vmul.f32 %v7841_v3, %v7841_v3  ;;  %v1209_v8 = vadd.f32 %v1208_v54, %v7769_v55  ;;  %v1244_v54 = vrot.slane %v7793_v28, 4  ;;  %v1454_v31 = vadd.f32 %v1453_v17, %v1452_v15 }
 0x16b   :  { %v7859_v22 = vsub.f32 %v7784_v12, %v1340_v11  ;;  %v7873_v12 = vsub.s32 3, %v7819_v13  ;;  %v1436_v11 = vadd.f32 %v1435_v39, %v1434_v16  ;;  %7382 = vrsqrt.f32 %v1646_v19 }
 0x16c   :  { %v1515_v30 = vrot.slane %v1403_v21, 4  ;;  %v1204_v36 = vrot.slane %v1203_v24, 2  ;;  %v1210_v62 = vrot.slane %v1209_v8, 2  ;;  %v1245_v39 = vadd.f32 %v1244_v54, %v7793_v28 }
 0x16d   :  { %v1404_v34 = vmul.f32 %v7859_v22, %v7859_v22  ;;  %v1613_v43 = vmul.f32 0.125, %v1436_v11  ;;  %v1168_v29 = vrot.slane %v1167_v7, 2  ;;  %v1240_v15 = vrot.slane %v1239_v48, 2 }
 0x16e   :  { %v1516_v42 = vadd.f32 %v1515_v30, %v1403_v21  ;;  %v1448_v21 = vadd.f32 %v1447_v14, %v1446_v38  ;;  %v1190_v38 = vrot.slane %v7761_v44, 4  ;;  %v1616_v17 = vmul.f32 0.125, %v1454_v31 }
 0x16f   :  { %v1521_v53 = vrot.slane %v1404_v34, 4  ;;  %v1645_v19 = vadd.f32 1e-05, %v1613_v43  ;;  %v1246_v54 = vrot.slane %v1245_v39, 2  ;;  %v1196_v31 = vrot.slane %v7764_v47, 4 }
 0x170   :  { %v1517_v61 = vrot.slane %v1516_v42, 2  ;;  %v1615_v14 = vmul.f32 0.125, %v1448_v21  ;;  %v1191_v21 = vadd.f32 %v1190_v38, %v7761_v44  ;;  %v1648_v43 = vadd.f32 1e-05, %v1616_v17 }
 0x171   :  { %v1522_v52 = vadd.f32 %v1521_v53, %v1404_v34  ;;  %v1461_v34 = vrot.slane %v1394_v58, 4 }
 0x172   :  { %v1518_v0 = vadd.f32 %v1517_v61, %v1516_v42  ;;  %v7379_v42 = vpop.eup %7378 }
 0x173   :  { %v1523_v30 = vrot.slane %v1522_v52, 2  ;;  %v1707_v16 = vmul.f32 %v7379_v42, %v7772_v59  ;;  %v7903_v59 = vld [vmem:[#allocation8 + $0x10] sm:$0xff] }
 0x174   :  { %v1519_v53 = vrot.slane %v1518_v0, 1 }
 0x175   :  { %v1524_v57 = vadd.f32 %v1523_v30, %v1522_v52  ;;  %v1462_v52 = vadd.f32 %v1461_v34, %v1394_v58  ;;  %v1205_v58 = vadd.f32 %v1204_v36, %v1203_v24  ;;  %v1211_v34 = vadd.f32 %v1210_v62, %v1209_v8 }
 0x176   :  { %v1520_v61 = vadd.f32 %v1519_v53, %v1518_v0  ;;  %v7381_v0 = vpop.eup %7380  ;;  %v1647_v36 = vadd.f32 1e-05, %v1615_v14  ;;  %v1247_v62 = vadd.f32 %v1246_v54, %v1245_v39  ;;  %v1197_v14 = vadd.f32 %v1196_v31, %v7764_v47 }
 0x177   :  { %v1525_v63 = vrot.slane %v1524_v57, 1  ;;  %v8381_v39 = vrot.slane %v7843_v5, %v7836_v49 }
 0x178   :  { %v1627_v30 = vmul.f32 0.125, %v1520_v61  ;;  %v1463_v61 = vrot.slane %v1462_v52, 2 }
 0x179   :  { %v1526_v23 = vadd.f32 %v1525_v63, %v1524_v57  ;;  %v1907_v63 = vmul.f32 %v1750_v56, %v1707_v16  ;;  %v1708_v57 = vmul.f32 %v7381_v0, %v7780_v6  ;;  %v1206_v56 = vrot.slane %v1205_v58, 1 }
 0x17a   :  { %v1659_v53 = vadd.f32 1e-05, %v1627_v30  ;;  %v1169_v30 = vadd.f32 %v1168_v29, %v1167_v7  ;;  %v1464_v6 = vadd.f32 %v1463_v61, %v1462_v52  ;;  %v7383_v7 = vpop.eup %7382  ;;  %v1212_v16 = vrot.slane %v1211_v34, 1 }
 0x17b   :  { %v1628_v18 = vmul.f32 0.125, %v1526_v23  ;;  %v1241_v23 = vadd.f32 %v1240_v15, %v1239_v48  ;;  %v8379_v48 = vrot.slane %v7827_v41, %v7836_v49  ;;  %v8380_v29 = vrot.slane %v7843_v5, %v7825_v32 }
 0x17c   :  { %7384 = vrsqrt.f32 %v1659_v53  ;;  %v1170_v38 = vrot.slane %v1169_v30, 1  ;;  %v1192_v15 = vrot.slane %v1191_v21, 2  ;;  %v1214_v52 = vrot.slane %v7774_v1, 4 }
 0x17d   :  { %v1660_v42 = vadd.f32 1e-05, %v1628_v18  ;;  %v7915_v18 = vpop.f32.mrb[20].mxu1  ;;  %v1908_v0 = vmul.f32 %v8379_v48, %v1708_v57  ;;  %v2107_v53 = vadd.f32 %v8380_v29, %v1907_v63  ;;  %v1242_v17 = vrot.slane %v1241_v23, 1 }
 0x17e   :  { %8378 = vst [vmem:[#allocation21_spill] sm:$0xff] %v7915_v18  ;;  %v1710_v57 = vmul.f32 %v7383_v7, %v7791_v26  ;;  %v1465_v54 = vrot.slane %v1464_v6, 1  ;;  %v1207_v29 = vadd.f32 %v1206_v56, %v1205_v58  ;;  %v1213_v8 = vadd.f32 %v1212_v16, %v1211_v34  ;;  %v6682_v26 = vld [vmem:[#allocation10 + $0x100] ss:$8 sps:$4 sm:$0xff]   ;;  %v6690_v34 = vld [vmem:[#allocation10 + $0x114] ss:$8 sps:$4 sm:$0xff]  }
 0x17f   :  { %7386 = vrsqrt.f32 %v1660_v42  ;;  %v2108_v61 = vadd.f32 %v8381_v39, %v1908_v0  ;;  %v7928_v42 = vpop.f32.mrb[21].mxu1  ;;  %v2139_v63 = vmax.f32 %v2107_v53, 0.0  ;;  %v1171_v24 = vadd.f32 %v1170_v38, %v1169_v30 }
 0x180   :  { %7388 = vrsqrt.f32 %v1645_v19  ;;  %v1248_v19 = vrot.slane %v1247_v62, 1  ;;  %8382 = vst [vmem:[#allocation22_spill] sm:$0xff] %v7928_v42  ;;  %v963_v48 = vpop.f32.mrb[22].mxu1  ;;  %v1193_v33 = vadd.f32 %v1192_v15, %v1191_v21  ;;  %v1198_v18 = vrot.slane %v1197_v14, 2 }
 0x181   :  { %7390 = vrsqrt.f32 %v1647_v36  ;;  %v2140_v11 = vmax.f32 %v2108_v61, 0.0  ;;  %v1243_v35 = vadd.f32 %v1242_v17, %v1241_v23  ;;  %v964_v37 = vpop.f32.mrb[23].mxu1  ;;  %v1215_v39 = vadd.f32 %v1214_v52, %v7774_v1  ;;  %v7944_v52 = vpop.f32.mrb[24].mxu0  ;;  %v6688_v61 = vld [vmem:[#allocation10 + $0x110] ss:$8 sps:$4 sm:$0xff]  }
 0x182   :  { %7392 = vrsqrt.f32 %v1648_v43  ;;  %v1249_v31 = vadd.f32 %v1248_v19, %v1247_v62  ;;  %v1466_v7 = vadd.f32 %v1465_v54, %v1464_v6  ;;  %v1220_v53 = vrot.slane %v7776_v4, 4  ;;  %8385 = vst [vmem:[#allocation23_spill] sm:$0xff] %v7944_v52  ;;  %v7954_v54 = vpop.f32.mrb[24].mxu1 }
 0x183   :  { %v2172_v42 = vpack.c.bf16 %v2140_v11, %v2140_v11  ;;  %v2171_v58 = vpack.c.bf16 %v2139_v63, %v2139_v63  ;;  %v8383_v56 = vrot.slane %v7827_v41, %v7873_v12  ;;  %v1335_v16 = vmul.f32 0.125, %v1207_v29  ;;  %v6696_v63 = vld [vmem:[#allocation10 + $0x124] ss:$8 sps:$4 sm:$0xff]  }
 0x184   :  { %v1342_v43 = vmul.f32 0.125, %v1249_v31  ;;  %v1336_v23 = vmul.f32 0.125, %v1213_v8  ;;  %v8384_v37 = vrot.slane %v7853_v20, %v7825_v32  ;;  %v1194_v38 = vrot.slane %v1193_v33, 1  ;;  %v7960_v31 = vpop.f32.mrb[25].mxu0 }
 0x185   :  { %v1910_v30 = vmul.f32 %v8383_v56, %v1710_v57  ;;  %5307 = vmatprep.mubr.bf16.mxu1 %v2172_v42  ;;  %v1199_v15 = vadd.f32 %v1198_v18, %v1197_v14  ;;  %v1341_v17 = vmul.f32 0.125, %v1243_v35  ;;  %v1216_v19 = vrot.slane %v1215_v39, 2  ;;  %8389 = vst [vmem:[#allocation24_spill] sm:$0xff] %v7960_v31 }
 0x186   :  { %v7385_v36 = vpop.eup %7384  ;;  %v7941_v62 = vsub.f32 %v7793_v28, %v1342_v43  ;;  %5308 = vmatmul.mubr.bf16.vlgmr.msra.gmra.mrb[32].mxu1 %v2171_v58  ;;  %v8386_v28 = vrot.slane %v7843_v5, %v7873_v12  ;;  %v8387_v42 = vrot.slane %v7903_v59, %v7825_v32  ;;  %v1329_v35 = vmul.f32 0.125, %v1171_v24 }
 0x187   :  { %v1723_v0 = vmul.f32 %v7385_v36, %v7841_v3  ;;  %5317 = vmatpush1.bf16.msra.mxu1 %v6682_v26  ;;  %v1618_v18 = vmul.f32 0.125, %v1466_v7  ;;  %v1221_v14 = vadd.f32 %v1220_v53, %v7776_v4  ;;  %v8388_v48 = vrot.slane %v7853_v20, %v7836_v49  ;;  %v7962_v36 = vpop.f32.mrb[25].mxu1 }
 0x188   :  { %v1406_v8 = vmul.f32 %v7941_v62, %v7941_v62  ;;  %v2110_v57 = vadd.f32 %v8386_v28, %v1910_v30  ;;  %5318 = vmatprep.subr.bf16.mxu1 %v6690_v34  ;;  %v7966_v26 = vsub.f32 %v7766_v51, %v1335_v16  ;;  %v1195_v53 = vadd.f32 %v1194_v38, %v1193_v33  ;;  %v6694_v30 = vld [vmem:[#allocation10 + $0x120] ss:$8 sps:$4 sm:$0xff]  }
 0x189   :  { %v7387_v21 = vpop.eup %7386  ;;  %v1923_v3 = vmul.f32 %v8384_v37, %v1723_v0  ;;  %v1200_v34 = vrot.slane %v1199_v15, 1  ;;  %v7969_v56 = vsub.f32 %v7788_v10, %v1341_v17  ;;  %v7975_v33 = vsub.f32 %v7769_v55, %v1336_v23 }
 0x18a   :  { %v7389_v11 = vpop.eup %7388  ;;  %v1724_v6 = vmul.f32 %v7387_v21, %v7859_v22  ;;  %v1533_v24 = vrot.slane %v1406_v8, 4  ;;  %v2142_v7 = vmax.f32 %v2110_v57, 0.0  ;;  %v8390_v21 = vrot.slane %v7903_v59, %v7836_v49 }
 0x18b   :  { %v2123_v22 = vadd.f32 %v8387_v42, %v1923_v3  ;;  %v7391_v0 = vpop.eup %7390  ;;  %v1709_v43 = vmul.f32 %v7389_v11, %v7804_v50  ;;  %v1004_v3 = vpop.f32.mrb[26].mxu0  ;;  %5319 = vmatpush1.bf16.msra.mxu1 %v6688_v61  ;;  %v6702_v50 = vld [vmem:[#allocation10 + $0x134] ss:$8 sps:$4 sm:$0xff]   ;;  %v1650_v38 = vadd.f32 1e-05, %v1618_v18  ;;  %v1222_v10 = vrot.slane %v1221_v14, 2 }
 0x18c   :  { %v1924_v29 = vmul.f32 %v8388_v48, %v1724_v6  ;;  %v7393_v58 = vpop.eup %7392  ;;  %v1217_v6 = vadd.f32 %v1216_v19, %v1215_v39  ;;  %v1534_v28 = vadd.f32 %v1533_v24, %v1406_v8  ;;  %v2174_v51 = vpack.c.bf16 %v2142_v7, %v2142_v7  ;;  %v1045_v11 = vpop.f32.mrb[26].mxu1  ;;  %5320 = vmatprep.subr.bf16.mxu1 %v6696_v63  ;;  %v6700_v63 = vld [vmem:[#allocation10 + $0x130] ss:$8 sps:$4 sm:$0xff]   ;;  %v6708_v3 = vld [vmem:[#allocation10 + $0x144] ss:$8 sps:$4 sm:$0xff]  }
 0x18d   :  { %v2155_v16 = vmax.f32 %v2123_v22, 0.0  ;;  %v1005_v57 = vpop.f32.mrb[27].mxu0  ;;  %v1046_v42 = vpop.f32.mrb[27].mxu1  ;;  %v1711_v48 = vmul.f32 %v7391_v0, %v7808_v60  ;;  %v8391_v39 = vrot.slane %v7827_v41, %v7833_v46  ;;  %v1333_v55 = vmul.f32 0.125, %v1195_v53  ;;  %v6733_v60 = vld [vmem:[#allocation10 + $0x900] ss:$8 sps:$4 sm:$0xff]  }
 0x18e   :  { %v2124_v37 = vadd.f32 %v8390_v21, %v1924_v29  ;;  %v1712_v29 = vmul.f32 %v7393_v58, %v7814_v2  ;;  %v1535_v8 = vrot.slane %v1534_v28, 2  ;;  %5348 = vmatprep.mubr.bf16.mxu1 %v2174_v51  ;;  %v7982_v61 = vpop.f32.mrb[28].mxu0  ;;  %v7984_v22 = vpop.f32.mrb[28].mxu1  ;;  %v1201_v23 = vadd.f32 %v1200_v34, %v1199_v15  ;;  %v6741_v58 = vld [vmem:[#allocation10 + $0x914] ss:$8 sps:$4 sm:$0xff]  }
 0x18f   :  { %v1909_v19 = vmul.f32 %v8391_v39, %v1709_v43  ;;  %v1405_v18 = vmul.f32 %v7969_v56, %v7969_v56  ;;  %v1218_v0 = vrot.slane %v1217_v6, 1  ;;  %5321 = vmatpush1.bf16.msra.mxu1 %v6694_v30  ;;  %v2187_v7 = vpack.c.bf16 %v2155_v16, %v2155_v16  ;;  %v7989_v21 = vpop.f32.mrb[29].mxu0 }
 0x190   :  { %v2156_v17 = vmax.f32 %v2124_v37, 0.0  ;;  %v1536_v2 = vadd.f32 %v1535_v8, %v1534_v28  ;;  %v1256_v43 = vrot.slane %v7798_v40, 4  ;;  %v7991_v37 = vpop.f32.mrb[29].mxu1  ;;  %v1399_v15 = vmul.f32 %v7966_v26, %v7966_v26  ;;  %5322 = vmatprep.subr.bf16.mxu1 %v6702_v50  ;;  %v1086_v30 = vpop.f32.mrb[30].mxu0  ;;  %v6739_v50 = vld [vmem:[#allocation10 + $0x910] ss:$8 sps:$4 sm:$0xff]  }
 0x191   :  { %v7996_v53 = vsub.f32 %v7749_v27, %v1329_v35  ;;  %7394 = vrsqrt.f32 %v1650_v38  ;;  %v1223_v34 = vadd.f32 %v1222_v10, %v1221_v14  ;;  %v1400_v28 = vmul.f32 %v7975_v33, %v7975_v33  ;;  %v1087_v42 = vpop.f32.mrb[31].mxu0 }
 0x192   :  { %v2188_v24 = vpack.c.bf16 %v2156_v17, %v2156_v17  ;;  %v1537_v51 = vrot.slane %v1536_v2, 1  ;;  %v1257_v16 = vadd.f32 %v1256_v43, %v7798_v40  ;;  %v8392_v11 = vrot.slane %v7843_v5, %v7833_v46  ;;  %v1127_v17 = vpop.f32.mrb[30].mxu1 }
 0x193   :  { %v8007_v27 = vsub.f32 %v7761_v44, %v1333_v55  ;;  %v1334_v35 = vmul.f32 0.125, %v1201_v23  ;;  %v1527_v14 = vrot.slane %v1405_v18, 4  ;;  %v8393_v38 = vrot.slane %v7827_v41, %v7856_v9  ;;  %5323 = vmatpush1.bf16.msra.mxu1 %v6700_v63  ;;  %v6747_v44 = vld [vmem:[#allocation10 + $0x924] ss:$8 sps:$4 sm:$0xff]  }
 0x194   :  { %5635 = vmatprep.mubr.bf16.mxu0 %v2188_v24  ;;  %v8004_v57 = vadd.f32 %v8392_v11, %v1909_v19  ;;  %v8394_v39 = vrot.slane %v7827_v41, %v7830_v45  ;;  %v1219_v24 = vadd.f32 %v1218_v0, %v1217_v6  ;;  %v1538_v19 = vadd.f32 %v1537_v51, %v1536_v2 }
 0x195   :  { %5636 = vmatmul.mubr.bf16.vlgmr.msra.gmra.mrb[32].mxu0 %v2187_v7  ;;  %v1912_v10 = vmul.f32 %v8393_v38, %v1712_v29  ;;  %v6706_v7 = vld [vmem:[#allocation10 + $0x140] ss:$8 sps:$4 sm:$0xff]   ;;  %v1258_v55 = vrot.slane %v1257_v16, 2  ;;  %v1491_v23 = vrot.slane %v1399_v15, 4  ;;  %v1224_v43 = vrot.slane %v1223_v34, 1  ;;  %5324 = vmatprep.subr.bf16.mxu1 %v6708_v3 }
 0x196   :  { %5645 = vmatpush1.bf16.msra.mxu0 %v6733_v60  ;;  %v1911_v8 = vmul.f32 %v8394_v39, %v1711_v48  ;;  %v1393_v60 = vmul.f32 %v7996_v53, %v7996_v53  ;;  %v6714_v29 = vld [vmem:[#allocation10 + $0x154] ss:$8 sps:$4 sm:$0xff]   ;;  %v8395_v30 = vrot.slane %v7843_v5, %v7856_v9  ;;  %v1128_v48 = vpop.f32.mrb[31].mxu1  ;;  %v1497_v6 = vrot.slane %v1400_v28, 4  ;;  %v6712_v38 = vld [vmem:[#allocation10 + $0x150] ss:$8 sps:$4 sm:$0xff]  }
 0x197   :  { %5646 = vmatprep.subr.bf16.mxu0 %v6741_v58  ;;  %v1630_v0 = vmul.f32 0.125, %v1538_v19  ;;  %v1259_v63 = vadd.f32 %v1258_v55, %v1257_v16  ;;  %v1397_v2 = vmul.f32 %v8007_v27, %v8007_v27  ;;  %v8025_v58 = vsub.f32 %v7764_v47, %v1334_v35  ;;  %v6745_v3 = vld [vmem:[#allocation10 + $0x920] ss:$8 sps:$4 sm:$0xff]   ;;  %5325 = vmatpush1.bf16.msra.mxu1 %v6706_v7  ;;  %v6720_v47 = vld [vmem:[#allocation10 + $0x164] ss:$8 sps:$4 sm:$0xff]  }
 0x198   :  { %v8020_v11 = vadd.f32 %v8395_v30, %v1912_v10  ;;  %v1528_v51 = vadd.f32 %v1527_v14, %v1405_v18  ;;  %v1337_v17 = vmul.f32 0.125, %v1219_v24  ;;  %v6753_v10 = vld [vmem:[#allocation10 + $0x934] ss:$8 sps:$4 sm:$0xff]   ;;  %v8396_v19 = vrot.slane %v7843_v5, %v7830_v45  ;;  %5326 = vmatprep.subr.bf16.mxu1 %v6714_v29 }
 0x199   :  { %v1662_v42 = vadd.f32 1e-05, %v1630_v0  ;;  %v1260_v39 = vrot.slane %v1259_v63, 1  ;;  %v1492_v55 = vadd.f32 %v1491_v23, %v1399_v15  ;;  %v1455_v30 = vrot.slane %v1393_v60, 4  ;;  %v6726_v0 = vld [vmem:[#allocation10 + $0x174] ss:$8 sps:$4 sm:$0xff]  }
 0x19a   :  { %5647 = vmatpush1.bf16.msra.mxu0 %v6739_v50  ;;  %v8030_v16 = vadd.f32 %v8396_v19, %v1911_v8  ;;  %v1225_v48 = vadd.f32 %v1224_v43, %v1223_v34  ;;  %v1498_v18 = vadd.f32 %v1497_v6, %v1400_v28  ;;  %v8033_v14 = vsub.s32 7, %v7819_v13  ;;  %v6751_v8 = vld [vmem:[#allocation10 + $0x930] ss:$8 sps:$4 sm:$0xff]   ;;  %v6718_v34 = vld [vmem:[#allocation10 + $0x160] ss:$8 sps:$4 sm:$0xff]  }
 0x19b   :  { %5648 = vmatprep.subr.bf16.mxu0 %v6747_v44  ;;  %7396 = vrsqrt.f32 %v1662_v42  ;;  %v1261_v35 = vadd.f32 %v1260_v39, %v1259_v63  ;;  %v7395_v50 = vpop.eup %7394  ;;  %v1479_v24 = vrot.slane %v1397_v2, 4  ;;  %v1398_v7 = vmul.f32 %v8025_v58, %v8025_v58  ;;  %5327 = vmatpush1.bf16.msra.mxu1 %v6712_v38  ;;  %v6759_v28 = vld [vmem:[#allocation10 + $0x944] ss:$8 sps:$4 sm:$0xff]   ;;  %v6724_v19 = vld [vmem:[#allocation10 + $0x170] ss:$8 sps:$4 sm:$0xff]  }
 0x19c   :  { %8397 = vst [vmem:[#allocation25_spill] sm:$0xff] %v8030_v16  ;;  %8398 = vst [vmem:[#allocation26_spill] sm:$0xff] %v8033_v14  ;;  %v1529_v44 = vrot.slane %v1528_v51, 2  ;;  %v8038_v15 = vsub.f32 %v7774_v1, %v1337_v17  ;;  %v1493_v43 = vrot.slane %v1492_v55, 2  ;;  %v1456_v29 = vadd.f32 %v1455_v30, %v1393_v60  ;;  %5328 = vmatprep.subr.bf16.mxu1 %v6720_v47  ;;  %v6765_v30 = vld [vmem:[#allocation10 + $0x954] ss:$8 sps:$4 sm:$0xff]  }
 0x19d   :  { %v1344_v23 = vmul.f32 0.125, %v1261_v35  ;;  %v1338_v6 = vmul.f32 0.125, %v1225_v48  ;;  %v1499_v63 = vrot.slane %v1498_v18, 2  ;;  %v1714_v42 = vmul.f32 %v7395_v50, %v7864_v25 }
 0x19e   :  { %5649 = vmatpush1.bf16.msra.mxu0 %v6745_v3  ;;  %v1778_v1 = vrot.slane %v7827_v41, %v8033_v14  ;;  %v1480_v3 = vadd.f32 %v1479_v24, %v1397_v2  ;;  %v1485_v38 = vrot.slane %v1398_v7, 4  ;;  %v1530_v17 = vadd.f32 %v1529_v44, %v1528_v51  ;;  %v6732_v51 = vld [vmem:[#allocation10 + $0x184] ss:$8 sps:$4 sm:$0xff]  }
 0x19f   :  { %5650 = vmatprep.subr.bf16.mxu0 %v6753_v10  ;;  %v8042_v39 = vsub.f32 %v7798_v40, %v1344_v23  ;;  %v6757_v10 = vld [vmem:[#allocation10 + $0x940] ss:$8 sps:$4 sm:$0xff]   ;;  %v1401_v60 = vmul.f32 %v8038_v15, %v8038_v15  ;;  %5329 = vmatpush1.bf16.msra.mxu1 %v6718_v34  ;;  %v1978_v40 = vrot.slane %v7843_v5, %v8033_v14  ;;  %v1457_v47 = vrot.slane %v1456_v29, 2 }
 0x1a0   :  { %v1494_v48 = vadd.f32 %v1493_v43, %v1492_v55  ;;  %v8053_v2 = vsub.f32 %v7776_v4, %v1338_v6  ;;  %5330 = vmatprep.subr.bf16.mxu1 %v6726_v0  ;;  %v1500_v35 = vadd.f32 %v1499_v63, %v1498_v18  ;;  %v1914_v24 = vmul.f32 %v1778_v1, %v1714_v42  ;;  %v6730_v55 = vld [vmem:[#allocation10 + $0x180] ss:$8 sps:$4 sm:$0xff]   ;;  %v6771_v43 = vld [vmem:[#allocation10 + $0x964] ss:$8 sps:$4 sm:$0xff]   ;;  %v6738_v1 = vld [vmem:[#allocation10 + $0x194] ss:$8 sps:$4 sm:$0xff]  }
 0x1a1   :  { %v1408_v25 = vmul.f32 %v8042_v39, %v8042_v39  ;;  %v1481_v44 = vrot.slane %v1480_v3, 2  ;;  %v1531_v34 = vrot.slane %v1530_v17, 1  ;;  %v1826_v23 = vrot.slane %v7853_v20, %v7873_v12  ;;  %v6742_v14 = vld [vmem:[#allocation10 + $0x1a0] ss:$8 sps:$4 sm:$0xff]  }
 0x1a2   :  { %5651 = vmatpush1.bf16.msra.mxu0 %v6751_v8  ;;  %v1486_v8 = vadd.f32 %v1485_v38, %v1398_v7  ;;  %v1503_v5 = vrot.slane %v1401_v60, 4  ;;  %v2026_v4 = vrot.slane %v7903_v59, %v7873_v12  ;;  %v8059_v6 = vadd.f32 %v1978_v40, %v1914_v24  ;;  %v6769_v40 = vld [vmem:[#allocation10 + $0x960] ss:$8 sps:$4 sm:$0xff]  }
 0x1a3   :  { %5652 = vmatprep.subr.bf16.mxu0 %v6759_v28  ;;  %v1545_v50 = vrot.slane %v1408_v25, 4  ;;  %v6763_v28 = vld [vmem:[#allocation10 + $0x950] ss:$8 sps:$4 sm:$0xff]   ;;  %5331 = vmatpush1.bf16.msra.mxu1 %v6724_v19  ;;  %v1495_v0 = vrot.slane %v1494_v48, 1  ;;  %v1458_v7 = vadd.f32 %v1457_v47, %v1456_v29  ;;  %v1402_v63 = vmul.f32 %v8053_v2, %v8053_v2  ;;  %v6777_v47 = vld [vmem:[#allocation10 + $0x974] ss:$8 sps:$4 sm:$0xff]  }
 0x1a4   :  { %8399 = vst [vmem:[#allocation27_spill] sm:$0xff] %v8059_v6  ;;  %5332 = vmatprep.subr.bf16.mxu1 %v6732_v51  ;;  %v1501_v38 = vrot.slane %v1500_v35, 1  ;;  %v1286_v19 = vrot.slane %v7954_v54, 4  ;;  %v1487_v49 = vrot.slane %v1486_v8, 2  ;;  %v1532_v52 = vadd.f32 %v1531_v34, %v1530_v17  ;;  %v6736_v29 = vld [vmem:[#allocation10 + $0x190] ss:$8 sps:$4 sm:$0xff]  }
 0x1a5   :  { %v7397_v32 = vpop.eup %7396  ;;  %v1546_v18 = vadd.f32 %v1545_v50, %v1408_v25  ;;  %v1504_v50 = vadd.f32 %v1503_v5, %v1401_v60  ;;  %v1496_v6 = vadd.f32 %v1495_v0, %v1494_v48  ;;  %v6744_v51 = vld [vmem:[#allocation10 + $0x1a4] ss:$8 sps:$4 sm:$0xff]  }
 0x1a6   :  { %5653 = vmatpush1.bf16.msra.mxu0 %v6757_v10  ;;  %v1726_v42 = vmul.f32 %v7397_v32, %v7941_v62  ;;  %v1459_v32 = vrot.slane %v1458_v7, 1  ;;  %v1509_v62 = vrot.slane %v1402_v63, 4  ;;  %v1502_v31 = vadd.f32 %v1501_v38, %v1500_v35  ;;  %v8401_v48 = vld [vmem:[#allocation18_spill] sm:$0xff] }
 0x1a7   :  { %5654 = vmatprep.subr.bf16.mxu0 %v6765_v30  ;;  %v1547_v10 = vrot.slane %v1546_v18, 2  ;;  %v1482_v30 = vadd.f32 %v1481_v44, %v1480_v3  ;;  %5333 = vmatpush1.bf16.msra.mxu1 %v6730_v55  ;;  %v8400_v44 = vld [vmem:[#allocation22_spill] sm:$0xff]  ;;  %v1287_v34 = vadd.f32 %v1286_v19, %v7954_v54  ;;  %v1488_v60 = vadd.f32 %v1487_v49, %v1486_v8  ;;  %v6775_v55 = vld [vmem:[#allocation10 + $0x970] ss:$8 sps:$4 sm:$0xff]  }
 0x1a8   :  { %v1926_v25 = vmul.f32 %v1826_v23, %v1726_v42  ;;  %5334 = vmatprep.subr.bf16.mxu1 %v6738_v1  ;;  %v1268_v17 = vrot.slane %v8400_v44, 4  ;;  %v1629_v23 = vmul.f32 0.125, %v1532_v52  ;;  %v1292_v35 = vrot.slane %v7962_v36, 4  ;;  %v6748_v49 = vld [vmem:[#allocation10 + $0x1b0] ss:$8 sps:$4 sm:$0xff]  }
 0x1a9   :  { %v1548_v24 = vadd.f32 %v1547_v10, %v1546_v18  ;;  %v1250_v18 = vrot.slane %v8401_v48, 4  ;;  %v1623_v42 = vmul.f32 0.125, %v1496_v6  ;;  %v1460_v1 = vadd.f32 %v1459_v32, %v1458_v7  ;;  %v6750_v10 = vld [vmem:[#allocation10 + $0x1b4] ss:$8 sps:$4 sm:$0xff]  }
 0x1aa   :  { %5655 = vmatpush1.bf16.msra.mxu0 %v6763_v28  ;;  %v2126_v16 = vadd.f32 %v2026_v4, %v1926_v25  ;;  %v1483_v28 = vrot.slane %v1482_v30, 1  ;;  %v6783_v4 = vld [vmem:[#allocation10 + $0x984] ss:$8 sps:$4 sm:$0xff]   ;;  %v1510_v38 = vadd.f32 %v1509_v62, %v1402_v63  ;;  %v1288_v8 = vrot.slane %v1287_v34, 2  ;;  %v6789_v62 = vld [vmem:[#allocation10 + $0x994] ss:$8 sps:$4 sm:$0xff]  }
 0x1ab   :  { %5656 = vmatprep.subr.bf16.mxu0 %v6771_v43  ;;  %v1549_v3 = vrot.slane %v1548_v24, 1  ;;  %v1505_v43 = vrot.slane %v1504_v50, 2  ;;  %5335 = vmatpush1.bf16.msra.mxu1 %v6736_v29  ;;  %v1293_v25 = vadd.f32 %v1292_v35, %v7962_v36  ;;  %v1489_v29 = vrot.slane %v1488_v60, 1 }
 0x1ac   :  { %v2158_v5 = vmax.f32 %v2126_v16, 0.0  ;;  %5336 = vmatprep.subr.bf16.mxu1 %v6744_v51  ;;  %v1269_v16 = vadd.f32 %v1268_v17, %v8400_v44  ;;  %v1298_v6 = vrot.slane %v7982_v61, 4  ;;  %v1251_v63 = vadd.f32 %v1250_v18, %v8401_v48 }
 0x1ad   :  { %v1550_v0 = vadd.f32 %v1549_v3, %v1548_v24  ;;  %v6781_v24 = vld [vmem:[#allocation10 + $0x980] ss:$8 sps:$4 sm:$0xff]   ;;  %v1506_v7 = vadd.f32 %v1505_v43, %v1504_v50  ;;  %v1294_v51 = vrot.slane %v1293_v25, 2  ;;  %v1624_v3 = vmul.f32 0.125, %v1502_v31  ;;  %v6787_v43 = vld [vmem:[#allocation10 + $0x990] ss:$8 sps:$4 sm:$0xff]  }
 0x1ae   :  { %5657 = vmatpush1.bf16.msra.mxu0 %v6769_v40  ;;  %v2190_v19 = vpack.c.bf16 %v2158_v5, %v2158_v5  ;;  %v1484_v40 = vadd.f32 %v1483_v28, %v1482_v30  ;;  %v1617_v17 = vmul.f32 0.125, %v1460_v1  ;;  %v1511_v5 = vrot.slane %v1510_v38, 2  ;;  %v6756_v30 = vld [vmem:[#allocation10 + $0x1c4] ss:$8 sps:$4 sm:$0xff]  }
 0x1af   :  { %5658 = vmatprep.subr.bf16.mxu0 %v6777_v47  ;;  %v1632_v52 = vmul.f32 0.125, %v1550_v0  ;;  %v1661_v47 = vadd.f32 1e-05, %v1629_v23  ;;  %5337 = vmatpush1.bf16.msra.mxu1 %v6742_v14  ;;  %v1270_v28 = vrot.slane %v1269_v16, 2  ;;  %v1289_v23 = vadd.f32 %v1288_v8, %v1287_v34  ;;  %v6754_v14 = vld [vmem:[#allocation10 + $0x1c0] ss:$8 sps:$4 sm:$0xff]  }
 0x1b0   :  { %5676 = vmatprep.mubr.bf16.mxu0 %v2190_v19  ;;  %5338 = vmatprep.subr.bf16.mxu1 %v6750_v10  ;;  %v8074_v0 = vsub.s32 6, %v7819_v13  ;;  %v1621_v50 = vmul.f32 0.125, %v1484_v40  ;;  %v1299_v18 = vadd.f32 %v1298_v6, %v7982_v61  ;;  %v1490_v31 = vadd.f32 %v1489_v29, %v1488_v60  ;;  %v6795_v10 = vld [vmem:[#allocation10 + $0x9a4] ss:$8 sps:$4 sm:$0xff]   ;;  %v6760_v6 = vld [vmem:[#allocation10 + $0x1d0] ss:$8 sps:$4 sm:$0xff]  }
 0x1b1   :  { %v1664_v32 = vadd.f32 1e-05, %v1632_v52  ;;  %v1507_v35 = vrot.slane %v1506_v7, 1  ;;  %v1252_v1 = vrot.slane %v1251_v63, 2  ;;  %v1656_v19 = vadd.f32 1e-05, %v1624_v3 }
 0x1b2   :  { %5659 = vmatpush1.bf16.msra.mxu0 %v6775_v55  ;;  %v1295_v55 = vadd.f32 %v1294_v51, %v1293_v25  ;;  %v1512_v34 = vadd.f32 %v1511_v5, %v1510_v38  ;;  %v6762_v52 = vld [vmem:[#allocation10 + $0x1d4] ss:$8 sps:$4 sm:$0xff]   ;;  %v1649_v13 = vadd.f32 1e-05, %v1617_v17  ;;  %v1271_v8 = vadd.f32 %v1270_v28, %v1269_v16  ;;  %v6768_v51 = vld [vmem:[#allocation10 + $0x1e4] ss:$8 sps:$4 sm:$0xff]  }
 0x1b3   :  { %5660 = vmatprep.subr.bf16.mxu0 %v6783_v4  ;;  %7398 = vrsqrt.f32 %v1664_v32  ;;  %v1655_v4 = vadd.f32 1e-05, %v1623_v42  ;;  %5339 = vmatpush1.bf16.msra.mxu1 %v6748_v49  ;;  %v1290_v25 = vrot.slane %v1289_v23, 1  ;;  %v6793_v42 = vld [vmem:[#allocation10 + $0x9a0] ss:$8 sps:$4 sm:$0xff]   ;;  %v1300_v60 = vrot.slane %v1299_v18, 2 }
 0x1b4   :  { %7400 = vrsqrt.f32 %v1661_v47  ;;  %5340 = vmatprep.subr.bf16.mxu1 %v6756_v30  ;;  %v1296_v40 = vrot.slane %v1295_v55, 1  ;;  %v1774_v47 = vrot.slane %v7827_v41, %v8074_v0  ;;  %v1622_v49 = vmul.f32 0.125, %v1490_v31  ;;  %v6801_v38 = vld [vmem:[#allocation10 + $0x9b4] ss:$8 sps:$4 sm:$0xff]   ;;  %v6766_v17 = vld [vmem:[#allocation10 + $0x1e0] ss:$8 sps:$4 sm:$0xff]  }
 0x1b5   :  { %7402 = vrsqrt.f32 %v1655_v4  ;;  %v1508_v29 = vadd.f32 %v1507_v35, %v1506_v7  ;;  %v1253_v32 = vadd.f32 %v1252_v1, %v1251_v63  ;;  %v1822_v16 = vrot.slane %v7853_v20, %v7833_v46  ;;  %v6799_v7 = vld [vmem:[#allocation10 + $0x9b0] ss:$8 sps:$4 sm:$0xff]   ;;  %v6807_v63 = vld [vmem:[#allocation10 + $0x9c4] ss:$8 sps:$4 sm:$0xff]  }
 0x1b6   :  { %5661 = vmatpush1.bf16.msra.mxu0 %v6781_v24  ;;  %v1653_v24 = vadd.f32 1e-05, %v1621_v50  ;;  %7404 = vrsqrt.f32 %v1656_v19  ;;  %v1310_v3 = vrot.slane %v7984_v22, 4  ;;  %v1272_v5 = vrot.slane %v1271_v8, 1 }
 0x1b7   :  { %5662 = vmatprep.subr.bf16.mxu0 %v6789_v62  ;;  %5341 = vmatpush1.bf16.msra.mxu1 %v6754_v14  ;;  %v1513_v62 = vrot.slane %v1512_v34, 1  ;;  %7406 = vrsqrt.f32 %v1649_v13  ;;  %v1291_v30 = vadd.f32 %v1290_v25, %v1289_v23  ;;  %v1297_v28 = vadd.f32 %v1296_v40, %v1295_v55  ;;  %v6774_v55 = vld [vmem:[#allocation10 + $0x1f4] ss:$8 sps:$4 sm:$0xff]  }
 0x1b8   :  { %5342 = vmatprep.subr.bf16.mxu1 %v6762_v52  ;;  %7408 = vrsqrt.f32 %v1653_v24  ;;  %v1301_v50 = vadd.f32 %v1300_v60, %v1299_v18  ;;  %v1311_v14 = vadd.f32 %v1310_v3, %v7984_v22  ;;  %v1654_v31 = vadd.f32 1e-05, %v1622_v49  ;;  %v6772_v60 = vld [vmem:[#allocation10 + $0x1f0] ss:$8 sps:$4 sm:$0xff]  }
 0x1b9   :  { %v1625_v35 = vmul.f32 0.125, %v1508_v29  ;;  %v1254_v1 = vrot.slane %v1253_v32, 1  ;;  %v1514_v23 = vadd.f32 %v1513_v62, %v1512_v34  ;;  %v1834_v52 = vrot.slane %v7853_v20, %v7856_v9  ;;  %v6805_v29 = vld [vmem:[#allocation10 + $0x9c0] ss:$8 sps:$4 sm:$0xff]  }
 0x1ba   :  { %5663 = vmatpush1.bf16.msra.mxu0 %v6787_v43  ;;  %v1304_v43 = vrot.slane %v7989_v21, 4  ;;  %v1312_v18 = vrot.slane %v1311_v14, 2  ;;  %v1273_v25 = vadd.f32 %v1272_v5, %v1271_v8  ;;  %v1349_v40 = vmul.f32 0.125, %v1291_v30  ;;  %v6780_v30 = vld [vmem:[#allocation10 + $0x204] ss:$8 sps:$4 sm:$0xff]  }
 0x1bb   :  { %5664 = vmatprep.subr.bf16.mxu0 %v6795_v10  ;;  %5343 = vmatpush1.bf16.msra.mxu1 %v6760_v6  ;;  %v1316_v10 = vrot.slane %v7991_v37, 4  ;;  %v1350_v24 = vmul.f32 0.125, %v1297_v28  ;;  %v1302_v6 = vrot.slane %v1301_v50, 1  ;;  %v1657_v62 = vadd.f32 1e-05, %v1625_v35 }
 0x1bc   :  { %5344 = vmatprep.subr.bf16.mxu1 %v6768_v51  ;;  %v1305_v13 = vadd.f32 %v1304_v43, %v7989_v21  ;;  %v1313_v34 = vadd.f32 %v1312_v18, %v1311_v14  ;;  %v1255_v3 = vadd.f32 %v1254_v1, %v1253_v32  ;;  %v6813_v43 = vld [vmem:[#allocation10 + $0x9d4] ss:$8 sps:$4 sm:$0xff]   ;;  %v2141_v5 = vmax.f32 %v8004_v57, 0.0 }
 0x1bd   :  { %v7399_v4 = vpop.eup %7398  ;;  %v2144_v28 = vmax.f32 %v8020_v11, 0.0  ;;  %v1346_v14 = vmul.f32 0.125, %v1273_v25  ;;  %v8096_v35 = vsub.f32 %v7954_v54, %v1349_v40  ;;  %v2034_v11 = vrot.slane %v7903_v59, %v7856_v9 }
 0x1be   :  { %5665 = vmatpush1.bf16.msra.mxu0 %v6793_v42  ;;  %v7401_v19 = vpop.eup %7400  ;;  %v1317_v42 = vadd.f32 %v1316_v10, %v7991_v37  ;;  %v1728_v49 = vmul.f32 %v7399_v4, %v8042_v39  ;;  %v1314_v39 = vrot.slane %v1313_v34, 1  ;;  %v1303_v1 = vadd.f32 %v1302_v6, %v1301_v50  ;;  %v6786_v50 = vld [vmem:[#allocation10 + $0x214] ss:$8 sps:$4 sm:$0xff]  }
 0x1bf   :  { %5666 = vmatprep.subr.bf16.mxu0 %v6801_v38  ;;  %v1306_v38 = vrot.slane %v1305_v13, 2  ;;  %v1725_v51 = vmul.f32 %v7401_v19, %v7969_v56  ;;  %5345 = vmatpush1.bf16.msra.mxu1 %v6766_v17  ;;  %v8093_v4 = vpop.eup %7402  ;;  %v8099_v56 = vsub.f32 %v7962_v36, %v1350_v24  ;;  %v6778_v36 = vld [vmem:[#allocation10 + $0x200] ss:$8 sps:$4 sm:$0xff]   ;;  %v2022_v18 = vrot.slane %v7903_v59, %v7833_v46  ;;  %v6819_v24 = vld [vmem:[#allocation10 + $0x9e4] ss:$8 sps:$4 sm:$0xff]  }
 0x1c0   :  { %v1318_v8 = vrot.slane %v1317_v42, 2  ;;  %5346 = vmatprep.subr.bf16.mxu1 %v6774_v55  ;;  %v8101_v17 = vpop.eup %7404  ;;  %v1928_v57 = vmul.f32 %v1834_v52, %v1728_v49  ;;  %v1626_v55 = vmul.f32 0.125, %v1514_v23  ;;  %7410 = vrsqrt.f32 %v1654_v31 }
 0x1c1   :  { %v7407_v19 = vpop.eup %7406  ;;  %v1925_v54 = vmul.f32 %v1822_v16, %v1725_v51  ;;  %v1343_v52 = vmul.f32 0.125, %v1255_v3  ;;  %v2173_v40 = vpack.c.bf16 %v2141_v5, %v2141_v5  ;;  %v1315_v23 = vadd.f32 %v1314_v39, %v1313_v34  ;;  %v6825_v51 = vld [vmem:[#allocation10 + $0x9f4] ss:$8 sps:$4 sm:$0xff]  }
 0x1c2   :  { %5667 = vmatpush1.bf16.msra.mxu0 %v6799_v7  ;;  %v1307_v7 = vadd.f32 %v1306_v38, %v1305_v13  ;;  %v1319_v32 = vadd.f32 %v1318_v8, %v1317_v42  ;;  %v8110_v25 = vpop.eup %7408  ;;  %v2176_v42 = vpack.c.bf16 %v2144_v28, %v2144_v28  ;;  %v8113_v20 = vsub.f32 %v8400_v44, %v1346_v14  ;;  %v6784_v44 = vld [vmem:[#allocation10 + $0x210] ss:$8 sps:$4 sm:$0xff]   ;;  %v6792_v8 = vld [vmem:[#allocation10 + $0x224] ss:$8 sps:$4 sm:$0xff]  }
 0x1c3   :  { %5668 = vmatprep.subr.bf16.mxu0 %v6807_v63  ;;  %v6811_v63 = vld [vmem:[#allocation10 + $0x9d0] ss:$8 sps:$4 sm:$0xff]   ;;  %5347 = vmatpush1.bf16.msra.mxu1 %v6772_v60  ;;  %v1413_v16 = vmul.f32 %v8096_v35, %v8096_v35  ;;  %v1414_v59 = vmul.f32 %v8099_v56, %v8099_v56  ;;  %v6817_v60 = vld [vmem:[#allocation10 + $0x9e0] ss:$8 sps:$4 sm:$0xff]   ;;  %v2128_v31 = vadd.f32 %v2034_v11, %v1928_v57  ;;  %v1351_v49 = vmul.f32 0.125, %v1303_v1 }
 0x1c4   :  { %v1308_v10 = vrot.slane %v1307_v7, 1  ;;  %v1320_v13 = vrot.slane %v1319_v32, 1  ;;  %5357 = vmatprep.subr.bf16.mxu1 %v6780_v30  ;;  %v1713_v38 = vmul.f32 %v7407_v19, %v7996_v53  ;;  %7412 = vrsqrt.f32 %v1657_v62  ;;  %v6823_v62 = vld [vmem:[#allocation10 + $0x9f0] ss:$8 sps:$4 sm:$0xff]   ;;  %v6790_v11 = vld [vmem:[#allocation10 + $0x220] ss:$8 sps:$4 sm:$0xff]  }
 0x1c5   :  { %v1658_v34 = vadd.f32 1e-05, %v1626_v55  ;;  %v2125_v3 = vadd.f32 %v2022_v18, %v1925_v54  ;;  %v1353_v5 = vmul.f32 0.125, %v1315_v23  ;;  %v1575_v28 = vrot.slane %v1413_v16, 4  ;;  %v8135_v55 = vld [vmem:[#allocation7 + $0x8] sm:$0xff] }
 0x1c6   :  { %5669 = vmatpush1.bf16.msra.mxu0 %v6805_v29  ;;  %5349 = vmatmul.mubr.bf16.vlgmr.msra.gmra.mrb[32].mxu1 %v2173_v40  ;;  %v1309_v29 = vadd.f32 %v1308_v10, %v1307_v7  ;;  %v1321_v6 = vadd.f32 %v1320_v13, %v1319_v32  ;;  %v7442_v7 = vld [vmem:[#allocation8] sm:$0xff]  ;;  %v2160_v14 = vmax.f32 %v2128_v31, 0.0  ;;  %v1410_v32 = vmul.f32 %v8113_v20, %v8113_v20  ;;  %v6796_v23 = vld [vmem:[#allocation10 + $0x230] ss:$8 sps:$4 sm:$0xff]  }
 0x1c7   :  { %5670 = vmatprep.subr.bf16.mxu0 %v6813_v43  ;;  %5358 = vmatpush1.bf16.msra.mxu1 %v6778_v36  ;;  %v8121_v43 = vsub.f32 %v8401_v48, %v1343_v52  ;;  %v1974_v53 = vrot.slane %v7442_v7, %v8074_v0  ;;  %v8127_v48 = vsub.f32 %v7982_v61, %v1351_v49  ;;  %7414 = vrsqrt.f32 %v1658_v34  ;;  %v6831_v10 = vld [vmem:[#allocation10 + $0xa04] ss:$8 sps:$4 sm:$0xff]   ;;  %v6798_v61 = vld [vmem:[#allocation10 + $0x234] ss:$8 sps:$4 sm:$0xff]   ;;  %v6829_v52 = vld [vmem:[#allocation10 + $0xa00] ss:$8 sps:$4 sm:$0xff]  }
 0x1c8   :  { %5389 = vmatprep.mubr.bf16.mxu1 %v2176_v42  ;;  %5359 = vmatprep.subr.bf16.mxu1 %v6786_v50  ;;  %v1352_v30 = vmul.f32 0.125, %v1309_v29  ;;  %v1354_v39 = vmul.f32 0.125, %v1321_v6  ;;  %v1913_v57 = vmul.f32 %v1774_v47, %v1713_v38  ;;  %v2157_v1 = vmax.f32 %v2125_v3, 0.0 }
 0x1c9   :  { %v1407_v54 = vmul.f32 %v8121_v43, %v8121_v43  ;;  %v8140_v36 = vsub.f32 %v7984_v22, %v1353_v5  ;;  %v1719_v41 = vmul.f32 %v8093_v4, %v7966_v26  ;;  %v1798_v47 = vrot.slane %v8135_v55, %v7830_v45  ;;  %v6837_v26 = vld [vmem:[#allocation10 + $0xa14] ss:$8 sps:$4 sm:$0xff]  }
 0x1ca   :  { %5671 = vmatpush1.bf16.msra.mxu0 %v6811_v63  ;;  %v1581_v63 = vrot.slane %v1414_v59, 4  ;;  %v8133_v19 = vsub.f32 %v7989_v21, %v1352_v30  ;;  %v1576_v18 = vadd.f32 %v1575_v28, %v1413_v16  ;;  %v8147_v21 = vsub.f32 %v7991_v37, %v1354_v39  ;;  %v7411_v13 = vpop.eup %7410  ;;  %v6802_v30 = vld [vmem:[#allocation10 + $0x240] ss:$8 sps:$4 sm:$0xff]   ;;  %v6843_v28 = vld [vmem:[#allocation10 + $0xa24] ss:$8 sps:$4 sm:$0xff]  }
 0x1cb   :  { %5672 = vmatprep.subr.bf16.mxu0 %v6819_v24  ;;  %5360 = vmatpush1.bf16.msra.mxu1 %v6784_v44  ;;  %v2192_v40 = vpack.c.bf16 %v2160_v14, %v2160_v14  ;;  %v1557_v50 = vrot.slane %v1410_v32, 4  ;;  %v1415_v22 = vmul.f32 %v8127_v48, %v8127_v48  ;;  %v2189_v42 = vpack.c.bf16 %v2157_v1, %v2157_v1  ;;  %v6835_v44 = vld [vmem:[#allocation10 + $0xa10] ss:$8 sps:$4 sm:$0xff]   ;;  %v8171_v14 = vld [vmem:[#allocation8 + $0x8] sm:$0xff] }
 0x1cc   :  { %5361 = vmatprep.subr.bf16.mxu1 %v6792_v8  ;;  %v1582_v24 = vadd.f32 %v1581_v63, %v1414_v59  ;;  %v1416_v4 = vmul.f32 %v8133_v19, %v8133_v19  ;;  %v8153_v16 = vadd.f32 %v1974_v53, %v1913_v57  ;;  %v1539_v37 = vrot.slane %v1407_v54, 4  ;;  %v6810_v53 = vld [vmem:[#allocation10 + $0x254] ss:$8 sps:$4 sm:$0xff]   ;;  %v6841_v1 = vld [vmem:[#allocation10 + $0xa20] ss:$8 sps:$4 sm:$0xff]  }
 0x1cd   :  { %v1417_v31 = vmul.f32 %v8140_v36, %v8140_v36  ;;  %v1717_v49 = vmul.f32 %v8110_v25, %v8007_v27  ;;  %v1790_v29 = vrot.slane %v8135_v55, %v7833_v46  ;;  %v1577_v6 = vrot.slane %v1576_v18, 2 }
 0x1ce   :  { %5673 = vmatpush1.bf16.msra.mxu0 %v6817_v60  ;;  %v6804_v60 = vld [vmem:[#allocation10 + $0x244] ss:$8 sps:$4 sm:$0xff]   ;;  %v7413_v59 = vpop.eup %7412  ;;  %v1418_v38 = vmul.f32 %v8147_v21, %v8147_v21  ;;  %v1718_v34 = vmul.f32 %v7411_v13, %v8025_v58  ;;  %v1583_v3 = vrot.slane %v1582_v24, 2  ;;  %v1587_v8 = vrot.slane %v1415_v22, 4 }
 0x1cf   :  { %5674 = vmatprep.subr.bf16.mxu0 %v6825_v51  ;;  %5362 = vmatpush1.bf16.msra.mxu1 %v6790_v11  ;;  %v1558_v51 = vadd.f32 %v1557_v50, %v1410_v32  ;;  %v8164_v5 = vmul.f32 %v1798_v47, %v1719_v41  ;;  %v1720_v27 = vmul.f32 %v8101_v17, %v7975_v33  ;;  %v1593_v39 = vrot.slane %v1416_v4, 4  ;;  %v6808_v41 = vld [vmem:[#allocation10 + $0x250] ss:$8 sps:$4 sm:$0xff]   ;;  %v6849_v47 = vld [vmem:[#allocation10 + $0xa34] ss:$8 sps:$4 sm:$0xff]  }
 0x1d0   :  { %5363 = vmatprep.subr.bf16.mxu1 %v6798_v61  ;;  %v1806_v25 = vrot.slane %v8135_v55, %v8074_v0  ;;  %v1721_v58 = vmul.f32 %v7413_v59, %v8038_v15  ;;  %v1540_v7 = vadd.f32 %v1539_v37, %v1407_v54  ;;  %v1794_v32 = vrot.slane %v8135_v55, %v7873_v12 }
 0x1d1   :  { %v7415_v33 = vpop.eup %7414  ;;  %v1917_v17 = vmul.f32 %v1790_v29, %v1717_v49  ;;  %v1578_v63 = vadd.f32 %v1577_v6, %v1576_v18  ;;  %v1605_v57 = vrot.slane %v1418_v38, 4  ;;  %v1994_v11 = vrot.slane %v8171_v14, %v7873_v12 }
 0x1d2   :  { %5675 = vmatpush1.bf16.msra.mxu0 %v6823_v62  ;;  %v1599_v62 = vrot.slane %v1417_v31, 4  ;;  %v1584_v15 = vadd.f32 %v1583_v3, %v1582_v24  ;;  %v1588_v54 = vadd.f32 %v1587_v8, %v1415_v22  ;;  %v1918_v61 = vmul.f32 %v1794_v32, %v1718_v34  ;;  %v6855_v34 = vld [vmem:[#allocation10 + $0xa44] ss:$8 sps:$4 sm:$0xff]  }
 0x1d3   :  { %5685 = vmatprep.subr.bf16.mxu0 %v6831_v10  ;;  %5364 = vmatpush1.bf16.msra.mxu1 %v6796_v23  ;;  %v1559_v10 = vrot.slane %v1558_v51, 2  ;;  %v1594_v13 = vadd.f32 %v1593_v39, %v1416_v4  ;;  %v1802_v18 = vrot.slane %v8135_v55, %v7856_v9  ;;  %v1722_v50 = vmul.f32 %v7415_v33, %v8053_v2  ;;  %v6847_v4 = vld [vmem:[#allocation10 + $0xa30] ss:$8 sps:$4 sm:$0xff]   ;;  %v6814_v2 = vld [vmem:[#allocation10 + $0x260] ss:$8 sps:$4 sm:$0xff]  }
 0x1d4   :  { %5365 = vmatprep.subr.bf16.mxu1 %v6804_v60  ;;  %v1541_v23 = vrot.slane %v1540_v7, 2  ;;  %v1600_v24 = vadd.f32 %v1599_v62, %v1417_v31  ;;  %v1579_v22 = vrot.slane %v1578_v63, 1  ;;  %v8182_v37 = vadd.f32 %v1994_v11, %v1918_v61  ;;  %v8402_v3 = vld [vmem:[#allocation26_spill] sm:$0xff]  ;;  %v8403_v62 = vld [vmem:[#allocation17_spill] sm:$0xff] }
 0x1d5   :  { %5677 = vmatmul.mubr.bf16.vlgmr.msra.gmra.mrb[32].mxu0 %v2189_v42  ;;  %v6816_v42 = vld [vmem:[#allocation10 + $0x264] ss:$8 sps:$4 sm:$0xff]   ;;  %v1560_v59 = vadd.f32 %v1559_v10, %v1558_v51  ;;  %v1589_v49 = vrot.slane %v1588_v54, 2  ;;  %v1920_v29 = vmul.f32 %v1802_v18, %v1720_v27  ;;  %v2002_v6 = vrot.slane %v8171_v14, %v7856_v9  ;;  %v6853_v33 = vld [vmem:[#allocation10 + $0xa40] ss:$8 sps:$4 sm:$0xff]  }
 0x1d6   :  { %5686 = vmatpush1.bf16.msra.mxu0 %v6829_v52  ;;  %5717 = vmatprep.mubr.bf16.mxu0 %v2192_v40  ;;  %v1990_v52 = vrot.slane %v8171_v14, %v7833_v46  ;;  %v1921_v40 = vmul.f32 %v1806_v25, %v1721_v58  ;;  %v1595_v31 = vrot.slane %v1594_v13, 2  ;;  %v1810_v8 = vrot.slane %v8135_v55, %v8402_v3  ;;  %v6822_v25 = vld [vmem:[#allocation10 + $0x274] ss:$8 sps:$4 sm:$0xff]  }
 0x1d7   :  { %5687 = vmatprep.subr.bf16.mxu0 %v6837_v26  ;;  %5366 = vmatpush1.bf16.msra.mxu1 %v6802_v30  ;;  %v1606_v26 = vadd.f32 %v1605_v57, %v1418_v38  ;;  %v1998_v38 = vrot.slane %v8171_v14, %v7830_v45  ;;  %v1601_v51 = vrot.slane %v1600_v24, 2  ;;  %v8192_v30 = vadd.f32 %v2002_v6, %v1920_v29  ;;  %v6861_v10 = vld [vmem:[#allocation10 + $0xa54] ss:$8 sps:$4 sm:$0xff]  }
 0x1d8   :  { %5367 = vmatprep.subr.bf16.mxu1 %v6810_v53  ;;  %v8184_v60 = vadd.f32 %v1990_v52, %v1917_v17  ;;  %v2010_v27 = vrot.slane %v8171_v14, %v8402_v3  ;;  %v1542_v39 = vadd.f32 %v1541_v23, %v1540_v7  ;;  %v1580_v58 = vadd.f32 %v1579_v22, %v1578_v63  ;;  %v6828_v7 = vld [vmem:[#allocation10 + $0x284] ss:$8 sps:$4 sm:$0xff]  }
 0x1d9   :  { %v1607_v53 = vrot.slane %v1606_v26, 2  ;;  %v1184_v32 = vrot.slane %v8403_v62, 4  ;;  %v1590_v17 = vadd.f32 %v1589_v49, %v1588_v54  ;;  %v8200_v57 = vadd.f32 %v1998_v38, %v8164_v5  ;;  %v6834_v49 = vld [vmem:[#allocation10 + $0x294] ss:$8 sps:$4 sm:$0xff]   ;;  %v6832_v38 = vld [vmem:[#allocation10 + $0x290] ss:$8 sps:$4 sm:$0xff]  }
 0x1da   :  { %5688 = vmatpush1.bf16.msra.mxu0 %v6835_v44  ;;  %v1585_v44 = vrot.slane %v1584_v15, 1  ;;  %v1922_v11 = vmul.f32 %v1810_v8, %v1722_v50  ;;  %v1561_v63 = vrot.slane %v1560_v59, 1  ;;  %v1602_v52 = vadd.f32 %v1601_v51, %v1600_v24  ;;  %v6859_v50 = vld [vmem:[#allocation10 + $0xa50] ss:$8 sps:$4 sm:$0xff]   ;;  %v6873_v8 = vld [vmem:[#allocation10 + $0xa74] ss:$8 sps:$4 sm:$0xff]  }
 0x1db   :  { %5689 = vmatprep.subr.bf16.mxu0 %v6843_v28  ;;  %5368 = vmatpush1.bf16.msra.mxu1 %v6808_v41  ;;  %v2006_v28 = vrot.slane %v8171_v14, %v8074_v0  ;;  %v1596_v41 = vadd.f32 %v1595_v31, %v1594_v13  ;;  %v1543_v23 = vrot.slane %v1542_v39, 1  ;;  %v1637_v54 = vmul.f32 0.125, %v1580_v58 }
 0x1dc   :  { %5369 = vmatprep.subr.bf16.mxu1 %v6816_v42  ;;  %v1586_v61 = vadd.f32 %v1585_v44, %v1584_v15  ;;  %v8204_v18 = vadd.f32 %v2010_v27, %v1922_v11  ;;  %v1608_v42 = vadd.f32 %v1607_v53, %v1606_v26  ;;  %v1185_v5 = vadd.f32 %v1184_v32, %v8403_v62  ;;  %v6867_v15 = vld [vmem:[#allocation10 + $0xa64] ss:$8 sps:$4 sm:$0xff]   ;;  %v6865_v26 = vld [vmem:[#allocation10 + $0xa60] ss:$8 sps:$4 sm:$0xff]  }
 0x1dd   :  { %v1591_v22 = vrot.slane %v1590_v17, 1  ;;  %v1562_v29 = vadd.f32 %v1561_v63, %v1560_v59  ;;  %v1603_v24 = vrot.slane %v1602_v52, 1  ;;  %v1544_v6 = vadd.f32 %v1543_v23, %v1542_v39  ;;  %v6840_v27 = vld [vmem:[#allocation10 + $0x2a4] ss:$8 sps:$4 sm:$0xff]   ;;  %v6871_v39 = vld [vmem:[#allocation10 + $0xa70] ss:$8 sps:$4 sm:$0xff]  }
 0x1de   :  { %5690 = vmatpush1.bf16.msra.mxu0 %v6841_v1  ;;  %v6820_v1 = vld [vmem:[#allocation10 + $0x270] ss:$8 sps:$4 sm:$0xff]   ;;  %v1638_v13 = vmul.f32 0.125, %v1586_v61  ;;  %v1186_v44 = vrot.slane %v1185_v5, 2  ;;  %v6838_v11 = vld [vmem:[#allocation10 + $0x2a0] ss:$8 sps:$4 sm:$0xff]  }
 0x1df   :  { %5691 = vmatprep.subr.bf16.mxu0 %v6849_v47  ;;  %5370 = vmatpush1.bf16.msra.mxu1 %v6814_v2  ;;  %v8202_v47 = vadd.f32 %v2006_v28, %v1921_v40  ;;  %v1597_v40 = vrot.slane %v1596_v41, 1  ;;  %v1669_v2 = vadd.f32 1e-05, %v1637_v54  ;;  %v1592_v31 = vadd.f32 %v1591_v22, %v1590_v17  ;;  %v6879_v17 = vld [vmem:[#allocation10 + $0xa84] ss:$8 sps:$4 sm:$0xff]   ;;  %v8404_v23 = vld [vmem:[#allocation21_spill] sm:$0xff] }
 0x1e0   :  { %5371 = vmatprep.subr.bf16.mxu1 %v6822_v25  ;;  %v1670_v25 = vadd.f32 1e-05, %v1638_v13  ;;  %v1634_v28 = vmul.f32 0.125, %v1562_v29  ;;  %v1604_v58 = vadd.f32 %v1603_v24, %v1602_v52  ;;  %v1631_v53 = vmul.f32 0.125, %v1544_v6  ;;  %v6844_v63 = vld [vmem:[#allocation10 + $0x2b0] ss:$8 sps:$4 sm:$0xff]  }
 0x1e1   :  { %v1598_v51 = vadd.f32 %v1597_v40, %v1596_v41  ;;  %7416 = vrsqrt.f32 %v1669_v2  ;;  %v1639_v32 = vmul.f32 0.125, %v1592_v31  ;;  %v1262_v54 = vrot.slane %v8404_v23, 4  ;;  %v6852_v40 = vld [vmem:[#allocation10 + $0x2c4] ss:$8 sps:$4 sm:$0xff]   ;;  %v6883_v6 = vld [vmem:[#allocation10 + $0xa90] ss:$8 sps:$4 sm:$0xff]  }
 0x1e2   :  { %5692 = vmatpush1.bf16.msra.mxu0 %v6847_v4  ;;  %v6826_v4 = vld [vmem:[#allocation10 + $0x280] ss:$8 sps:$4 sm:$0xff]   ;;  %7418 = vrsqrt.f32 %v1670_v25  ;;  %v1666_v61 = vadd.f32 1e-05, %v1634_v28  ;;  %v1641_v41 = vmul.f32 0.125, %v1604_v58 }
 0x1e3   :  { %5693 = vmatprep.subr.bf16.mxu0 %v6855_v34  ;;  %5372 = vmatpush1.bf16.msra.mxu1 %v6820_v1  ;;  %v1609_v34 = vrot.slane %v1608_v42, 1  ;;  %v1640_v1 = vmul.f32 0.125, %v1598_v51  ;;  %v1263_v24 = vadd.f32 %v1262_v54, %v8404_v23  ;;  %v6889_v58 = vld [vmem:[#allocation10 + $0xaa0] ss:$8 sps:$4 sm:$0xff]  }
 0x1e4   :  { %5373 = vmatprep.subr.bf16.mxu1 %v6828_v7  ;;  %v1663_v7 = vadd.f32 1e-05, %v1631_v53  ;;  %7420 = vrsqrt.f32 %v1666_v61  ;;  %v6895_v61 = vld [vmem:[#allocation10 + $0xab0] ss:$8 sps:$4 sm:$0xff]  }
 0x1e5   :  { %v1610_v59 = vadd.f32 %v1609_v34, %v1608_v42  ;;  %v6877_v42 = vld [vmem:[#allocation10 + $0xa80] ss:$8 sps:$4 sm:$0xff]   ;;  %v1672_v13 = vadd.f32 1e-05, %v1640_v1  ;;  %v1264_v51 = vrot.slane %v1263_v24, 2 }
 0x1e6   :  { %5694 = vmatpush1.bf16.msra.mxu0 %v6853_v33  ;;  %v1187_v33 = vadd.f32 %v1186_v44, %v1185_v5  ;;  %v8405_v5 = vld [vmem:[#allocation24_spill] sm:$0xff]  ;;  %7422 = vrsqrt.f32 %v1663_v7  ;;  %v6850_v44 = vld [vmem:[#allocation10 + $0x2c0] ss:$8 sps:$4 sm:$0xff]  }
 0x1e7   :  { %5695 = vmatprep.subr.bf16.mxu0 %v6861_v10  ;;  %5374 = vmatpush1.bf16.msra.mxu1 %v6826_v4  ;;  %v6846_v10 = vld [vmem:[#allocation10 + $0x2b4] ss:$8 sps:$4 sm:$0xff]   ;;  %v1642_v52 = vmul.f32 0.125, %v1610_v59  ;;  %v1280_v4 = vrot.slane %v8405_v5, 4  ;;  %v6856_v59 = vld [vmem:[#allocation10 + $0x2d0] ss:$8 sps:$4 sm:$0xff]  }
 0x1e8   :  { %5375 = vmatprep.subr.bf16.mxu1 %v6834_v49  ;;  %v1188_v22 = vrot.slane %v1187_v33, 1  ;;  %v1673_v49 = vadd.f32 1e-05, %v1641_v41 }
 0x1e9   :  { %v1674_v29 = vadd.f32 1e-05, %v1642_v52  ;;  %v1281_v31 = vadd.f32 %v1280_v4, %v8405_v5  ;;  %v6862_v52 = vld [vmem:[#allocation10 + $0x2e0] ss:$8 sps:$4 sm:$0xff]  }
 0x1ea   :  { %5696 = vmatpush1.bf16.msra.mxu0 %v6859_v50  ;;  %v1671_v50 = vadd.f32 1e-05, %v1639_v32  ;;  %v1189_v34 = vadd.f32 %v1188_v22, %v1187_v33  ;;  %v6897_v32 = vld [vmem:[#allocation10 + $0xab4] ss:$8 sps:$4 sm:$0xff]   ;;  %v6864_v33 = vld [vmem:[#allocation10 + $0x2e4] ss:$8 sps:$4 sm:$0xff]  }
 0x1eb   :  { %5697 = vmatprep.subr.bf16.mxu0 %v6867_v15  ;;  %5376 = vmatpush1.bf16.msra.mxu1 %v6832_v38  ;;  %v6885_v15 = vld [vmem:[#allocation10 + $0xa94] ss:$8 sps:$4 sm:$0xff]   ;;  %v7417_v2 = vpop.eup %7416  ;;  %v6891_v38 = vld [vmem:[#allocation10 + $0xaa4] ss:$8 sps:$4 sm:$0xff]  }
 0x1ec   :  { %5377 = vmatprep.subr.bf16.mxu1 %v6840_v27  ;;  %7424 = vrsqrt.f32 %v1671_v50  ;;  %v7419_v25 = vpop.eup %7418  ;;  %v1733_v27 = vmul.f32 %v7417_v2, %v8096_v35  ;;  %v1332_v53 = vmul.f32 0.125, %v1189_v34  ;;  %v6870_v50 = vld [vmem:[#allocation10 + $0x2f4] ss:$8 sps:$4 sm:$0xff]   ;;  %v6901_v34 = vld [vmem:[#allocation10 + $0xac0] ss:$8 sps:$4 sm:$0xff]  }
 0x1ed   :  { %7426 = vrsqrt.f32 %v1672_v13 }
 0x1ee   :  { %5698 = vmatpush1.bf16.msra.mxu0 %v6865_v26  ;;  %v8210_v26 = vld [vmem:[#allocation7 + $0x18] sm:$0xff]  ;;  %7428 = vrsqrt.f32 %v1673_v49  ;;  %v7421_v1 = vpop.eup %7420 }
 0x1ef   :  { %5699 = vmatprep.subr.bf16.mxu0 %v6873_v8  ;;  %5378 = vmatpush1.bf16.msra.mxu1 %v6838_v11  ;;  %v6858_v8 = vld [vmem:[#allocation10 + $0x2d4] ss:$8 sps:$4 sm:$0xff]   ;;  %7430 = vrsqrt.f32 %v1674_v29  ;;  %v1854_v28 = vrot.slane %v8210_v26, %v7833_v46  ;;  %v1734_v11 = vmul.f32 %v7419_v25, %v8099_v56  ;;  %v1858_v41 = vrot.slane %v8210_v26, %v7873_v12 }
 0x1f0   :  { %5379 = vmatprep.subr.bf16.mxu1 %v6846_v10  ;;  %v1265_v10 = vadd.f32 %v1264_v51, %v1263_v24  ;;  %v7423_v7 = vpop.eup %7422  ;;  %v6909_v51 = vld [vmem:[#allocation10 + $0xad4] ss:$8 sps:$4 sm:$0xff]  }
 0x1f1   :  { %v1933_v35 = vmul.f32 %v1854_v28, %v1733_v27  ;;  %v1934_v22 = vmul.f32 %v1858_v41, %v1734_v11  ;;  %v6876_v27 = vld [vmem:[#allocation10 + $0x304] ss:$8 sps:$4 sm:$0xff]   ;;  %v8253_v11 = vld [vmem:[#allocation8 + $0x10] sm:$0xff] }
 0x1f2   :  { %5700 = vmatpush1.bf16.msra.mxu0 %v6871_v39  ;;  %v1282_v39 = vrot.slane %v1281_v31, 2  ;;  %v1266_v24 = vrot.slane %v1265_v10, 1  ;;  %v8407_v28 = vld [vmem:[#allocation27_spill] sm:$0xff]  ;;  %v6907_v41 = vld [vmem:[#allocation10 + $0xad0] ss:$8 sps:$4 sm:$0xff]  }
 0x1f3   :  { %5701 = vmatprep.subr.bf16.mxu0 %v6879_v17  ;;  %5380 = vmatpush1.bf16.msra.mxu1 %v6844_v63  ;;  %v8217_v17 = vld [vmem:[#allocation8 + $0x18] sm:$0xff]  ;;  %v8222_v63 = vsub.f32 %v8403_v62, %v1332_v53  ;;  %v8229_v62 = vld [vmem:[#allocation7 + $0x10] sm:$0xff] }
 0x1f4   :  { %5381 = vmatprep.subr.bf16.mxu1 %v6852_v40  ;;  %v1283_v54 = vadd.f32 %v1282_v39, %v1281_v31  ;;  %v2058_v4 = vrot.slane %v8217_v17, %v7873_v12  ;;  %v1730_v40 = vmul.f32 %v7421_v1, %v8113_v20  ;;  %v1842_v49 = vrot.slane %v8229_v62, %v8402_v3 }
 0x1f5   :  { %v1727_v20 = vmul.f32 %v7423_v7, %v8121_v43  ;;  %v2042_v1 = vrot.slane %v8253_v11, %v8402_v3 }
 0x1f6   :  { %5702 = vmatpush1.bf16.msra.mxu0 %v6877_v42  ;;  %v6903_v42 = vld [vmem:[#allocation10 + $0xac4] ss:$8 sps:$4 sm:$0xff]   ;;  %v7425_v56 = vpop.eup %7424  ;;  %v1284_v25 = vrot.slane %v1283_v54, 1 }
 0x1f7   :  { %5703 = vmatprep.subr.bf16.mxu0 %v6885_v15  ;;  %5382 = vmatpush1.bf16.msra.mxu1 %v6850_v44  ;;  %v2054_v15 = vrot.slane %v8217_v17, %v7833_v46  ;;  %v7427_v13 = vpop.eup %7426  ;;  %v8234_v44 = vadd.f32 %v2058_v4, %v1934_v22  ;;  %v8240_v46 = vmul.f32 %v8222_v63, %v8222_v63 }
 0x1f8   :  { %5383 = vmatprep.subr.bf16.mxu1 %v6858_v8  ;;  %v7429_v29 = vpop.eup %7428  ;;  %v6868_v8 = vld [vmem:[#allocation10 + $0x2f0] ss:$8 sps:$4 sm:$0xff]   ;;  %v1735_v53 = vmul.f32 %v7425_v56, %v8127_v48  ;;  %v1736_v39 = vmul.f32 %v7427_v13, %v8133_v19  ;;  %v1866_v19 = vrot.slane %v8210_v26, %v7856_v9  ;;  %v6882_v56 = vld [vmem:[#allocation10 + $0x314] ss:$8 sps:$4 sm:$0xff]   ;;  %v1874_v4 = vrot.slane %v8210_v26, %v8402_v3 }
 0x1f9   :  { %v8236_v12 = vadd.f32 %v2054_v15, %v1933_v35  ;;  %v7431_v31 = vpop.eup %7430  ;;  %v1737_v43 = vmul.f32 %v7429_v29, %v8140_v36  ;;  %v1267_v35 = vadd.f32 %v1266_v24, %v1265_v10  ;;  %v6874_v36 = vld [vmem:[#allocation10 + $0x300] ss:$8 sps:$4 sm:$0xff]   ;;  %v6915_v10 = vld [vmem:[#allocation10 + $0xae4] ss:$8 sps:$4 sm:$0xff]   ;;  %v2062_v24 = vrot.slane %v8217_v17, %v7830_v45 }
 0x1fa   :  { %5704 = vmatpush1.bf16.msra.mxu0 %v6883_v6  ;;  %v8406_v6 = vld [vmem:[#allocation25_spill] sm:$0xff]  ;;  %v1738_v48 = vmul.f32 %v7431_v31, %v8147_v21  ;;  %v1936_v22 = vmul.f32 %v1866_v19, %v1736_v39  ;;  %v2066_v21 = vrot.slane %v8217_v17, %v7856_v9 }
 0x1fb   :  { %5705 = vmatprep.subr.bf16.mxu0 %v6891_v38  ;;  %5384 = vmatpush1.bf16.msra.mxu1 %v6856_v59  ;;  %v2143_v2 = vmax.f32 %v8406_v6, 0.0  ;;  %v1830_v38 = vrot.slane %v8229_v62, %v7830_v45  ;;  %v1862_v59 = vrot.slane %v8210_v26, %v7830_v45  ;;  %v6880_v9 = vld [vmem:[#allocation10 + $0x310] ss:$8 sps:$4 sm:$0xff]  }
 0x1fc   :  { %5385 = vmatprep.subr.bf16.mxu1 %v6864_v33  ;;  %v1930_v33 = vmul.f32 %v1842_v49, %v1730_v40  ;;  %v1345_v49 = vmul.f32 0.125, %v1267_v35  ;;  %v8266_v29 = vadd.f32 %v2066_v21, %v1936_v22  ;;  %v1938_v6 = vmul.f32 %v1874_v4, %v1738_v48  ;;  %v6937_v21 = vld [vmem:[#allocation10 + $0xb20] ss:$8 sps:$4 sm:$0xff]  }
 0x1fd   :  { %v1927_v7 = vmul.f32 %v1830_v38, %v1727_v20  ;;  %v2074_v20 = vrot.slane %v8217_v17, %v8402_v3  ;;  %v2070_v38 = vrot.slane %v8217_v17, %v8074_v0 }
 0x1fe   :  { %5706 = vmatpush1.bf16.msra.mxu0 %v6889_v58  ;;  %v2146_v58 = vmax.f32 %v8407_v28, 0.0  ;;  %v2130_v40 = vadd.f32 %v2042_v1, %v1930_v33  ;;  %v8282_v28 = vsub.f32 %v8404_v23, %v1345_v49  ;;  %v6894_v33 = vld [vmem:[#allocation10 + $0x334] ss:$8 sps:$4 sm:$0xff]   ;;  %v6925_v23 = vld [vmem:[#allocation10 + $0xb00] ss:$8 sps:$4 sm:$0xff]  }
 0x1ff   :  { %5707 = vmatprep.subr.bf16.mxu0 %v6897_v32  ;;  %5386 = vmatpush1.bf16.msra.mxu1 %v6862_v52  ;;  %v1870_v32 = vrot.slane %v8210_v26, %v8074_v0  ;;  %v1285_v52 = vadd.f32 %v1284_v25, %v1283_v54  ;;  %v6913_v54 = vld [vmem:[#allocation10 + $0xae0] ss:$8 sps:$4 sm:$0xff]   ;;  %v6888_v25 = vld [vmem:[#allocation10 + $0x324] ss:$8 sps:$4 sm:$0xff]  }
 0x200   :  { %5387 = vmatprep.subr.bf16.mxu1 %v6870_v50  ;;  %v1935_v50 = vmul.f32 %v1862_v59, %v1735_v53  ;;  %v2178_v15 = vpack.c.bf16 %v2146_v58, %v2146_v58  ;;  %v6919_v58 = vld [vmem:[#allocation10 + $0xaf0] ss:$8 sps:$4 sm:$0xff]   ;;  %v2162_v3 = vmax.f32 %v2130_v40, 0.0  ;;  %v6886_v59 = vld [vmem:[#allocation10 + $0x320] ss:$8 sps:$4 sm:$0xff]   ;;  %v1409_v1 = vmul.f32 %v8282_v28, %v8282_v28 }
 0x201   :  { %v1937_v13 = vmul.f32 %v1870_v32, %v1737_v43  ;;  %v6927_v43 = vld [vmem:[#allocation10 + $0xb04] ss:$8 sps:$4 sm:$0xff]  }
 0x202   :  { %5708 = vmatpush1.bf16.msra.mxu0 %v6895_v61  ;;  %v2175_v61 = vpack.c.bf16 %v2143_v2, %v2143_v2  ;;  %v1348_v2 = vmul.f32 0.125, %v1285_v52  ;;  %v2194_v35 = vpack.c.bf16 %v2162_v3, %v2162_v3  ;;  %v6912_v49 = vld [vmem:[#allocation10 + $0x364] ss:$8 sps:$4 sm:$0xff]  }
 0x203   :  { %5709 = vmatprep.subr.bf16.mxu0 %v6903_v42  ;;  %5388 = vmatpush1.bf16.msra.mxu1 %v6868_v8  ;;  %v2030_v42 = vrot.slane %v8253_v11, %v7830_v45  ;;  %v1473_v8 = vrot.slane %v8240_v46, 4  ;;  %v8277_v45 = vadd.f32 %v2074_v20, %v1938_v6 }
 0x204   :  { %5398 = vmatprep.subr.bf16.mxu1 %v6876_v27  ;;  %v8279_v27 = vadd.f32 %v2070_v38, %v1937_v13  ;;  %v8285_v53 = vsub.f32 %v8405_v5, %v1348_v2  ;;  %v6892_v5 = vld [vmem:[#allocation10 + $0x330] ss:$8 sps:$4 sm:$0xff]   ;;  %v6945_v13 = vld [vmem:[#allocation10 + $0xb34] ss:$8 sps:$4 sm:$0xff]   ;;  %v6910_v2 = vld [vmem:[#allocation10 + $0x360] ss:$8 sps:$4 sm:$0xff]  }
 0x205   :  { %v2127_v31 = vadd.f32 %v2030_v42, %v1927_v7  ;;  %v1474_v32 = vadd.f32 %v1473_v8, %v8240_v46  ;;  %v6900_v7 = vld [vmem:[#allocation10 + $0x344] ss:$8 sps:$4 sm:$0xff]   ;;  %v1551_v46 = vrot.slane %v1409_v1, 4  ;;  %v6898_v42 = vld [vmem:[#allocation10 + $0x340] ss:$8 sps:$4 sm:$0xff]  }
 0x206   :  { %5710 = vmatpush1.bf16.msra.mxu0 %v6901_v34  ;;  %5390 = vmatmul.mubr.bf16.vlgmr.msra.gmra.mrb[32].mxu1 %v2175_v61  ;;  %v6921_v34 = vld [vmem:[#allocation10 + $0xaf4] ss:$8 sps:$4 sm:$0xff]   ;;  %v1412_v61 = vmul.f32 %v8285_v53, %v8285_v53  ;;  %v6949_v38 = vld [vmem:[#allocation10 + $0xb40] ss:$8 sps:$4 sm:$0xff]  }
 0x207   :  { %5711 = vmatprep.subr.bf16.mxu0 %v6909_v51  ;;  %5399 = vmatpush1.bf16.msra.mxu1 %v6874_v36  ;;  %v8275_v51 = vadd.f32 %v2062_v24, %v1935_v50  ;;  %v2159_v39 = vmax.f32 %v2127_v31, 0.0  ;;  %v1475_v19 = vrot.slane %v1474_v32, 2  ;;  %v6931_v36 = vld [vmem:[#allocation10 + $0xb10] ss:$8 sps:$4 sm:$0xff]   ;;  %v1552_v22 = vadd.f32 %v1551_v46, %v1409_v1  ;;  %v6918_v31 = vld [vmem:[#allocation10 + $0x374] ss:$8 sps:$4 sm:$0xff]  }
 0x208   :  { %5430 = vmatprep.mubr.bf16.mxu1 %v2178_v15  ;;  %5400 = vmatprep.subr.bf16.mxu1 %v6882_v56  ;;  %v1569_v52 = vrot.slane %v1412_v61, 4  ;;  %v6939_v56 = vld [vmem:[#allocation10 + $0xb24] ss:$8 sps:$4 sm:$0xff]   ;;  %v6904_v15 = vld [vmem:[#allocation10 + $0x350] ss:$8 sps:$4 sm:$0xff]  }
 0x209   :  { %v2191_v48 = vpack.c.bf16 %v2159_v39, %v2159_v39  ;;  %v1476_v50 = vadd.f32 %v1475_v19, %v1474_v32  ;;  %v6943_v24 = vld [vmem:[#allocation10 + $0xb30] ss:$8 sps:$4 sm:$0xff]  }
 0x20a   :  { %5712 = vmatpush1.bf16.msra.mxu0 %v6907_v41  ;;  %v6933_v41 = vld [vmem:[#allocation10 + $0xb14] ss:$8 sps:$4 sm:$0xff]   ;;  %v1570_v4 = vadd.f32 %v1569_v52, %v1412_v61  ;;  %v6928_v46 = vld [vmem:[#allocation10 + $0x390] ss:$8 sps:$4 sm:$0xff]   ;;  %v6936_v52 = vld [vmem:[#allocation10 + $0x3a4] ss:$8 sps:$4 sm:$0xff]  }
 0x20b   :  { %5713 = vmatprep.subr.bf16.mxu0 %v6915_v10  ;;  %5401 = vmatpush1.bf16.msra.mxu1 %v6880_v9  ;;  %v6906_v10 = vld [vmem:[#allocation10 + $0x354] ss:$8 sps:$4 sm:$0xff]   ;;  %v1477_v40 = vrot.slane %v1476_v50, 1  ;;  %v6951_v9 = vld [vmem:[#allocation10 + $0xb44] ss:$8 sps:$4 sm:$0xff]  }
 0x20c   :  { %5402 = vmatprep.subr.bf16.mxu1 %v6888_v25  ;;  %v1571_v6 = vrot.slane %v1570_v4, 2  ;;  %v6916_v25 = vld [vmem:[#allocation10 + $0x370] ss:$8 sps:$4 sm:$0xff]  }
 0x20d   :  { %v8408_v32 = vld [vmem:[#allocation16_spill] sm:$0xff] }
 0x20e   :  { %5714 = vmatpush1.bf16.msra.mxu0 %v6913_v54  ;;  %v1553_v54 = vrot.slane %v1552_v22, 2  ;;  %v1572_v8 = vadd.f32 %v1571_v6, %v1570_v4  ;;  %v6942_v4 = vld [vmem:[#allocation10 + $0x3b4] ss:$8 sps:$4 sm:$0xff]   ;;  %v6940_v6 = vld [vmem:[#allocation10 + $0x3b0] ss:$8 sps:$4 sm:$0xff]  }
 0x20f   :  { %5715 = vmatprep.subr.bf16.mxu0 %v6921_v34  ;;  %5403 = vmatpush1.bf16.msra.mxu1 %v6886_v59  ;;  %v1478_v34 = vadd.f32 %v1477_v40, %v1476_v50  ;;  %v6924_v59 = vld [vmem:[#allocation10 + $0x384] ss:$8 sps:$4 sm:$0xff]  }
 0x210   :  { %5404 = vmatprep.subr.bf16.mxu1 %v6894_v33  ;;  %v1554_v20 = vadd.f32 %v1553_v54, %v1552_v22  ;;  %v1178_v33 = vrot.slane %v8408_v32, 4  ;;  %v1573_v1 = vrot.slane %v1572_v8, 1  ;;  %v6934_v22 = vld [vmem:[#allocation10 + $0x3a0] ss:$8 sps:$4 sm:$0xff]  }
 0x211   :  { %v1620_v3 = vmul.f32 0.125, %v1478_v34 }
 0x212   :  { %5716 = vmatpush1.bf16.msra.mxu0 %v6919_v58  ;;  %v6957_v58 = vld [vmem:[#allocation10 + $0xb54] ss:$8 sps:$4 sm:$0xff]   ;;  %v1555_v39 = vrot.slane %v1554_v20, 1  ;;  %v1179_v19 = vadd.f32 %v1178_v33, %v8408_v32  ;;  %v6985_v33 = vld [vmem:[#allocation10 + $0xba0] ss:$8 sps:$4 sm:$0xff]  }
 0x213   :  { %5726 = vmatprep.subr.bf16.mxu0 %v6927_v43  ;;  %5405 = vmatpush1.bf16.msra.mxu1 %v6892_v5  ;;  %v6955_v43 = vld [vmem:[#allocation10 + $0xb50] ss:$8 sps:$4 sm:$0xff]   ;;  %v1652_v61 = vadd.f32 1e-05, %v1620_v3  ;;  %v6930_v5 = vld [vmem:[#allocation10 + $0x394] ss:$8 sps:$4 sm:$0xff]  }
 0x214   :  { %5406 = vmatprep.subr.bf16.mxu1 %v6900_v7  ;;  %v1574_v7 = vadd.f32 %v1573_v1, %v1572_v8  ;;  %v1180_v50 = vrot.slane %v1179_v19, 2  ;;  %v6946_v8 = vld [vmem:[#allocation10 + $0x3c0] ss:$8 sps:$4 sm:$0xff]  }
 0x215   :  { %5718 = vmatmul.mubr.bf16.vlgmr.msra.gmra.mrb[32].mxu0 %v2191_v48  ;;  %v1556_v48 = vadd.f32 %v1555_v39, %v1554_v20  ;;  %7432 = vrsqrt.f32 %v1652_v61  ;;  %v6979_v20 = vld [vmem:[#allocation10 + $0xb90] ss:$8 sps:$4 sm:$0xff]   ;;  %v6960_v61 = vld [vmem:[#allocation10 + $0x3e4] ss:$8 sps:$4 sm:$0xff]  }
 0x216   :  { %5727 = vmatpush1.bf16.msra.mxu0 %v6925_v23  ;;  %5758 = vmatprep.mubr.bf16.mxu0 %v2194_v35  ;;  %v6922_v23 = vld [vmem:[#allocation10 + $0x380] ss:$8 sps:$4 sm:$0xff]   ;;  %v6963_v35 = vld [vmem:[#allocation10 + $0xb64] ss:$8 sps:$4 sm:$0xff]   ;;  %v1181_v54 = vadd.f32 %v1180_v50, %v1179_v19 }
 0x217   :  { %5728 = vmatprep.subr.bf16.mxu0 %v6933_v41  ;;  %5407 = vmatpush1.bf16.msra.mxu1 %v6898_v42  ;;  %v6961_v41 = vld [vmem:[#allocation10 + $0xb60] ss:$8 sps:$4 sm:$0xff]   ;;  %v1633_v42 = vmul.f32 0.125, %v1556_v48 }
 0x218   :  { %5408 = vmatprep.subr.bf16.mxu1 %v6906_v10  ;;  %v1636_v10 = vmul.f32 0.125, %v1574_v7  ;;  %v6999_v7 = vld [vmem:[#allocation10 + $0xbc4] ss:$8 sps:$4 sm:$0xff]   ;;  %v6997_v50 = vld [vmem:[#allocation10 + $0xbc0] ss:$8 sps:$4 sm:$0xff]  }
 0x21a   :  { %5729 = vmatpush1.bf16.msra.mxu0 %v6931_v36  ;;  %v6969_v36 = vld [vmem:[#allocation10 + $0xb74] ss:$8 sps:$4 sm:$0xff]  }
 0x21b   :  { %5730 = vmatprep.subr.bf16.mxu0 %v6939_v56  ;;  %5409 = vmatpush1.bf16.msra.mxu1 %v6904_v15  ;;  %v6967_v56 = vld [vmem:[#allocation10 + $0xb70] ss:$8 sps:$4 sm:$0xff]   ;;  %v1665_v15 = vadd.f32 1e-05, %v1633_v42 }
 0x21c   :  { %5410 = vmatprep.subr.bf16.mxu1 %v6912_v49  ;;  %v6973_v49 = vld [vmem:[#allocation10 + $0xb80] ss:$8 sps:$4 sm:$0xff]  }
 0x21d   :  { %7434 = vrsqrt.f32 %v1665_v15 }
 0x21e   :  { %5731 = vmatpush1.bf16.msra.mxu0 %v6937_v21  ;;  %v6975_v21 = vld [vmem:[#allocation10 + $0xb84] ss:$8 sps:$4 sm:$0xff]  }
 0x21f   :  { %5732 = vmatprep.subr.bf16.mxu0 %v6945_v13  ;;  %5411 = vmatpush1.bf16.msra.mxu1 %v6910_v2  ;;  %v8409_v13 = vld [vmem:[#allocation23_spill] sm:$0xff]  ;;  %v6981_v2 = vld [vmem:[#allocation10 + $0xb94] ss:$8 sps:$4 sm:$0xff]   ;;  %v7433_v34 = vpop.eup %7432 }
 0x220   :  { %5412 = vmatprep.subr.bf16.mxu1 %v6918_v31  ;;  %v1274_v40 = vrot.slane %v8409_v13, 4  ;;  %v1716_v3 = vmul.f32 %v7433_v34, %v8222_v63  ;;  %v6991_v63 = vld [vmem:[#allocation10 + $0xbb0] ss:$8 sps:$4 sm:$0xff]   ;;  %v7011_v34 = vld [vmem:[#allocation10 + $0xbe4] ss:$8 sps:$4 sm:$0xff]  }
 0x222   :  { %5733 = vmatpush1.bf16.msra.mxu0 %v6943_v24  ;;  %v1668_v24 = vadd.f32 1e-05, %v1636_v10  ;;  %v1275_v31 = vadd.f32 %v1274_v40, %v8409_v13  ;;  %v2145_v40 = vmax.f32 %v8153_v16, 0.0  ;;  %v6978_v16 = vld [vmem:[#allocation10 + $0x414] ss:$8 sps:$4 sm:$0xff]  }
 0x223   :  { %5734 = vmatprep.subr.bf16.mxu0 %v6951_v9  ;;  %5413 = vmatpush1.bf16.msra.mxu1 %v6916_v25  ;;  %v6948_v9 = vld [vmem:[#allocation10 + $0x3c4] ss:$8 sps:$4 sm:$0xff]  }
 0x224   :  { %5414 = vmatprep.subr.bf16.mxu1 %v6924_v59  ;;  %7436 = vrsqrt.f32 %v1668_v24  ;;  %v6987_v25 = vld [vmem:[#allocation10 + $0xba4] ss:$8 sps:$4 sm:$0xff]   ;;  %v8410_v59 = vld [vmem:[#allocation20_spill] sm:$0xff] }
 0x225   :  { %v1786_v39 = vrot.slane %v8135_v55, %v8410_v59  ;;  %v1986_v48 = vrot.slane %v8171_v14, %v8410_v59  ;;  %v6958_v55 = vld [vmem:[#allocation10 + $0x3e0] ss:$8 sps:$4 sm:$0xff]  }
 0x226   :  { %5735 = vmatpush1.bf16.msra.mxu0 %v6949_v38  ;;  %v1182_v38 = vrot.slane %v1181_v54, 1 }
 0x227   :  { %5736 = vmatprep.subr.bf16.mxu0 %v6957_v58  ;;  %5415 = vmatpush1.bf16.msra.mxu1 %v6922_v23  ;;  %v6954_v58 = vld [vmem:[#allocation10 + $0x3d4] ss:$8 sps:$4 sm:$0xff]   ;;  %v6952_v23 = vld [vmem:[#allocation10 + $0x3d0] ss:$8 sps:$4 sm:$0xff]  }
 0x228   :  { %5416 = vmatprep.subr.bf16.mxu1 %v6930_v5  ;;  %v1183_v1 = vadd.f32 %v1182_v38, %v1181_v54  ;;  %v1916_v5 = vmul.f32 %v1786_v39, %v1716_v3  ;;  %v1850_v54 = vrot.slane %v8210_v26, %v8410_v59  ;;  %v6976_v3 = vld [vmem:[#allocation10 + $0x410] ss:$8 sps:$4 sm:$0xff]   ;;  %v7017_v39 = vld [vmem:[#allocation10 + $0xbf4] ss:$8 sps:$4 sm:$0xff]  }
 0x22a   :  { %5737 = vmatpush1.bf16.msra.mxu0 %v6955_v43  ;;  %v1276_v43 = vrot.slane %v1275_v31, 2  ;;  %v1331_v19 = vmul.f32 0.125, %v1183_v1  ;;  %v2116_v42 = vadd.f32 %v1986_v48, %v1916_v5  ;;  %v6990_v5 = vld [vmem:[#allocation10 + $0x434] ss:$8 sps:$4 sm:$0xff]  }
 0x22b   :  { %5738 = vmatprep.subr.bf16.mxu0 %v6963_v35  ;;  %5417 = vmatpush1.bf16.msra.mxu1 %v6928_v46  ;;  %v6993_v35 = vld [vmem:[#allocation10 + $0xbb4] ss:$8 sps:$4 sm:$0xff]   ;;  %v7435_v46 = vpop.eup %7434 }
 0x22c   :  { %5418 = vmatprep.subr.bf16.mxu1 %v6936_v52  ;;  %v8302_v10 = vsub.f32 %v8408_v32, %v1331_v19  ;;  %v1729_v14 = vmul.f32 %v7435_v46, %v8282_v28  ;;  %v2148_v32 = vmax.f32 %v2116_v42, 0.0  ;;  %v7003_v28 = vld [vmem:[#allocation10 + $0xbd0] ss:$8 sps:$4 sm:$0xff]   ;;  %v6996_v46 = vld [vmem:[#allocation10 + $0x444] ss:$8 sps:$4 sm:$0xff]  }
 0x22d   :  { %v7027_v42 = vld [vmem:[#allocation10 + $0xc10] ss:$8 sps:$4 sm:$0xff]  }
 0x22e   :  { %5739 = vmatpush1.bf16.msra.mxu0 %v6961_v41  ;;  %v1277_v41 = vadd.f32 %v1276_v43, %v1275_v31  ;;  %v7437_v52 = vpop.eup %7436  ;;  %v2180_v38 = vpack.c.bf16 %v2148_v32, %v2148_v32 }
 0x22f   :  { %5740 = vmatprep.subr.bf16.mxu0 %v6969_v36  ;;  %5419 = vmatpush1.bf16.msra.mxu1 %v6934_v22  ;;  %v6966_v36 = vld [vmem:[#allocation10 + $0x3f4] ss:$8 sps:$4 sm:$0xff]   ;;  %v1838_v22 = vrot.slane %v8229_v62, %v8074_v0  ;;  %v1732_v15 = vmul.f32 %v7437_v52, %v8285_v53  ;;  %v1395_v62 = vmul.f32 %v8302_v10, %v8302_v10 }
 0x230   :  { %5420 = vmatprep.subr.bf16.mxu1 %v6942_v4  ;;  %v7005_v4 = vld [vmem:[#allocation10 + $0xbd4] ss:$8 sps:$4 sm:$0xff]   ;;  %v2038_v53 = vrot.slane %v8253_v11, %v8074_v0  ;;  %v6984_v0 = vld [vmem:[#allocation10 + $0x424] ss:$8 sps:$4 sm:$0xff]  }
 0x231   :  { %v1932_v31 = vmul.f32 %v1850_v54, %v1732_v15  ;;  %v7008_v54 = vld [vmem:[#allocation10 + $0x464] ss:$8 sps:$4 sm:$0xff]  }
 0x232   :  { %5741 = vmatpush1.bf16.msra.mxu0 %v6967_v56  ;;  %v1278_v56 = vrot.slane %v1277_v41, 1 }
 0x233   :  { %5742 = vmatprep.subr.bf16.mxu0 %v6975_v21  ;;  %5421 = vmatpush1.bf16.msra.mxu1 %v6940_v6  ;;  %v6964_v21 = vld [vmem:[#allocation10 + $0x3f0] ss:$8 sps:$4 sm:$0xff]   ;;  %v1929_v6 = vmul.f32 %v1838_v22, %v1729_v14  ;;  %v7035_v14 = vld [vmem:[#allocation10 + $0xc24] ss:$8 sps:$4 sm:$0xff]   ;;  %v7002_v22 = vld [vmem:[#allocation10 + $0x454] ss:$8 sps:$4 sm:$0xff]  }
 0x234   :  { %5422 = vmatprep.subr.bf16.mxu1 %v6948_v9  ;;  %v1279_v24 = vadd.f32 %v1278_v56, %v1277_v41  ;;  %v2177_v9 = vpack.c.bf16 %v2145_v40, %v2145_v40  ;;  %v7000_v40 = vld [vmem:[#allocation10 + $0x450] ss:$8 sps:$4 sm:$0xff]  }
 0x235   :  { %v2129_v43 = vadd.f32 %v2038_v53, %v1929_v6  ;;  %v7047_v6 = vld [vmem:[#allocation10 + $0xc44] ss:$8 sps:$4 sm:$0xff]  }
 0x236   :  { %5743 = vmatpush1.bf16.msra.mxu0 %v6973_v49  ;;  %v6972_v49 = vld [vmem:[#allocation10 + $0x404] ss:$8 sps:$4 sm:$0xff]  }
 0x237   :  { %5744 = vmatprep.subr.bf16.mxu0 %v6981_v2  ;;  %5423 = vmatpush1.bf16.msra.mxu1 %v6946_v8  ;;  %v6970_v2 = vld [vmem:[#allocation10 + $0x400] ss:$8 sps:$4 sm:$0xff]   ;;  %v1347_v8 = vmul.f32 0.125, %v1279_v24  ;;  %v7039_v24 = vld [vmem:[#allocation10 + $0xc30] ss:$8 sps:$4 sm:$0xff]  }
 0x238   :  { %5424 = vmatprep.subr.bf16.mxu1 %v6954_v58  ;;  %v1467_v58 = vrot.slane %v1395_v62, 4 }
 0x23a   :  { %5745 = vmatpush1.bf16.msra.mxu0 %v6979_v20  ;;  %v2050_v20 = vrot.slane %v8217_v17, %v8410_v59  ;;  %v7015_v59 = vld [vmem:[#allocation10 + $0xbf0] ss:$8 sps:$4 sm:$0xff]   ;;  %v1468_v1 = vadd.f32 %v1467_v58, %v1395_v62  ;;  %v7006_v62 = vld [vmem:[#allocation10 + $0x460] ss:$8 sps:$4 sm:$0xff]  }
 0x23b   :  { %5746 = vmatprep.subr.bf16.mxu0 %v6987_v25  ;;  %5425 = vmatpush1.bf16.msra.mxu1 %v6952_v23  ;;  %v7009_v25 = vld [vmem:[#allocation10 + $0xbe0] ss:$8 sps:$4 sm:$0xff]  }
 0x23c   :  { %5426 = vmatprep.subr.bf16.mxu1 %v6960_v61  ;;  %v2132_v11 = vadd.f32 %v2050_v20, %v1932_v31  ;;  %v6982_v23 = vld [vmem:[#allocation10 + $0x420] ss:$8 sps:$4 sm:$0xff]   ;;  %v7023_v61 = vld [vmem:[#allocation10 + $0xc04] ss:$8 sps:$4 sm:$0xff]   ;;  %v1469_v19 = vrot.slane %v1468_v1, 2 }
 0x23d   :  { %v7053_v31 = vld [vmem:[#allocation10 + $0xc54] ss:$8 sps:$4 sm:$0xff]   ;;  %v7020_v20 = vld [vmem:[#allocation10 + $0x484] ss:$8 sps:$4 sm:$0xff]   ;;  %v7018_v58 = vld [vmem:[#allocation10 + $0x480] ss:$8 sps:$4 sm:$0xff]  }
 0x23e   :  { %5747 = vmatpush1.bf16.msra.mxu0 %v6985_v33  ;;  %v8318_v33 = vsub.f32 %v8409_v13, %v1347_v8  ;;  %v2164_v48 = vmax.f32 %v2132_v11, 0.0  ;;  %v6988_v13 = vld [vmem:[#allocation10 + $0x430] ss:$8 sps:$4 sm:$0xff]   ;;  %v1470_v56 = vadd.f32 %v1469_v19, %v1468_v1  ;;  %v7032_v1 = vld [vmem:[#allocation10 + $0x4a4] ss:$8 sps:$4 sm:$0xff]  }
 0x23f   :  { %5748 = vmatprep.subr.bf16.mxu0 %v6993_v35  ;;  %5427 = vmatpush1.bf16.msra.mxu1 %v6958_v55  ;;  %v2161_v35 = vmax.f32 %v2129_v43, 0.0  ;;  %v7051_v8 = vld [vmem:[#allocation10 + $0xc50] ss:$8 sps:$4 sm:$0xff]  }
 0x240   :  { %5428 = vmatprep.subr.bf16.mxu1 %v6966_v36  ;;  %v1411_v41 = vmul.f32 %v8318_v33, %v8318_v33  ;;  %v2196_v36 = vpack.c.bf16 %v2164_v48, %v2164_v48  ;;  %v1471_v15 = vrot.slane %v1470_v56, 1  ;;  %v7024_v11 = vld [vmem:[#allocation10 + $0x490] ss:$8 sps:$4 sm:$0xff]   ;;  %v7038_v48 = vld [vmem:[#allocation10 + $0x4b4] ss:$8 sps:$4 sm:$0xff]  }
 0x241   :  { %v2193_v55 = vpack.c.bf16 %v2161_v35, %v2161_v35  ;;  %v7063_v35 = vld [vmem:[#allocation10 + $0xc70] ss:$8 sps:$4 sm:$0xff]  }
 0x242   :  { %5749 = vmatpush1.bf16.msra.mxu0 %v6991_v63  ;;  %v7021_v63 = vld [vmem:[#allocation10 + $0xc00] ss:$8 sps:$4 sm:$0xff]   ;;  %v1563_v52 = vrot.slane %v1411_v41, 4  ;;  %v7036_v19 = vld [vmem:[#allocation10 + $0x4b0] ss:$8 sps:$4 sm:$0xff]  }
 0x243   :  { %5750 = vmatprep.subr.bf16.mxu0 %v6999_v7  ;;  %5429 = vmatpush1.bf16.msra.mxu1 %v6964_v21  ;;  %v7029_v7 = vld [vmem:[#allocation10 + $0xc14] ss:$8 sps:$4 sm:$0xff]  }
 0x244   :  { %5439 = vmatprep.subr.bf16.mxu1 %v6972_v49  ;;  %v1564_v21 = vadd.f32 %v1563_v52, %v1411_v41  ;;  %v7041_v49 = vld [vmem:[#allocation10 + $0xc34] ss:$8 sps:$4 sm:$0xff]   ;;  %v7083_v52 = vld [vmem:[#allocation10 + $0xca4] ss:$8 sps:$4 sm:$0xff]  }
 0x246   :  { %5751 = vmatpush1.bf16.msra.mxu0 %v6997_v50  ;;  %5431 = vmatmul.mubr.bf16.vlgmr.msra.gmra.mrb[32].mxu1 %v2177_v9  ;;  %v6994_v50 = vld [vmem:[#allocation10 + $0x440] ss:$8 sps:$4 sm:$0xff]   ;;  %v1565_v32 = vrot.slane %v1564_v21, 2 }
 0x247   :  { %5752 = vmatprep.subr.bf16.mxu0 %v7005_v4  ;;  %5440 = vmatpush1.bf16.msra.mxu1 %v6970_v2  ;;  %v7033_v4 = vld [vmem:[#allocation10 + $0xc20] ss:$8 sps:$4 sm:$0xff]   ;;  %v7014_v2 = vld [vmem:[#allocation10 + $0x474] ss:$8 sps:$4 sm:$0xff]  }
 0x248   :  { %5471 = vmatprep.mubr.bf16.mxu1 %v2180_v38  ;;  %5441 = vmatprep.subr.bf16.mxu1 %v6978_v16  ;;  %v1566_v53 = vadd.f32 %v1565_v32, %v1564_v21  ;;  %v7045_v9 = vld [vmem:[#allocation10 + $0xc40] ss:$8 sps:$4 sm:$0xff]  }
 0x249   :  { %v7081_v21 = vld [vmem:[#allocation10 + $0xca0] ss:$8 sps:$4 sm:$0xff]  }
 0x24a   :  { %5753 = vmatpush1.bf16.msra.mxu0 %v7003_v28  ;;  %v1472_v28 = vadd.f32 %v1471_v15, %v1470_v56  ;;  %v1567_v38 = vrot.slane %v1566_v53, 1  ;;  %v7445_v56 = vld [vmem:[#allocation7 + $0x8] sm:$0xff]  ;;  %v7089_v15 = vld [vmem:[#allocation10 + $0xcb4] ss:$8 sps:$4 sm:$0xff]  }
 0x24b   :  { %5754 = vmatprep.subr.bf16.mxu0 %v7011_v34  ;;  %5442 = vmatpush1.bf16.msra.mxu1 %v6976_v3  ;;  %v7012_v34 = vld [vmem:[#allocation10 + $0x470] ss:$8 sps:$4 sm:$0xff]   ;;  %v7059_v3 = vld [vmem:[#allocation10 + $0xc64] ss:$8 sps:$4 sm:$0xff]  }
 0x24c   :  { %5443 = vmatprep.subr.bf16.mxu1 %v6984_v0  ;;  %v1619_v16 = vmul.f32 0.125, %v1472_v28  ;;  %v1568_v43 = vadd.f32 %v1567_v38, %v1566_v53  ;;  %v7057_v0 = vld [vmem:[#allocation10 + $0xc60] ss:$8 sps:$4 sm:$0xff]   ;;  %v7095_v28 = vld [vmem:[#allocation10 + $0xcc4] ss:$8 sps:$4 sm:$0xff]  }
 0x24d   :  { %v7093_v53 = vld [vmem:[#allocation10 + $0xcc0] ss:$8 sps:$4 sm:$0xff]   ;;  %v7068_v38 = vld [vmem:[#allocation10 + $0x504] ss:$8 sps:$4 sm:$0xff]  }
 0x24e   :  { %5755 = vmatpush1.bf16.msra.mxu0 %v7009_v25  ;;  %v1651_v25 = vadd.f32 1e-05, %v1619_v16 }
 0x24f   :  { %5756 = vmatprep.subr.bf16.mxu0 %v7017_v39  ;;  %5444 = vmatpush1.bf16.msra.mxu1 %v6982_v23  ;;  %v7026_v39 = vld [vmem:[#allocation10 + $0x494] ss:$8 sps:$4 sm:$0xff]   ;;  %v1635_v23 = vmul.f32 0.125, %v1568_v43  ;;  %v7107_v43 = vld [vmem:[#allocation10 + $0xce4] ss:$8 sps:$4 sm:$0xff]  }
 0x250   :  { %5445 = vmatprep.subr.bf16.mxu1 %v6990_v5  ;;  %7438 = vrsqrt.f32 %v1651_v25  ;;  %v7071_v5 = vld [vmem:[#allocation10 + $0xc84] ss:$8 sps:$4 sm:$0xff]   ;;  %v7099_v25 = vld [vmem:[#allocation10 + $0xcd0] ss:$8 sps:$4 sm:$0xff]  }
 0x251   :  { %v1667_v41 = vadd.f32 1e-05, %v1635_v23  ;;  %v7080_v23 = vld [vmem:[#allocation10 + $0x524] ss:$8 sps:$4 sm:$0xff]  }
 0x252   :  { %5757 = vmatpush1.bf16.msra.mxu0 %v7015_v59  ;;  %v7065_v59 = vld [vmem:[#allocation10 + $0xc74] ss:$8 sps:$4 sm:$0xff]  }
 0x253   :  { %5767 = vmatprep.subr.bf16.mxu0 %v7023_v61  ;;  %5446 = vmatpush1.bf16.msra.mxu1 %v6988_v13  ;;  %v7030_v61 = vld [vmem:[#allocation10 + $0x4a0] ss:$8 sps:$4 sm:$0xff]   ;;  %v7077_v13 = vld [vmem:[#allocation10 + $0xc94] ss:$8 sps:$4 sm:$0xff]   ;;  %7440 = vrsqrt.f32 %v1667_v41  ;;  %v2166_v41 = vmax.f32 %v8234_v44, 0.0 }
 0x254   :  { %5447 = vmatprep.subr.bf16.mxu1 %v6996_v46  ;;  %v7075_v46 = vld [vmem:[#allocation10 + $0xc90] ss:$8 sps:$4 sm:$0xff]   ;;  %v7098_v44 = vld [vmem:[#allocation10 + $0x554] ss:$8 sps:$4 sm:$0xff]  }
 0x255   :  { %5759 = vmatmul.mubr.bf16.vlgmr.msra.gmra.mrb[32].mxu0 %v2193_v55  ;;  %v7044_v55 = vld [vmem:[#allocation10 + $0x4c4] ss:$8 sps:$4 sm:$0xff]  }
 0x256   :  { %5768 = vmatpush1.bf16.msra.mxu0 %v7021_v63  ;;  %5799 = vmatprep.mubr.bf16.mxu0 %v2196_v36  ;;  %v7069_v63 = vld [vmem:[#allocation10 + $0xc80] ss:$8 sps:$4 sm:$0xff]  }
 0x257   :  { %5769 = vmatprep.subr.bf16.mxu0 %v7029_v7  ;;  %5448 = vmatpush1.bf16.msra.mxu1 %v6994_v50  ;;  %v7042_v36 = vld [vmem:[#allocation10 + $0x4c0] ss:$8 sps:$4 sm:$0xff]  }
 0x258   :  { %5449 = vmatprep.subr.bf16.mxu1 %v7002_v22  ;;  %v8411_v50 = vld [vmem:[#allocation19_spill] sm:$0xff]  ;;  %v7050_v22 = vld [vmem:[#allocation10 + $0x4d4] ss:$8 sps:$4 sm:$0xff]  }
 0x259   :  { %v1846_v16 = vrot.slane %v8210_v26, %v8411_v50  ;;  %v7074_v26 = vld [vmem:[#allocation10 + $0x514] ss:$8 sps:$4 sm:$0xff]  }
 0x25a   :  { %5770 = vmatpush1.bf16.msra.mxu0 %v7027_v42  ;;  %v7439_v7 = vpop.eup %7438 }
 0x25b   :  { %5771 = vmatprep.subr.bf16.mxu0 %v7035_v14  ;;  %5450 = vmatpush1.bf16.msra.mxu1 %v7000_v40  ;;  %v1715_v42 = vmul.f32 %v7439_v7, %v8302_v10  ;;  %v1782_v14 = vrot.slane %v7445_v56, %v8411_v50  ;;  %v7054_v10 = vld [vmem:[#allocation10 + $0x4e0] ss:$8 sps:$4 sm:$0xff]   ;;  %v7092_v7 = vld [vmem:[#allocation10 + $0x544] ss:$8 sps:$4 sm:$0xff]  }
 0x25c   :  { %5451 = vmatprep.subr.bf16.mxu1 %v7008_v54  ;;  %v7446_v54 = vld [vmem:[#allocation8 + $0x8] sm:$0xff] }
 0x25d   :  { %v1915_v40 = vmul.f32 %v1782_v14, %v1715_v42  ;;  %v1982_v32 = vrot.slane %v7446_v54, %v8411_v50  ;;  %v7131_v42 = vld [vmem:[#allocation10 + $0xd24] ss:$8 sps:$4 sm:$0xff]   ;;  %v7129_v56 = vld [vmem:[#allocation10 + $0xd20] ss:$8 sps:$4 sm:$0xff]   ;;  %v7137_v14 = vld [vmem:[#allocation10 + $0xd34] ss:$8 sps:$4 sm:$0xff]  }
 0x25e   :  { %5772 = vmatpush1.bf16.msra.mxu0 %v7033_v4  ;;  %v7048_v4 = vld [vmem:[#allocation10 + $0x4d0] ss:$8 sps:$4 sm:$0xff]  }
 0x25f   :  { %5773 = vmatprep.subr.bf16.mxu0 %v7041_v49  ;;  %5452 = vmatpush1.bf16.msra.mxu1 %v7006_v62  ;;  %v7056_v49 = vld [vmem:[#allocation10 + $0x4e4] ss:$8 sps:$4 sm:$0xff]   ;;  %v7441_v62 = vpop.eup %7440  ;;  %v7108_v54 = vld [vmem:[#allocation10 + $0x570] ss:$8 sps:$4 sm:$0xff]  }
 0x260   :  { %5453 = vmatprep.subr.bf16.mxu1 %v7014_v2  ;;  %v2115_v2 = vadd.f32 %v1982_v32, %v1915_v40  ;;  %v7110_v40 = vld [vmem:[#allocation10 + $0x574] ss:$8 sps:$4 sm:$0xff]  }
 0x261   :  { %v7149_v32 = vld [vmem:[#allocation10 + $0xd54] ss:$8 sps:$4 sm:$0xff]  }
 0x262   :  { %5774 = vmatpush1.bf16.msra.mxu0 %v7039_v24  ;;  %v7087_v24 = vld [vmem:[#allocation10 + $0xcb0] ss:$8 sps:$4 sm:$0xff]  }
 0x263   :  { %5775 = vmatprep.subr.bf16.mxu0 %v7047_v6  ;;  %5454 = vmatpush1.bf16.msra.mxu1 %v7012_v34  ;;  %v7062_v6 = vld [vmem:[#allocation10 + $0x4f4] ss:$8 sps:$4 sm:$0xff]   ;;  %v7060_v34 = vld [vmem:[#allocation10 + $0x4f0] ss:$8 sps:$4 sm:$0xff]  }
 0x264   :  { %5455 = vmatprep.subr.bf16.mxu1 %v7020_v20  ;;  %v2147_v20 = vmax.f32 %v2115_v2, 0.0  ;;  %v7153_v2 = vld [vmem:[#allocation10 + $0xd60] ss:$8 sps:$4 sm:$0xff]  }
 0x266   :  { %5776 = vmatpush1.bf16.msra.mxu0 %v7045_v9  ;;  %v1731_v9 = vmul.f32 %v7441_v62, %v8318_v33  ;;  %v2046_v33 = vrot.slane %v8217_v17, %v8411_v50  ;;  %v7078_v17 = vld [vmem:[#allocation10 + $0x520] ss:$8 sps:$4 sm:$0xff]   ;;  %v7096_v50 = vld [vmem:[#allocation10 + $0x550] ss:$8 sps:$4 sm:$0xff]   ;;  %v7155_v62 = vld [vmem:[#allocation10 + $0xd64] ss:$8 sps:$4 sm:$0xff]  }
 0x267   :  { %5777 = vmatprep.subr.bf16.mxu0 %v7053_v31  ;;  %5456 = vmatpush1.bf16.msra.mxu1 %v7018_v58  ;;  %v7101_v31 = vld [vmem:[#allocation10 + $0xcd4] ss:$8 sps:$4 sm:$0xff]  }
 0x268   :  { %5457 = vmatprep.subr.bf16.mxu1 %v7026_v39  ;;  %v1931_v58 = vmul.f32 %v1846_v16, %v1731_v9  ;;  %v2179_v39 = vpack.c.bf16 %v2147_v20, %v2147_v20  ;;  %v7161_v9 = vld [vmem:[#allocation10 + $0xd74] ss:$8 sps:$4 sm:$0xff]   ;;  %v7128_v16 = vld [vmem:[#allocation10 + $0x5a4] ss:$8 sps:$4 sm:$0xff]  }
 0x269   :  { %v7167_v20 = vld [vmem:[#allocation10 + $0xd84] ss:$8 sps:$4 sm:$0xff]  }
 0x26a   :  { %5778 = vmatpush1.bf16.msra.mxu0 %v7051_v8  ;;  %v2150_v8 = vmax.f32 %v8182_v37, 0.0  ;;  %v7072_v37 = vld [vmem:[#allocation10 + $0x510] ss:$8 sps:$4 sm:$0xff]  }
 0x26b   :  { %5779 = vmatprep.subr.bf16.mxu0 %v7059_v3  ;;  %5458 = vmatpush1.bf16.msra.mxu1 %v7024_v11  ;;  %v7066_v3 = vld [vmem:[#allocation10 + $0x500] ss:$8 sps:$4 sm:$0xff]  }
 0x26c   :  { %5459 = vmatprep.subr.bf16.mxu1 %v7032_v1  ;;  %v7105_v11 = vld [vmem:[#allocation10 + $0xce0] ss:$8 sps:$4 sm:$0xff]   ;;  %v2131_v1 = vadd.f32 %v2046_v33, %v1931_v58  ;;  %v7173_v58 = vld [vmem:[#allocation10 + $0xd94] ss:$8 sps:$4 sm:$0xff]   ;;  %v7171_v33 = vld [vmem:[#allocation10 + $0xd90] ss:$8 sps:$4 sm:$0xff]  }
 0x26e   :  { %5780 = vmatpush1.bf16.msra.mxu0 %v7057_v0  ;;  %v2182_v0 = vpack.c.bf16 %v2150_v8, %v2150_v8  ;;  %v7165_v8 = vld [vmem:[#allocation10 + $0xd80] ss:$8 sps:$4 sm:$0xff]  }
 0x26f   :  { %5781 = vmatprep.subr.bf16.mxu0 %v7065_v59  ;;  %5460 = vmatpush1.bf16.msra.mxu1 %v7030_v61  ;;  %v7113_v59 = vld [vmem:[#allocation10 + $0xcf4] ss:$8 sps:$4 sm:$0xff]   ;;  %v2163_v61 = vmax.f32 %v2131_v1, 0.0  ;;  %v7183_v1 = vld [vmem:[#allocation10 + $0xdb0] ss:$8 sps:$4 sm:$0xff]  }
 0x270   :  { %5461 = vmatprep.subr.bf16.mxu1 %v7038_v48  ;;  %v7086_v48 = vld [vmem:[#allocation10 + $0x534] ss:$8 sps:$4 sm:$0xff]  }
 0x272   :  { %5782 = vmatpush1.bf16.msra.mxu0 %v7063_v35  ;;  %v7111_v35 = vld [vmem:[#allocation10 + $0xcf0] ss:$8 sps:$4 sm:$0xff]  }
 0x273   :  { %5783 = vmatprep.subr.bf16.mxu0 %v7071_v5  ;;  %5462 = vmatpush1.bf16.msra.mxu1 %v7036_v19  ;;  %v7119_v5 = vld [vmem:[#allocation10 + $0xd04] ss:$8 sps:$4 sm:$0xff]   ;;  %v7084_v19 = vld [vmem:[#allocation10 + $0x530] ss:$8 sps:$4 sm:$0xff]  }
 0x274   :  { %5463 = vmatprep.subr.bf16.mxu1 %v7044_v55  ;;  %v7125_v55 = vld [vmem:[#allocation10 + $0xd14] ss:$8 sps:$4 sm:$0xff]  }
 0x276   :  { %5784 = vmatpush1.bf16.msra.mxu0 %v7069_v63  ;;  %v7117_v63 = vld [vmem:[#allocation10 + $0xd00] ss:$8 sps:$4 sm:$0xff]  }
 0x277   :  { %5785 = vmatprep.subr.bf16.mxu0 %v7077_v13  ;;  %5464 = vmatpush1.bf16.msra.mxu1 %v7042_v36  ;;  %v2195_v13 = vpack.c.bf16 %v2163_v61, %v2163_v61  ;;  %v7123_v36 = vld [vmem:[#allocation10 + $0xd10] ss:$8 sps:$4 sm:$0xff]   ;;  %v7189_v61 = vld [vmem:[#allocation10 + $0xdc0] ss:$8 sps:$4 sm:$0xff]  }
 0x278   :  { %5465 = vmatprep.subr.bf16.mxu1 %v7050_v22  ;;  %v7104_v22 = vld [vmem:[#allocation10 + $0x564] ss:$8 sps:$4 sm:$0xff]  }
 0x27a   :  { %5786 = vmatpush1.bf16.msra.mxu0 %v7075_v46  ;;  %v2198_v46 = vpack.c.bf16 %v2166_v41, %v2166_v41  ;;  %v2149_v41 = vmax.f32 %v8184_v60, 0.0  ;;  %v7209_v60 = vld [vmem:[#allocation10 + $0xdf4] ss:$8 sps:$4 sm:$0xff]  }
 0x27b   :  { %5787 = vmatprep.subr.bf16.mxu0 %v7083_v52  ;;  %5466 = vmatpush1.bf16.msra.mxu1 %v7048_v4  ;;  %v7090_v52 = vld [vmem:[#allocation10 + $0x540] ss:$8 sps:$4 sm:$0xff]  }
 0x27c   :  { %5467 = vmatprep.subr.bf16.mxu1 %v7056_v49  ;;  %v7102_v4 = vld [vmem:[#allocation10 + $0x560] ss:$8 sps:$4 sm:$0xff]  }
 0x27d   :  { %v7141_v49 = vld [vmem:[#allocation10 + $0xd40] ss:$8 sps:$4 sm:$0xff]  }
 0x27e   :  { %5788 = vmatpush1.bf16.msra.mxu0 %v7081_v21  ;;  %v7135_v21 = vld [vmem:[#allocation10 + $0xd30] ss:$8 sps:$4 sm:$0xff]  }
 0x27f   :  { %5789 = vmatprep.subr.bf16.mxu0 %v7089_v15  ;;  %5468 = vmatpush1.bf16.msra.mxu1 %v7054_v10  ;;  %v7143_v15 = vld [vmem:[#allocation10 + $0xd44] ss:$8 sps:$4 sm:$0xff]   ;;  %v7147_v10 = vld [vmem:[#allocation10 + $0xd50] ss:$8 sps:$4 sm:$0xff]  }
 0x280   :  { %5469 = vmatprep.subr.bf16.mxu1 %v7062_v6  ;;  %v7122_v6 = vld [vmem:[#allocation10 + $0x594] ss:$8 sps:$4 sm:$0xff]  }
 0x282   :  { %5790 = vmatpush1.bf16.msra.mxu0 %v7087_v24  ;;  %v7116_v24 = vld [vmem:[#allocation10 + $0x584] ss:$8 sps:$4 sm:$0xff]  }
 0x283   :  { %5791 = vmatprep.subr.bf16.mxu0 %v7095_v28  ;;  %5470 = vmatpush1.bf16.msra.mxu1 %v7060_v34  ;;  %v7114_v28 = vld [vmem:[#allocation10 + $0x580] ss:$8 sps:$4 sm:$0xff]   ;;  %v7159_v34 = vld [vmem:[#allocation10 + $0xd70] ss:$8 sps:$4 sm:$0xff]  }
 0x284   :  { %5480 = vmatprep.subr.bf16.mxu1 %v7068_v38  ;;  %v7134_v38 = vld [vmem:[#allocation10 + $0x5b4] ss:$8 sps:$4 sm:$0xff]  }
 0x286   :  { %5792 = vmatpush1.bf16.msra.mxu0 %v7093_v53  ;;  %5472 = vmatmul.mubr.bf16.vlgmr.msra.gmra.mrb[32].mxu1 %v2179_v39  ;;  %v7120_v53 = vld [vmem:[#allocation10 + $0x590] ss:$8 sps:$4 sm:$0xff]   ;;  %v7138_v39 = vld [vmem:[#allocation10 + $0x5c0] ss:$8 sps:$4 sm:$0xff]  }
 0x287   :  { %5793 = vmatprep.subr.bf16.mxu0 %v7101_v31  ;;  %5481 = vmatpush1.bf16.msra.mxu1 %v7066_v3  ;;  %v7126_v31 = vld [vmem:[#allocation10 + $0x5a0] ss:$8 sps:$4 sm:$0xff]   ;;  %v7140_v3 = vld [vmem:[#allocation10 + $0x5c4] ss:$8 sps:$4 sm:$0xff]  }
 0x288   :  { %5512 = vmatprep.mubr.bf16.mxu1 %v2182_v0  ;;  %5482 = vmatprep.subr.bf16.mxu1 %v7074_v26  ;;  %v7179_v26 = vld [vmem:[#allocation10 + $0xda4] ss:$8 sps:$4 sm:$0xff]   ;;  %v7177_v0 = vld [vmem:[#allocation10 + $0xda0] ss:$8 sps:$4 sm:$0xff]  }
 0x28a   :  { %5794 = vmatpush1.bf16.msra.mxu0 %v7099_v25  ;;  %v7132_v25 = vld [vmem:[#allocation10 + $0x5b0] ss:$8 sps:$4 sm:$0xff]  }
 0x28b   :  { %5795 = vmatprep.subr.bf16.mxu0 %v7107_v43  ;;  %5483 = vmatpush1.bf16.msra.mxu1 %v7072_v37  ;;  %v7146_v43 = vld [vmem:[#allocation10 + $0x5d4] ss:$8 sps:$4 sm:$0xff]  }
 0x28c   :  { %5484 = vmatprep.subr.bf16.mxu1 %v7080_v23  ;;  %v7185_v37 = vld [vmem:[#allocation10 + $0xdb4] ss:$8 sps:$4 sm:$0xff]   ;;  %v7150_v23 = vld [vmem:[#allocation10 + $0x5e0] ss:$8 sps:$4 sm:$0xff]  }
 0x28e   :  { %5796 = vmatpush1.bf16.msra.mxu0 %v7105_v11  ;;  %v7144_v11 = vld [vmem:[#allocation10 + $0x5d0] ss:$8 sps:$4 sm:$0xff]  }
 0x28f   :  { %5797 = vmatprep.subr.bf16.mxu0 %v7113_v59  ;;  %5485 = vmatpush1.bf16.msra.mxu1 %v7078_v17  ;;  %v7152_v59 = vld [vmem:[#allocation10 + $0x5e4] ss:$8 sps:$4 sm:$0xff]   ;;  %v7158_v17 = vld [vmem:[#allocation10 + $0x5f4] ss:$8 sps:$4 sm:$0xff]  }
 0x290   :  { %5486 = vmatprep.subr.bf16.mxu1 %v7086_v48  ;;  %v7197_v48 = vld [vmem:[#allocation10 + $0xdd4] ss:$8 sps:$4 sm:$0xff]  }
 0x292   :  { %5798 = vmatpush1.bf16.msra.mxu0 %v7111_v35  ;;  %v7191_v35 = vld [vmem:[#allocation10 + $0xdc4] ss:$8 sps:$4 sm:$0xff]  }
 0x293   :  { %5808 = vmatprep.subr.bf16.mxu0 %v7119_v5  ;;  %5487 = vmatpush1.bf16.msra.mxu1 %v7084_v19  ;;  %v7156_v5 = vld [vmem:[#allocation10 + $0x5f0] ss:$8 sps:$4 sm:$0xff]   ;;  %v2152_v19 = vmax.f32 %v8192_v30, 0.0 }
 0x294   :  { %5488 = vmatprep.subr.bf16.mxu1 %v7092_v7  ;;  %v2181_v7 = vpack.c.bf16 %v2149_v41, %v2149_v41  ;;  %v7207_v30 = vld [vmem:[#allocation10 + $0xdf0] ss:$8 sps:$4 sm:$0xff]   ;;  %v7234_v41 = vld [vmem:[#allocation10 + $0x6c0] ss:$8 sps:$4 sm:$0xff]  }
 0x295   :  { %5800 = vmatmul.mubr.bf16.vlgmr.msra.gmra.mrb[32].mxu0 %v2195_v13  ;;  %v7195_v13 = vld [vmem:[#allocation10 + $0xdd0] ss:$8 sps:$4 sm:$0xff]  }
 0x296   :  { %5809 = vmatpush1.bf16.msra.mxu0 %v7117_v63  ;;  %5840 = vmatprep.mubr.bf16.mxu0 %v2198_v46  ;;  %v7164_v63 = vld [vmem:[#allocation10 + $0x604] ss:$8 sps:$4 sm:$0xff]   ;;  %v7170_v46 = vld [vmem:[#allocation10 + $0x614] ss:$8 sps:$4 sm:$0xff]  }
 0x297   :  { %5810 = vmatprep.subr.bf16.mxu0 %v7125_v55  ;;  %5489 = vmatpush1.bf16.msra.mxu1 %v7090_v52  ;;  %v7162_v55 = vld [vmem:[#allocation10 + $0x600] ss:$8 sps:$4 sm:$0xff]   ;;  %v2184_v52 = vpack.c.bf16 %v2152_v19, %v2152_v19  ;;  %v7242_v19 = vld [vmem:[#allocation10 + $0x6d4] ss:$8 sps:$4 sm:$0xff]  }
 0x298   :  { %5490 = vmatprep.subr.bf16.mxu1 %v7098_v44  ;;  %v7168_v44 = vld [vmem:[#allocation10 + $0x610] ss:$8 sps:$4 sm:$0xff]  }
 0x29a   :  { %5811 = vmatpush1.bf16.msra.mxu0 %v7123_v36  ;;  %v7203_v36 = vld [vmem:[#allocation10 + $0xde4] ss:$8 sps:$4 sm:$0xff]  }
 0x29b   :  { %5812 = vmatprep.subr.bf16.mxu0 %v7131_v42  ;;  %5491 = vmatpush1.bf16.msra.mxu1 %v7096_v50  ;;  %v7201_v42 = vld [vmem:[#allocation10 + $0xde0] ss:$8 sps:$4 sm:$0xff]  }
 0x29c   :  { %5492 = vmatprep.subr.bf16.mxu1 %v7104_v22  ;;  %v7174_v50 = vld [vmem:[#allocation10 + $0x620] ss:$8 sps:$4 sm:$0xff]   ;;  %v7215_v22 = vld [vmem:[#allocation10 + $0xe04] ss:$8 sps:$4 sm:$0xff]  }
 0x29e   :  { %5813 = vmatpush1.bf16.msra.mxu0 %v7129_v56  ;;  %v7176_v56 = vld [vmem:[#allocation10 + $0x624] ss:$8 sps:$4 sm:$0xff]  }
 0x29f   :  { %5814 = vmatprep.subr.bf16.mxu0 %v7137_v14  ;;  %5493 = vmatpush1.bf16.msra.mxu1 %v7102_v4  ;;  %v2165_v14 = vmax.f32 %v8236_v12, 0.0  ;;  %v2168_v4 = vmax.f32 %v8266_v29, 0.0  ;;  %v7186_v12 = vld [vmem:[#allocation10 + $0x640] ss:$8 sps:$4 sm:$0xff]   ;;  %v7194_v29 = vld [vmem:[#allocation10 + $0x654] ss:$8 sps:$4 sm:$0xff]  }
 0x2a0   :  { %5494 = vmatprep.subr.bf16.mxu1 %v7110_v40  ;;  %v7180_v40 = vld [vmem:[#allocation10 + $0x630] ss:$8 sps:$4 sm:$0xff]  }
 0x2a2   :  { %5815 = vmatpush1.bf16.msra.mxu0 %v7135_v21  ;;  %v7182_v21 = vld [vmem:[#allocation10 + $0x634] ss:$8 sps:$4 sm:$0xff]  }
 0x2a3   :  { %5816 = vmatprep.subr.bf16.mxu0 %v7143_v15  ;;  %5495 = vmatpush1.bf16.msra.mxu1 %v7108_v54  ;;  %v7213_v15 = vld [vmem:[#allocation10 + $0xe00] ss:$8 sps:$4 sm:$0xff]   ;;  %v7221_v54 = vld [vmem:[#allocation10 + $0xe14] ss:$8 sps:$4 sm:$0xff]  }
 0x2a4   :  { %5496 = vmatprep.subr.bf16.mxu1 %v7116_v24  ;;  %v2200_v24 = vpack.c.bf16 %v2168_v4, %v2168_v4  ;;  %v7258_v4 = vld [vmem:[#allocation10 + $0x700] ss:$8 sps:$4 sm:$0xff]  }
 0x2a6   :  { %5817 = vmatpush1.bf16.msra.mxu0 %v7141_v49  ;;  %v2197_v49 = vpack.c.bf16 %v2165_v14, %v2165_v14  ;;  %v7260_v14 = vld [vmem:[#allocation10 + $0x704] ss:$8 sps:$4 sm:$0xff]  }
 0x2a7   :  { %5818 = vmatprep.subr.bf16.mxu0 %v7149_v32  ;;  %5497 = vmatpush1.bf16.msra.mxu1 %v7114_v28  ;;  %v7188_v32 = vld [vmem:[#allocation10 + $0x644] ss:$8 sps:$4 sm:$0xff]  }
 0x2a8   :  { %5498 = vmatprep.subr.bf16.mxu1 %v7122_v6  ;;  %v7227_v28 = vld [vmem:[#allocation10 + $0xe24] ss:$8 sps:$4 sm:$0xff]   ;;  %v7192_v6 = vld [vmem:[#allocation10 + $0x650] ss:$8 sps:$4 sm:$0xff]  }
 0x2aa   :  { %5819 = vmatpush1.bf16.msra.mxu0 %v7147_v10  ;;  %v7219_v10 = vld [vmem:[#allocation10 + $0xe10] ss:$8 sps:$4 sm:$0xff]  }
 0x2ab   :  { %5820 = vmatprep.subr.bf16.mxu0 %v7155_v62  ;;  %5499 = vmatpush1.bf16.msra.mxu1 %v7120_v53  ;;  %v7225_v62 = vld [vmem:[#allocation10 + $0xe20] ss:$8 sps:$4 sm:$0xff]   ;;  %v7200_v53 = vld [vmem:[#allocation10 + $0x664] ss:$8 sps:$4 sm:$0xff]  }
 0x2ac   :  { %5500 = vmatprep.subr.bf16.mxu1 %v7128_v16  ;;  %v7198_v16 = vld [vmem:[#allocation10 + $0x660] ss:$8 sps:$4 sm:$0xff]  }
 0x2ae   :  { %5821 = vmatpush1.bf16.msra.mxu0 %v7153_v2  ;;  %v7233_v2 = vld [vmem:[#allocation10 + $0xe34] ss:$8 sps:$4 sm:$0xff]  }
 0x2af   :  { %5822 = vmatprep.subr.bf16.mxu0 %v7161_v9  ;;  %5501 = vmatpush1.bf16.msra.mxu1 %v7126_v31  ;;  %v7231_v9 = vld [vmem:[#allocation10 + $0xe30] ss:$8 sps:$4 sm:$0xff]   ;;  %v7206_v31 = vld [vmem:[#allocation10 + $0x674] ss:$8 sps:$4 sm:$0xff]  }
 0x2b0   :  { %5502 = vmatprep.subr.bf16.mxu1 %v7134_v38  ;;  %v7204_v38 = vld [vmem:[#allocation10 + $0x670] ss:$8 sps:$4 sm:$0xff]  }
 0x2b2   :  { %5823 = vmatpush1.bf16.msra.mxu0 %v7159_v34  ;;  %v7239_v34 = vld [vmem:[#allocation10 + $0xe44] ss:$8 sps:$4 sm:$0xff]  }
 0x2b3   :  { %5824 = vmatprep.subr.bf16.mxu0 %v7167_v20  ;;  %5503 = vmatpush1.bf16.msra.mxu1 %v7132_v25  ;;  %v7237_v20 = vld [vmem:[#allocation10 + $0xe40] ss:$8 sps:$4 sm:$0xff]   ;;  %v7212_v25 = vld [vmem:[#allocation10 + $0x684] ss:$8 sps:$4 sm:$0xff]  }
 0x2b4   :  { %5504 = vmatprep.subr.bf16.mxu1 %v7140_v3  ;;  %v7210_v3 = vld [vmem:[#allocation10 + $0x680] ss:$8 sps:$4 sm:$0xff]  }
 0x2b6   :  { %5825 = vmatpush1.bf16.msra.mxu0 %v7165_v8  ;;  %v7245_v8 = vld [vmem:[#allocation10 + $0xe54] ss:$8 sps:$4 sm:$0xff]  }
 0x2b7   :  { %5826 = vmatprep.subr.bf16.mxu0 %v7173_v58  ;;  %5505 = vmatpush1.bf16.msra.mxu1 %v7138_v39  ;;  %v7243_v58 = vld [vmem:[#allocation10 + $0xe50] ss:$8 sps:$4 sm:$0xff]   ;;  %v7218_v39 = vld [vmem:[#allocation10 + $0x694] ss:$8 sps:$4 sm:$0xff]  }
 0x2b8   :  { %5506 = vmatprep.subr.bf16.mxu1 %v7146_v43  ;;  %v7216_v43 = vld [vmem:[#allocation10 + $0x690] ss:$8 sps:$4 sm:$0xff]  }
 0x2ba   :  { %5827 = vmatpush1.bf16.msra.mxu0 %v7171_v33  ;;  %v7251_v33 = vld [vmem:[#allocation10 + $0xe64] ss:$8 sps:$4 sm:$0xff]  }
 0x2bb   :  { %5828 = vmatprep.subr.bf16.mxu0 %v7179_v26  ;;  %5507 = vmatpush1.bf16.msra.mxu1 %v7144_v11  ;;  %v7249_v26 = vld [vmem:[#allocation10 + $0xe60] ss:$8 sps:$4 sm:$0xff]   ;;  %v7224_v11 = vld [vmem:[#allocation10 + $0x6a4] ss:$8 sps:$4 sm:$0xff]  }
 0x2bc   :  { %5508 = vmatprep.subr.bf16.mxu1 %v7152_v59  ;;  %v7222_v59 = vld [vmem:[#allocation10 + $0x6a0] ss:$8 sps:$4 sm:$0xff]  }
 0x2be   :  { %5829 = vmatpush1.bf16.msra.mxu0 %v7177_v0  ;;  %v7257_v0 = vld [vmem:[#allocation10 + $0xe74] ss:$8 sps:$4 sm:$0xff]  }
 0x2bf   :  { %5830 = vmatprep.subr.bf16.mxu0 %v7185_v37  ;;  %5509 = vmatpush1.bf16.msra.mxu1 %v7150_v23  ;;  %v7255_v37 = vld [vmem:[#allocation10 + $0xe70] ss:$8 sps:$4 sm:$0xff]   ;;  %v7230_v23 = vld [vmem:[#allocation10 + $0x6b4] ss:$8 sps:$4 sm:$0xff]  }
 0x2c0   :  { %5510 = vmatprep.subr.bf16.mxu1 %v7158_v17  ;;  %v7228_v17 = vld [vmem:[#allocation10 + $0x6b0] ss:$8 sps:$4 sm:$0xff]  }
 0x2c2   :  { %5831 = vmatpush1.bf16.msra.mxu0 %v7183_v1  ;;  %v7263_v1 = vld [vmem:[#allocation10 + $0xe84] ss:$8 sps:$4 sm:$0xff]  }
 0x2c3   :  { %5832 = vmatprep.subr.bf16.mxu0 %v7191_v35  ;;  %5511 = vmatpush1.bf16.msra.mxu1 %v7156_v5  ;;  %v7261_v35 = vld [vmem:[#allocation10 + $0xe80] ss:$8 sps:$4 sm:$0xff]   ;;  %v7236_v5 = vld [vmem:[#allocation10 + $0x6c4] ss:$8 sps:$4 sm:$0xff]  }
 0x2c4   :  { %5521 = vmatprep.subr.bf16.mxu1 %v7164_v63  ;;  %v7275_v63 = vld [vmem:[#allocation10 + $0xea4] ss:$8 sps:$4 sm:$0xff]  }
 0x2c6   :  { %5833 = vmatpush1.bf16.msra.mxu0 %v7189_v61  ;;  %5513 = vmatmul.mubr.bf16.vlgmr.msra.gmra.mrb[32].mxu1 %v2181_v7  ;;  %v7269_v61 = vld [vmem:[#allocation10 + $0xe94] ss:$8 sps:$4 sm:$0xff]  }
 0x2c7   :  { %5834 = vmatprep.subr.bf16.mxu0 %v7197_v48  ;;  %5522 = vmatpush1.bf16.msra.mxu1 %v7162_v55  ;;  %v7267_v48 = vld [vmem:[#allocation10 + $0xe90] ss:$8 sps:$4 sm:$0xff]   ;;  %v7281_v7 = vld [vmem:[#allocation10 + $0xeb4] ss:$8 sps:$4 sm:$0xff]  }
 0x2c8   :  { %5553 = vmatprep.mubr.bf16.mxu1 %v2184_v52  ;;  %5523 = vmatprep.subr.bf16.mxu1 %v7170_v46  ;;  %v7240_v55 = vld [vmem:[#allocation10 + $0x6d0] ss:$8 sps:$4 sm:$0xff]   ;;  %v7248_v46 = vld [vmem:[#allocation10 + $0x6e4] ss:$8 sps:$4 sm:$0xff]   ;;  %v7246_v52 = vld [vmem:[#allocation10 + $0x6e0] ss:$8 sps:$4 sm:$0xff]  }
 0x2ca   :  { %5835 = vmatpush1.bf16.msra.mxu0 %v7195_v13  ;;  %v7273_v13 = vld [vmem:[#allocation10 + $0xea0] ss:$8 sps:$4 sm:$0xff]  }
 0x2cb   :  { %5836 = vmatprep.subr.bf16.mxu0 %v7203_v36  ;;  %5524 = vmatpush1.bf16.msra.mxu1 %v7168_v44  ;;  %v7279_v36 = vld [vmem:[#allocation10 + $0xeb0] ss:$8 sps:$4 sm:$0xff]   ;;  %v7254_v44 = vld [vmem:[#allocation10 + $0x6f4] ss:$8 sps:$4 sm:$0xff]  }
 0x2cc   :  { %5525 = vmatprep.subr.bf16.mxu1 %v7176_v56  ;;  %v7252_v56 = vld [vmem:[#allocation10 + $0x6f0] ss:$8 sps:$4 sm:$0xff]  }
 0x2ce   :  { %5837 = vmatpush1.bf16.msra.mxu0 %v7201_v42  ;;  %v7287_v42 = vld [vmem:[#allocation10 + $0xec4] ss:$8 sps:$4 sm:$0xff]  }
 0x2cf   :  { %5838 = vmatprep.subr.bf16.mxu0 %v7209_v60  ;;  %5526 = vmatpush1.bf16.msra.mxu1 %v7174_v50  ;;  %v7285_v60 = vld [vmem:[#allocation10 + $0xec0] ss:$8 sps:$4 sm:$0xff]   ;;  %v2151_v50 = vmax.f32 %v8200_v57, 0.0  ;;  %v7305_v57 = vld [vmem:[#allocation10 + $0xef4] ss:$8 sps:$4 sm:$0xff]  }
 0x2d0   :  { %5527 = vmatprep.subr.bf16.mxu1 %v7182_v21  ;;  %v7291_v21 = vld [vmem:[#allocation10 + $0xed0] ss:$8 sps:$4 sm:$0xff]  }
 0x2d2   :  { %5839 = vmatpush1.bf16.msra.mxu0 %v7207_v30  ;;  %v7293_v30 = vld [vmem:[#allocation10 + $0xed4] ss:$8 sps:$4 sm:$0xff]  }
 0x2d3   :  { %5849 = vmatprep.subr.bf16.mxu0 %v7215_v22  ;;  %5528 = vmatpush1.bf16.msra.mxu1 %v7180_v40  ;;  %v2154_v22 = vmax.f32 %v8204_v18, 0.0  ;;  %v7266_v40 = vld [vmem:[#allocation10 + $0x714] ss:$8 sps:$4 sm:$0xff]   ;;  %v7303_v18 = vld [vmem:[#allocation10 + $0xef0] ss:$8 sps:$4 sm:$0xff]  }
 0x2d4   :  { %5529 = vmatprep.subr.bf16.mxu1 %v7188_v32  ;;  %v7297_v32 = vld [vmem:[#allocation10 + $0xee0] ss:$8 sps:$4 sm:$0xff]  }
 0x2d5   :  { %5841 = vmatmul.mubr.bf16.vlgmr.msra.gmra.mrb[32].mxu0 %v2197_v49  ;;  %v7299_v49 = vld [vmem:[#allocation10 + $0xee4] ss:$8 sps:$4 sm:$0xff]  }
 0x2d6   :  { %5850 = vmatpush1.bf16.msra.mxu0 %v7213_v15  ;;  %5881 = vmatprep.mubr.bf16.mxu0 %v2200_v24  ;;  %v2183_v15 = vpack.c.bf16 %v2151_v50, %v2151_v50  ;;  %v7264_v24 = vld [vmem:[#allocation10 + $0x710] ss:$8 sps:$4 sm:$0xff]  }
 0x2d7   :  { %5851 = vmatprep.subr.bf16.mxu0 %v7221_v54  ;;  %5530 = vmatpush1.bf16.msra.mxu1 %v7186_v12  ;;  %v2186_v54 = vpack.c.bf16 %v2154_v22, %v2154_v22  ;;  %v7270_v12 = vld [vmem:[#allocation10 + $0x720] ss:$8 sps:$4 sm:$0xff]   ;;  %v7336_v50 = vld [vmem:[#allocation10 + $0x7d0] ss:$8 sps:$4 sm:$0xff]   ;;  %v7344_v22 = vld [vmem:[#allocation10 + $0x7e4] ss:$8 sps:$4 sm:$0xff]  }
 0x2d8   :  { %5531 = vmatprep.subr.bf16.mxu1 %v7194_v29  ;;  %v7311_v29 = vld [vmem:[#allocation10 + $0xf04] ss:$8 sps:$4 sm:$0xff]  }
 0x2da   :  { %5852 = vmatpush1.bf16.msra.mxu0 %v7219_v10  ;;  %v7272_v10 = vld [vmem:[#allocation10 + $0x724] ss:$8 sps:$4 sm:$0xff]  }
 0x2db   :  { %5853 = vmatprep.subr.bf16.mxu0 %v7227_v28  ;;  %5532 = vmatpush1.bf16.msra.mxu1 %v7192_v6  ;;  %v2167_v28 = vmax.f32 %v8275_v51, 0.0  ;;  %v2170_v6 = vmax.f32 %v8277_v45, 0.0  ;;  %v7282_v51 = vld [vmem:[#allocation10 + $0x740] ss:$8 sps:$4 sm:$0xff]   ;;  %v7290_v45 = vld [vmem:[#allocation10 + $0x754] ss:$8 sps:$4 sm:$0xff]  }
 0x2dc   :  { %5533 = vmatprep.subr.bf16.mxu1 %v7200_v53  ;;  %v7276_v53 = vld [vmem:[#allocation10 + $0x730] ss:$8 sps:$4 sm:$0xff]  }
 0x2de   :  { %5854 = vmatpush1.bf16.msra.mxu0 %v7225_v62  ;;  %v7278_v62 = vld [vmem:[#allocation10 + $0x734] ss:$8 sps:$4 sm:$0xff]  }
 0x2df   :  { %5855 = vmatprep.subr.bf16.mxu0 %v7233_v2  ;;  %5534 = vmatpush1.bf16.msra.mxu1 %v7198_v16  ;;  %v7309_v2 = vld [vmem:[#allocation10 + $0xf00] ss:$8 sps:$4 sm:$0xff]   ;;  %v7317_v16 = vld [vmem:[#allocation10 + $0xf14] ss:$8 sps:$4 sm:$0xff]  }
 0x2e0   :  { %5535 = vmatprep.subr.bf16.mxu1 %v7206_v31  ;;  %v2202_v31 = vpack.c.bf16 %v2170_v6, %v2170_v6 }
 0x2e2   :  { %5856 = vmatpush1.bf16.msra.mxu0 %v7231_v9  ;;  %v2199_v9 = vpack.c.bf16 %v2167_v28, %v2167_v28  ;;  %v7377_v28 = vld [vmem:[#allocation10 + $0xff4] ss:$8 sps:$4 sm:$0xff]  }
 0x2e3   :  { %5857 = vmatprep.subr.bf16.mxu0 %v7239_v34  ;;  %5536 = vmatpush1.bf16.msra.mxu1 %v7204_v38  ;;  %v7284_v34 = vld [vmem:[#allocation10 + $0x744] ss:$8 sps:$4 sm:$0xff]  }
 0x2e4   :  { %5537 = vmatprep.subr.bf16.mxu1 %v7212_v25  ;;  %v7323_v38 = vld [vmem:[#allocation10 + $0xf24] ss:$8 sps:$4 sm:$0xff]   ;;  %v7288_v25 = vld [vmem:[#allocation10 + $0x750] ss:$8 sps:$4 sm:$0xff]  }
 0x2e6   :  { %5858 = vmatpush1.bf16.msra.mxu0 %v7237_v20  ;;  %v7315_v20 = vld [vmem:[#allocation10 + $0xf10] ss:$8 sps:$4 sm:$0xff]  }
 0x2e7   :  { %5859 = vmatprep.subr.bf16.mxu0 %v7245_v8  ;;  %5538 = vmatpush1.bf16.msra.mxu1 %v7210_v3  ;;  %v7321_v8 = vld [vmem:[#allocation10 + $0xf20] ss:$8 sps:$4 sm:$0xff]   ;;  %v7296_v3 = vld [vmem:[#allocation10 + $0x764] ss:$8 sps:$4 sm:$0xff]  }
 0x2e8   :  { %5539 = vmatprep.subr.bf16.mxu1 %v7218_v39  ;;  %v7294_v39 = vld [vmem:[#allocation10 + $0x760] ss:$8 sps:$4 sm:$0xff]  }
 0x2ea   :  { %5860 = vmatpush1.bf16.msra.mxu0 %v7243_v58  ;;  %v7329_v58 = vld [vmem:[#allocation10 + $0xf34] ss:$8 sps:$4 sm:$0xff]  }
 0x2eb   :  { %5861 = vmatprep.subr.bf16.mxu0 %v7251_v33  ;;  %5540 = vmatpush1.bf16.msra.mxu1 %v7216_v43  ;;  %v7327_v33 = vld [vmem:[#allocation10 + $0xf30] ss:$8 sps:$4 sm:$0xff]   ;;  %v7302_v43 = vld [vmem:[#allocation10 + $0x774] ss:$8 sps:$4 sm:$0xff]  }
 0x2ec   :  { %5541 = vmatprep.subr.bf16.mxu1 %v7224_v11  ;;  %v7300_v11 = vld [vmem:[#allocation10 + $0x770] ss:$8 sps:$4 sm:$0xff]  }
 0x2ee   :  { %5862 = vmatpush1.bf16.msra.mxu0 %v7249_v26  ;;  %v7335_v26 = vld [vmem:[#allocation10 + $0xf44] ss:$8 sps:$4 sm:$0xff]  }
 0x2ef   :  { %5863 = vmatprep.subr.bf16.mxu0 %v7257_v0  ;;  %5542 = vmatpush1.bf16.msra.mxu1 %v7222_v59  ;;  %v7333_v0 = vld [vmem:[#allocation10 + $0xf40] ss:$8 sps:$4 sm:$0xff]   ;;  %v7308_v59 = vld [vmem:[#allocation10 + $0x784] ss:$8 sps:$4 sm:$0xff]  }
 0x2f0   :  { %5543 = vmatprep.subr.bf16.mxu1 %v7230_v23  ;;  %v7306_v23 = vld [vmem:[#allocation10 + $0x780] ss:$8 sps:$4 sm:$0xff]  }
 0x2f2   :  { %5864 = vmatpush1.bf16.msra.mxu0 %v7255_v37  ;;  %v7341_v37 = vld [vmem:[#allocation10 + $0xf54] ss:$8 sps:$4 sm:$0xff]  }
 0x2f3   :  { %5865 = vmatprep.subr.bf16.mxu0 %v7263_v1  ;;  %5544 = vmatpush1.bf16.msra.mxu1 %v7228_v17  ;;  %v7339_v1 = vld [vmem:[#allocation10 + $0xf50] ss:$8 sps:$4 sm:$0xff]   ;;  %v7314_v17 = vld [vmem:[#allocation10 + $0x794] ss:$8 sps:$4 sm:$0xff]  }
 0x2f4   :  { %5545 = vmatprep.subr.bf16.mxu1 %v7236_v5  ;;  %v7312_v5 = vld [vmem:[#allocation10 + $0x790] ss:$8 sps:$4 sm:$0xff]  }
 0x2f6   :  { %5866 = vmatpush1.bf16.msra.mxu0 %v7261_v35  ;;  %v7347_v35 = vld [vmem:[#allocation10 + $0xf64] ss:$8 sps:$4 sm:$0xff]  }
 0x2f7   :  { %5867 = vmatprep.subr.bf16.mxu0 %v7269_v61  ;;  %5546 = vmatpush1.bf16.msra.mxu1 %v7234_v41  ;;  %v7345_v61 = vld [vmem:[#allocation10 + $0xf60] ss:$8 sps:$4 sm:$0xff]   ;;  %v7320_v41 = vld [vmem:[#allocation10 + $0x7a4] ss:$8 sps:$4 sm:$0xff]  }
 0x2f8   :  { %5547 = vmatprep.subr.bf16.mxu1 %v7242_v19  ;;  %v7318_v19 = vld [vmem:[#allocation10 + $0x7a0] ss:$8 sps:$4 sm:$0xff]  }
 0x2fa   :  { %5868 = vmatpush1.bf16.msra.mxu0 %v7267_v48  ;;  %v7353_v48 = vld [vmem:[#allocation10 + $0xf74] ss:$8 sps:$4 sm:$0xff]  }
 0x2fb   :  { %5869 = vmatprep.subr.bf16.mxu0 %v7275_v63  ;;  %5548 = vmatpush1.bf16.msra.mxu1 %v7240_v55  ;;  %v7351_v63 = vld [vmem:[#allocation10 + $0xf70] ss:$8 sps:$4 sm:$0xff]   ;;  %v7326_v55 = vld [vmem:[#allocation10 + $0x7b4] ss:$8 sps:$4 sm:$0xff]  }
 0x2fc   :  { %5549 = vmatprep.subr.bf16.mxu1 %v7248_v46  ;;  %v7324_v46 = vld [vmem:[#allocation10 + $0x7b0] ss:$8 sps:$4 sm:$0xff]  }
 0x2fe   :  { %5870 = vmatpush1.bf16.msra.mxu0 %v7273_v13  ;;  %v7356_v13 = vld [vmem:[#allocation10 + $0xf84] ss:$8 sps:$4 sm:$0xff]  }
 0x2ff   :  { %5871 = vmatprep.subr.bf16.mxu0 %v7281_v7  ;;  %5550 = vmatpush1.bf16.msra.mxu1 %v7246_v52  ;;  %v7354_v7 = vld [vmem:[#allocation10 + $0xf80] ss:$8 sps:$4 sm:$0xff]   ;;  %v7332_v52 = vld [vmem:[#allocation10 + $0x7c4] ss:$8 sps:$4 sm:$0xff]  }
 0x300   :  { %5551 = vmatprep.subr.bf16.mxu1 %v7254_v44  ;;  %v7330_v44 = vld [vmem:[#allocation10 + $0x7c0] ss:$8 sps:$4 sm:$0xff]  }
 0x302   :  { %5872 = vmatpush1.bf16.msra.mxu0 %v7279_v36  ;;  %v7359_v36 = vld [vmem:[#allocation10 + $0xf94] ss:$8 sps:$4 sm:$0xff]  }
 0x303   :  { %5873 = vmatprep.subr.bf16.mxu0 %v7287_v42  ;;  %5552 = vmatpush1.bf16.msra.mxu1 %v7252_v56  ;;  %v7357_v42 = vld [vmem:[#allocation10 + $0xf90] ss:$8 sps:$4 sm:$0xff]   ;;  %v7338_v56 = vld [vmem:[#allocation10 + $0x7d4] ss:$8 sps:$4 sm:$0xff]  }
 0x304   :  { %5562 = vmatprep.subr.bf16.mxu1 %v7260_v14  ;;  %v7365_v14 = vld [vmem:[#allocation10 + $0xfb4] ss:$8 sps:$4 sm:$0xff]  }
 0x306   :  { %5874 = vmatpush1.bf16.msra.mxu0 %v7285_v60  ;;  %5554 = vmatmul.mubr.bf16.vlgmr.msra.gmra.mrb[32].mxu1 %v2183_v15  ;;  %v7362_v60 = vld [vmem:[#allocation10 + $0xfa4] ss:$8 sps:$4 sm:$0xff]  }
 0x307   :  { %5875 = vmatprep.subr.bf16.mxu0 %v7293_v30  ;;  %5563 = vmatpush1.bf16.msra.mxu1 %v7258_v4  ;;  %v7360_v30 = vld [vmem:[#allocation10 + $0xfa0] ss:$8 sps:$4 sm:$0xff]   ;;  %v7368_v15 = vld [vmem:[#allocation10 + $0xfc4] ss:$8 sps:$4 sm:$0xff]  }
 0x308   :  { %5594 = vmatprep.mubr.bf16.mxu1 %v2186_v54  ;;  %5564 = vmatprep.subr.bf16.mxu1 %v7266_v40  ;;  %v7342_v4 = vld [vmem:[#allocation10 + $0x7e0] ss:$8 sps:$4 sm:$0xff]   ;;  %v7350_v40 = vld [vmem:[#allocation10 + $0x7f4] ss:$8 sps:$4 sm:$0xff]   ;;  %v7348_v54 = vld [vmem:[#allocation10 + $0x7f0] ss:$8 sps:$4 sm:$0xff]  }
 0x30a   :  { %5876 = vmatpush1.bf16.msra.mxu0 %v7291_v21  ;;  %v7363_v21 = vld [vmem:[#allocation10 + $0xfb0] ss:$8 sps:$4 sm:$0xff]  }
 0x30b   :  { %5877 = vmatprep.subr.bf16.mxu0 %v7299_v49  ;;  %5565 = vmatpush1.bf16.msra.mxu1 %v7264_v24  ;;  %v7366_v49 = vld [vmem:[#allocation10 + $0xfc0] ss:$8 sps:$4 sm:$0xff]   ;;  %v2153_v24 = vmax.f32 %v8202_v47, 0.0 }
 0x30c   :  { %5566 = vmatprep.subr.bf16.mxu1 %v7272_v10  ;;  %v7374_v10 = vld [vmem:[#allocation10 + $0xfe4] ss:$8 sps:$4 sm:$0xff]  }
 0x30e   :  { %5878 = vmatpush1.bf16.msra.mxu0 %v7297_v32  ;;  %v7371_v32 = vld [vmem:[#allocation10 + $0xfd4] ss:$8 sps:$4 sm:$0xff]  }
 0x30f   :  { %5879 = vmatprep.subr.bf16.mxu0 %v7305_v57  ;;  %5567 = vmatpush1.bf16.msra.mxu1 %v7270_v12  ;;  %v7369_v57 = vld [vmem:[#allocation10 + $0xfd0] ss:$8 sps:$4 sm:$0xff]   ;;  %v7372_v12 = vld [vmem:[#allocation10 + $0xfe0] ss:$8 sps:$4 sm:$0xff]  }
 0x310   :  { %5568 = vmatprep.subr.bf16.mxu1 %v7278_v62  ;;  %v2169_v62 = vmax.f32 %v8279_v27, 0.0 }
 0x312   :  { %5880 = vmatpush1.bf16.msra.mxu0 %v7303_v18  ;;  %v2185_v18 = vpack.c.bf16 %v2153_v24, %v2153_v24  ;;  %v2201_v6 = vpack.c.bf16 %v2169_v62, %v2169_v62 }
 0x313   :  { %5890 = vmatprep.subr.bf16.mxu0 %v7311_v29  ;;  %5569 = vmatpush1.bf16.msra.mxu1 %v7276_v53  ;;  %v7375_v29 = vld [vmem:[#allocation10 + $0xff0] ss:$8 sps:$4 sm:$0xff]  }
 0x314   :  { %5570 = vmatprep.subr.bf16.mxu1 %v7284_v34 }
 0x315   :  { %5882 = vmatmul.mubr.bf16.vlgmr.msra.gmra.mrb[32].mxu0 %v2199_v9 }
 0x316   :  { %5891 = vmatpush1.bf16.msra.mxu0 %v7309_v2  ;;  %5922 = vmatprep.mubr.bf16.mxu0 %v2202_v31 }
 0x317   :  { %5892 = vmatprep.subr.bf16.mxu0 %v7317_v16  ;;  %5571 = vmatpush1.bf16.msra.mxu1 %v7282_v51 }
 0x318   :  { %5572 = vmatprep.subr.bf16.mxu1 %v7290_v45 }
 0x31a   :  { %5893 = vmatpush1.bf16.msra.mxu0 %v7315_v20 }
 0x31b   :  { %5894 = vmatprep.subr.bf16.mxu0 %v7323_v38  ;;  %5573 = vmatpush1.bf16.msra.mxu1 %v7288_v25 }
 0x31c   :  { %5574 = vmatprep.subr.bf16.mxu1 %v7296_v3 }
 0x31e   :  { %5895 = vmatpush1.bf16.msra.mxu0 %v7321_v8 }
 0x31f   :  { %5896 = vmatprep.subr.bf16.mxu0 %v7329_v58  ;;  %5575 = vmatpush1.bf16.msra.mxu1 %v7294_v39 }
 0x320   :  { %5576 = vmatprep.subr.bf16.mxu1 %v7302_v43 }
 0x322   :  { %5897 = vmatpush1.bf16.msra.mxu0 %v7327_v33 }
 0x323   :  { %5898 = vmatprep.subr.bf16.mxu0 %v7335_v26  ;;  %5577 = vmatpush1.bf16.msra.mxu1 %v7300_v11 }
 0x324   :  { %5578 = vmatprep.subr.bf16.mxu1 %v7308_v59 }
 0x326   :  { %5899 = vmatpush1.bf16.msra.mxu0 %v7333_v0 }
 0x327   :  { %5900 = vmatprep.subr.bf16.mxu0 %v7341_v37  ;;  %5579 = vmatpush1.bf16.msra.mxu1 %v7306_v23 }
 0x328   :  { %5580 = vmatprep.subr.bf16.mxu1 %v7314_v17 }
 0x32a   :  { %5901 = vmatpush1.bf16.msra.mxu0 %v7339_v1 }
 0x32b   :  { %5902 = vmatprep.subr.bf16.mxu0 %v7347_v35  ;;  %5581 = vmatpush1.bf16.msra.mxu1 %v7312_v5 }
 0x32c   :  { %5582 = vmatprep.subr.bf16.mxu1 %v7320_v41 }
 0x32e   :  { %5903 = vmatpush1.bf16.msra.mxu0 %v7345_v61 }
 0x32f   :  { %5904 = vmatprep.subr.bf16.mxu0 %v7353_v48  ;;  %5583 = vmatpush1.bf16.msra.mxu1 %v7318_v19 }
 0x330   :  { %5584 = vmatprep.subr.bf16.mxu1 %v7326_v55 }
 0x332   :  { %5905 = vmatpush1.bf16.msra.mxu0 %v7351_v63 }
 0x333   :  { %5906 = vmatprep.subr.bf16.mxu0 %v7356_v13  ;;  %5585 = vmatpush1.bf16.msra.mxu1 %v7324_v46 }
 0x334   :  { %5586 = vmatprep.subr.bf16.mxu1 %v7332_v52 }
 0x336   :  { %5907 = vmatpush1.bf16.msra.mxu0 %v7354_v7 }
 0x337   :  { %5908 = vmatprep.subr.bf16.mxu0 %v7359_v36  ;;  %5587 = vmatpush1.bf16.msra.mxu1 %v7330_v44 }
 0x338   :  { %5588 = vmatprep.subr.bf16.mxu1 %v7338_v56 }
 0x33a   :  { %5909 = vmatpush1.bf16.msra.mxu0 %v7357_v42 }
 0x33b   :  { %5910 = vmatprep.subr.bf16.mxu0 %v7362_v60  ;;  %5589 = vmatpush1.bf16.msra.mxu1 %v7336_v50 }
 0x33c   :  { %5590 = vmatprep.subr.bf16.mxu1 %v7344_v22 }
 0x33e   :  { %5911 = vmatpush1.bf16.msra.mxu0 %v7360_v30 }
 0x33f   :  { %5912 = vmatprep.subr.bf16.mxu0 %v7365_v14  ;;  %5591 = vmatpush1.bf16.msra.mxu1 %v7342_v4 }
 0x340   :  { %5592 = vmatprep.subr.bf16.mxu1 %v7350_v40 }
 0x342   :  { %5913 = vmatpush1.bf16.msra.mxu0 %v7363_v21 }
 0x343   :  { %5914 = vmatprep.subr.bf16.mxu0 %v7368_v15  ;;  %5593 = vmatpush1.bf16.msra.mxu1 %v7348_v54 }
 0x346   :  { %5915 = vmatpush1.bf16.msra.mxu0 %v7366_v49  ;;  %5595 = vmatmul.mubr.bf16.vlgmr.msra.gmra.mrb[32].mxu1 %v2185_v18 }
 0x347   :  { %5916 = vmatprep.subr.bf16.mxu0 %v7371_v32 }
 0x34a   :  { %5917 = vmatpush1.bf16.msra.mxu0 %v7369_v57 }
 0x34b   :  { %5918 = vmatprep.subr.bf16.mxu0 %v7374_v10 }
 0x34e   :  { %5919 = vmatpush1.bf16.msra.mxu0 %v7372_v12 }
 0x34f   :  { %5920 = vmatprep.subr.bf16.mxu0 %v7377_v28 }
 0x352   :  { %5921 = vmatpush1.bf16.msra.mxu0 %v7375_v29 }
 0x355   :  { %5923 = vmatmul.mubr.bf16.vlgmr.msra.gmra.mrb[32].mxu0 %v2201_v6 }
 0x419   :  { %v5596_v47 = vpop.f32.mrb[32].mxu1 }
 0x41a   :  { %v5598_v2 = vpop.f32.mrb[33].mxu1 }
 0x41b   :  { %v5600_v53 = vpop.f32.mrb[34].mxu1 }
 0x41c   :  { %v5601_v9 = vpop.f32.mrb[35].mxu1 }
 0x428   :  { %v5924_v16 = vpop.f32.mrb[32].mxu0 }
 0x429   :  { %v6542_v34 = vadd.f32 %v5924_v16, %v5596_v47  ;;  %v5926_v31 = vpop.f32.mrb[33].mxu0 }
 0x42a   :  { %v6543_v20 = vadd.f32 %v5926_v31, %v5598_v2  ;;  %v5928_v51 = vpop.f32.mrb[34].mxu0 }
 0x42b   :  { %5931 = vst [vmem:[#allocation11] sm:$0xff] %v6542_v34  ;;  %v5929_v38 = vpop.f32.mrb[35].mxu0 }
 0x42c   :  { %5932 = vst [vmem:[#allocation11 + $0x8] sm:$0xff] %v6543_v20 }
 0x42d   :  { %7568 = shalt.err (!%p7565_p2)
}
 0x42e   :  { %s7569_s30 = scalar_lea.hbm %s8359_s5, 256 }
 0x42f   :  { %p7570_p3 = scmp.ne.s32.totalorder %s8359_s5, %s7569_s30  ;;  %p7573_p4 = scmp.lt.u32.totalorder %s7569_s30, %s8359_s5 }
 0x431   :  { %p7575_p5 = pnand %p7573_p4, %p7570_p3 }
 0x433   :  { %7578 = shalt.err (!%p7575_p5)
}
 0x434   :  { %5942 = dma.vmem_to_hbm [thread:$0]  %s5940_s29, 256, %s8359_s5, [#allocation4]  }
 0x435   :  { %7585 = dma.done.wait [#allocation4], 256  }
 0x436   :  { %7586 = vsyncadd [#allocation4], 4294967040 }
 0x437   :  { %5946 = vsyncpa [#allocation3], 1 }
 0x438   :  { %5947 = vsyncpa [#allocation6], 1 }
 0x439   :  { %5948 = vsyncpa [#allocation9], 1 }
 0x43a   :  { %5949 = vsyncpa [#allocation4], 1 }

</bundles_post_ra>
